<compile_context>
chip_gen: v6e
topology: v6e:2x2x1
jax: 0.10.0
libtpu: 0.0.40
codegen_flags: <defaults>
</compile_context>

<pallas_src>
import functools

import jax
import jax.numpy as jnp
from jax.experimental import pallas as pl
from jax.experimental.pallas import tpu as pltpu


# ---------------------------------------------------------------------------
# Fused EncoderBlock kernel: one full sample per grid step.
# ---------------------------------------------------------------------------
def _encoder_block_kernel(x_ref, w1_ref, w2_ref, cp_ref, gmap_ref, mask_ref,
                          o_ref, a_ref, c1_ref, *,
                          cin, cout, dsp, dp, wp, lflat, qblk, eps):
    """GN1+ReLU -> conv1 -> GN2+ReLU -> conv2 -> +residual for one sample.

    x_ref:    (1, Dp, Cin, Lflat) f32  zero-padded input, plane flattened with
                                       row stride Wp (Lflat = (H+3)*Wp).
    w1_ref,
    w2_ref:   (9, Cout, 3*Cin)   bf16  per in-plane tap weights, K = (zd, cin).
    cp_ref:   (Cin, 6)           f32   [gamma1, beta1, bias1, gamma2, beta2, bias2]
    gmap_ref: (Cin, Cin)         f32   same-group indicator / (cg*D*H*W).
    mask_ref: (1, Lflat)         f32   1.0 on valid (non-halo) positions.
    o_ref:    (1, D, Cout, Qblk) f32   flat output planes (Qblk = H*Wp).
    a_ref:    (Dp, Cin, Lflat)   bf16  scratch: padded conv input (reused for
                                       conv1 and conv2 inputs).
    c1_ref:   (D, Cout, Qblk)    f32   scratch: raw conv1 output.
    """
    soff = wp + 1                       # output flat q <-> padded flat q+soff
    offs = tuple(zh * wp + zw for zh in range(3) for zw in range(3))

    w1 = w1_ref[...]                    # hoisted constant loads
    w2 = w2_ref[...]
    gmap = gmap_ref[...]
    mask = mask_ref[...]                # (1, Lflat)
    m_out = mask[:, soff:soff + qblk]   # (1, Qblk): valid output columns
    m_out_b = jnp.broadcast_to(m_out, (cout, qblk))

    g1, bt1, b1 = cp_ref[:, 0:1], cp_ref[:, 1:2], cp_ref[:, 2:3]
    g2, bt2, b2 = cp_ref[:, 3:4], cp_ref[:, 4:5], cp_ref[:, 5:6]

    def group_affine(s, s2, gamma, beta):
        # Per-channel group mean / E[x^2] via a tiny (C,C)@(C,2) matmul
        # (avoids sublane reshapes on tiny arrays).
        st = jnp.dot(gmap, jnp.concatenate([s, s2], axis=1),
                     preferred_element_type=jnp.float32)
        mean, ex2 = st[:, 0:1], st[:, 1:2]
        scale = gamma * jax.lax.rsqrt(ex2 - mean * mean + eps)
        return scale, beta - mean * scale

    def conv_plane(d, w9, bias_col):
        # 3x3x3 conv for one output depth plane: the 3 depth taps are stacked
        # into K = 3*Cin for free (contiguous planes of the padded scratch);
        # the 9 in-plane taps are static lane-offset slices, f32 MXU accum.
        a3 = a_ref[pl.ds(d, 3)].reshape(3 * cin, lflat)     # (3*Cin, Lflat) bf16
        acc = None
        for t, off in enumerate(offs):
            part = jnp.dot(w9[t], a3[:, off:off + qblk],
                           preferred_element_type=jnp.float32)
            acc = part if acc is None else acc + part
        return acc + bias_col                                # (Cout, Qblk) f32

    # ---- GroupNorm1 statistics over the raw (zero-padded) input ------------
    def gn1_body(dd, carry):
        s, s2 = carry
        xp = x_ref[0, dd]                                    # (Cin, Lflat) f32
        return (s + jnp.sum(xp, axis=1, keepdims=True),
                s2 + jnp.sum(xp * xp, axis=1, keepdims=True))

    zc = jnp.zeros((cin, 1), jnp.float32)
    s1, s1q = jax.lax.fori_loop(1, dp - 1, gn1_body, (zc, zc))
    sc1, sh1 = group_affine(s1, s1q, g1, bt1)
    sc1m = sc1 * mask                                        # halo mask folded
    sh1m = sh1 * mask                                        # into the affine

    # ---- normalise + ReLU + halo-zero -> padded conv1 input (bf16) ---------
    zplane = jnp.zeros((cin, lflat), jnp.bfloat16)
    a_ref[0] = zplane
    a_ref[dp - 1] = zplane

    def a1_body(dd, _):
        xp = x_ref[0, dd]
        a_ref[dd] = jnp.maximum(xp * sc1m + sh1m, 0.0).astype(jnp.bfloat16)
        return 0

    jax.lax.fori_loop(1, dp - 1, a1_body, 0)

    # ---- conv1 (+bias) with on-the-fly GroupNorm2 statistics ---------------
    def conv1_body(d, carry):
        s, s2 = carry
        p = conv_plane(d, w1, b1)
        c1_ref[d] = p
        pm = p * m_out_b                                     # zero garbage cols
        return (s + jnp.sum(pm, axis=1, keepdims=True),
                s2 + jnp.sum(pm * pm, axis=1, keepdims=True))

    zo = jnp.zeros((cout, 1), jnp.float32)
    s2s, s2q = jax.lax.fori_loop(0, dsp, conv1_body, (zo, zo))
    sc2, sh2 = group_affine(s2s, s2q, g2, bt2)
    sc2m = sc2 * m_out
    sh2m = sh2 * m_out

    # ---- normalise + ReLU conv1 output -> padded conv2 input (reuse a_ref) -
    # The shifted store lands the masked garbage columns exactly on the halo
    # positions, and everything outside [soff, soff+Qblk) per plane already
    # holds zeros from the conv1-input pass, so the zero halo stays correct.
    def a2_body(d, _):
        y = jnp.maximum(c1_ref[d] * sc2m + sh2m, 0.0)
        a_ref[d + 1, :, soff:soff + qblk] = y.astype(jnp.bfloat16)
        return 0

    jax.lax.fori_loop(0, dsp, a2_body, 0)

    # ---- conv2 (+bias) + fused residual add, lane-dense stores -------------
    def conv2_body(d, _):
        p = conv_plane(d, w2, b2)
        res = x_ref[0, d + 1, :, soff:soff + qblk]           # raw x residual
        o_ref[0, d] = p + res
        return 0

    jax.lax.fori_loop(0, dsp, conv2_body, 0)


# ---------------------------------------------------------------------------
# Wrapper: single layout change in, single layout change out.
# ---------------------------------------------------------------------------
@functools.partial(jax.jit, static_argnames=("num_groups",))
def encoder_block_forward(x, params, *, num_groups=8):
    n, c, dsp, h, w = x.shape
    cout, cin = params["w1"].shape[0], params["w1"].shape[1]
    assert cin == c and cout == c, "residual add requires inChans == outChans"
    assert c % num_groups == 0

    # Flattened-plane row stride: >= W+2 (halo) and, if cheaply possible,
    # chosen so the per-plane lane dim H*Wp is a multiple of 128.
    wp = w + 2
    for cand in range(w + 2, w + 2 + 17):
        if (h * cand) % 128 == 0:
            wp = cand
            break
    dp = dsp + 2
    lflat = (h + 3) * wp    # one extra zero row keeps shifted reads in-bounds
    qblk = h * wp

    # Entry layout change: channel-major, zero-padded, flattened plane (f32).
    a = jnp.transpose(x, (0, 2, 1, 3, 4))                           # (N,D,C,H,W)
    a = jnp.pad(a, ((0, 0), (1, 1), (0, 0), (1, 2), (1, wp - w - 1)))
    a = a.reshape(n, dp, c, lflat).astype(jnp.float32)

    # (O, I, kd, kh, kw) -> (kh*kw, O, kd*I): depth taps pre-stacked into K.
    def prep_w(wt):
        return (jnp.transpose(wt, (3, 4, 0, 2, 1))
                .reshape(9, cout, 3 * c).astype(jnp.bfloat16))

    cp = jnp.stack([params["gamma1"], params["beta1"], params["b1"],
                    params["gamma2"], params["beta2"], params["b2"]],
                   axis=1).astype(jnp.float32)                       # (C, 6)

    cg = c // num_groups
    gid = jnp.arange(c, dtype=jnp.int32) // cg
    gmap = (gid[:, None] == gid[None, :]).astype(jnp.float32)
    gmap = gmap / float(cg * dsp * h * w)                            # (C, C)

    pos = jnp.arange(lflat, dtype=jnp.int32)
    rr, ccol = pos // wp, pos % wp
    mask = (((rr >= 1) & (rr <= h) & (ccol >= 1) & (ccol <= w))
            .astype(jnp.float32).reshape(1, lflat))

    kernel = functools.partial(
        _encoder_block_kernel, cin=c, cout=cout, dsp=dsp, dp=dp, wp=wp,
        lflat=lflat, qblk=qblk, eps=1e-5)

    out_flat = pl.pallas_call(
        kernel,
        out_shape=jax.ShapeDtypeStruct((n, dsp, cout, qblk), jnp.float32),
        grid_spec=pltpu.PrefetchScalarGridSpec(
            num_scalar_prefetch=0,
            grid=(n,),
            in_specs=[
                # Whole padded sample per step (no 3x redundant plane DMA).
                pl.BlockSpec((1, dp, c, lflat), lambda i: (i, 0, 0, 0)),
                # Constant-index weights / params (tiny; default double
                # buffering wastes ~30 KB -- pl.Buffered(1) skipped for
                # maximum portability across jax versions).
                pl.BlockSpec((9, cout, 3 * c), lambda i: (0, 0, 0)),
                pl.BlockSpec((9, cout, 3 * c), lambda i: (0, 0, 0)),
                pl.BlockSpec((c, 6), lambda i: (0, 0)),
                pl.BlockSpec((c, c), lambda i: (0, 0)),
                pl.BlockSpec((1, lflat), lambda i: (0, 0)),
            ],
            out_specs=pl.BlockSpec((1, dsp, cout, qblk), lambda i: (i, 0, 0, 0)),
            scratch_shapes=[
                pltpu.VMEM((dp, c, lflat), jnp.bfloat16),    # padded activations
                pltpu.VMEM((dsp, cout, qblk), jnp.float32),  # raw conv1 output
            ],
        ),
        compiler_params=pltpu.CompilerParams(
            dimension_semantics=("parallel",),
            vmem_limit_bytes=32 * 1024 * 1024,
        ),
    )(a, prep_w(params["w1"]), prep_w(params["w2"]), cp, gmap, mask)

    # Exit layout change: drop garbage columns, back to NCDHW.
    out = out_flat.reshape(n, dsp, cout, h, wp)[..., :w]
    return jnp.transpose(out, (0, 2, 1, 3, 4))


# ---------------------------------------------------------------------------
# Pure-JAX reference (same math: f32 GN/ReLU, bf16 conv operands, f32 accum).
# ---------------------------------------------------------------------------
def _group_norm_relu(x, gamma, beta, num_groups, eps=1e-5):
    n, c, d, h, w = x.shape
    xg = x.reshape(n, num_groups, c // num_groups, d, h, w)
    mean = jnp.mean(xg, axis=(2, 3, 4, 5), keepdims=True)
    var = jnp.mean(jnp.square(xg - mean), axis=(2, 3, 4, 5), keepdims=True)
    xn = ((xg - mean) * jax.lax.rsqrt(var + eps)).reshape(n, c, d, h, w)
    out = xn * gamma[None, :, None, None, None] + beta[None, :, None, None, None]
    return jnp.maximum(out, 0.0)


def _conv3d_reference(act, weight, bias):
    y = jax.lax.conv_general_dilated(
        act.astype(jnp.bfloat16),
        weight.astype(jnp.bfloat16),
        window_strides=(1, 1, 1),
        padding=[(1, 1)] * 3,
        dimension_numbers=("NCDHW", "OIDHW", "NCDHW"),
        preferred_element_type=jnp.float32,
    )
    return y + bias[None, :, None, None, None]


def encoder_block_reference(x, params, num_groups=8):
    residual = x
    out = _group_norm_relu(x, params["gamma1"], params["beta1"], num_groups)
    out = _conv3d_reference(out, params["w1"], params["b1"])
    out = _group_norm_relu(out, params["gamma2"], params["beta2"], num_groups)
    out = _conv3d_reference(out, params["w2"], params["b2"])
    return out + residual


if __name__ == "__main__":
    key = jax.random.PRNGKey(0)
    ks = jax.random.split(key, 9)

    # EncoderBlock needs inChans == outChans (residual add) and
    # channels % num_groups == 0 (GroupNorm with num_groups=8) -> C = 16.
    N, C, D, H, W = 2, 16, 16, 16, 16
    G = 8

    x = jax.random.normal(ks[0], (N, C, D, H, W), dtype=jnp.float32)

    fan_in = C * 3 ** 3
    bound = (1.0 / fan_in) ** 0.5
    params = {
        "gamma1": 1.0 + 0.1 * jax.random.normal(ks[1], (C,), jnp.float32),
        "beta1": 0.1 * jax.random.normal(ks[2], (C,), jnp.float32),
        "w1": jax.random.uniform(ks[3], (C, C, 3, 3, 3), jnp.float32, -bound, bound),
        "b1": jax.random.uniform(ks[4], (C,), jnp.float32, -bound, bound),
        "gamma2": 1.0 + 0.1 * jax.random.normal(ks[5], (C,), jnp.float32),
        "beta2": 0.1 * jax.random.normal(ks[6], (C,), jnp.float32),
        "w2": jax.random.uniform(ks[7], (C, C, 3, 3, 3), jnp.float32, -bound, bound),
        "b2": jax.random.uniform(ks[8], (C,), jnp.float32, -bound, bound),
    }

    out = encoder_block_forward(x, params, num_groups=G)
    out = jax.block_until_ready(out)

    ref = encoder_block_reference(x, params, num_groups=G)
    assert out.shape == ref.shape == (N, C, D, H, W), out.shape
    err = float(jnp.max(jnp.abs(out - ref)))
    assert err < 2e-2, f"max |pallas - ref| = {err}"

    print("KERNEL_OK")
</pallas_src>

<mosaic_0001>
module attributes {stable_mosaic.version = 11 : i64} {
  func.func @_encoder_block_kernel(%arg0: i32, %arg1: memref<1x18x16x456xf32, #tpu.memory_space<vmem>>, %arg2: memref<9x16x48xbf16, #tpu.memory_space<vmem>>, %arg3: memref<9x16x48xbf16, #tpu.memory_space<vmem>>, %arg4: memref<16x6xf32, #tpu.memory_space<vmem>>, %arg5: memref<16x16xf32, #tpu.memory_space<vmem>>, %arg6: memref<1x456xf32, #tpu.memory_space<vmem>>, %arg7: memref<1x16x16x384xf32, #tpu.memory_space<vmem>>, %arg8: memref<18x16x456xbf16, #tpu.memory_space<vmem>>, %arg9: memref<16x16x384xf32, #tpu.memory_space<vmem>>) attributes {dimension_semantics = [#tpu.dimension_semantics<parallel>], iteration_bounds = array<i64: 2>, scalar_prefetch = 0 : i64, scratch_operands = 2 : i64, tpu.core_type = #tpu.core_type<tc>, window_params = [{transform_indices = @transform_0, window_bounds = array<i64: 1, 18, 16, 456>}, {pipeline_mode = #tpu.pipeline_mode<synchronous>, transform_indices = @transform_1, window_bounds = array<i64: 9, 16, 48>}, {pipeline_mode = #tpu.pipeline_mode<synchronous>, transform_indices = @transform_2, window_bounds = array<i64: 9, 16, 48>}, {pipeline_mode = #tpu.pipeline_mode<synchronous>, transform_indices = @transform_3, window_bounds = array<i64: 16, 6>}, {pipeline_mode = #tpu.pipeline_mode<synchronous>, transform_indices = @transform_4, window_bounds = array<i64: 16, 16>}, {pipeline_mode = #tpu.pipeline_mode<synchronous>, transform_indices = @transform_5, window_bounds = array<i64: 1, 456>}, {transform_indices = @transform_6, window_bounds = array<i64: 1, 16, 16, 384>}]} {
    %c0 = arith.constant 0 : index
    %c0_0 = arith.constant 0 : index
    %c0_1 = arith.constant 0 : index
    %0 = vector.load %arg2[%c0, %c0_0, %c0_1] : memref<9x16x48xbf16, #tpu.memory_space<vmem>>, vector<9x16x48xbf16>
    %c0_2 = arith.constant 0 : index
    %c0_3 = arith.constant 0 : index
    %c0_4 = arith.constant 0 : index
    %1 = vector.load %arg3[%c0_2, %c0_3, %c0_4] : memref<9x16x48xbf16, #tpu.memory_space<vmem>>, vector<9x16x48xbf16>
    %c0_5 = arith.constant 0 : index
    %c0_6 = arith.constant 0 : index
    %2 = vector.load %arg5[%c0_5, %c0_6] : memref<16x16xf32, #tpu.memory_space<vmem>>, vector<16x16xf32>
    %c0_7 = arith.constant 0 : index
    %c0_8 = arith.constant 0 : index
    %3 = vector.load %arg6[%c0_7, %c0_8] : memref<1x456xf32, #tpu.memory_space<vmem>>, vector<1x456xf32>
    %4 = vector.extract_strided_slice %3 {offsets = [0, 25], sizes = [1, 384], strides = [1, 1]} : vector<1x456xf32> to vector<1x384xf32>
    %5 = vector.shape_cast %4 : vector<1x384xf32> to vector<1x384xf32>
    %6 = vector.broadcast %5 : vector<1x384xf32> to vector<16x384xf32>
    %c0_9 = arith.constant 0 : index
    %c0_10 = arith.constant 0 : index
    %7 = vector.load %arg4[%c0_9, %c0_10] : memref<16x6xf32, #tpu.memory_space<vmem>>, vector<16x1xf32>
    %c0_11 = arith.constant 0 : index
    %c1 = arith.constant 1 : index
    %8 = vector.load %arg4[%c0_11, %c1] : memref<16x6xf32, #tpu.memory_space<vmem>>, vector<16x1xf32>
    %c0_12 = arith.constant 0 : index
    %c2 = arith.constant 2 : index
    %9 = vector.load %arg4[%c0_12, %c2] : memref<16x6xf32, #tpu.memory_space<vmem>>, vector<16x1xf32>
    %c0_13 = arith.constant 0 : index
    %c3 = arith.constant 3 : index
    %10 = vector.load %arg4[%c0_13, %c3] : memref<16x6xf32, #tpu.memory_space<vmem>>, vector<16x1xf32>
    %c0_14 = arith.constant 0 : index
    %c4 = arith.constant 4 : index
    %11 = vector.load %arg4[%c0_14, %c4] : memref<16x6xf32, #tpu.memory_space<vmem>>, vector<16x1xf32>
    %c0_15 = arith.constant 0 : index
    %c5 = arith.constant 5 : index
    %12 = vector.load %arg4[%c0_15, %c5] : memref<16x6xf32, #tpu.memory_space<vmem>>, vector<16x1xf32>
    %cst = arith.constant 0.000000e+00 : f32
    %13 = vector.broadcast %cst : f32 to vector<16x1xf32>
    %c1_i32 = arith.constant 1 : i32
    %c16_i32 = arith.constant 16 : i32
    %14 = arith.addi %c1_i32, %c16_i32 : i32
    %c1_i32_16 = arith.constant 1 : i32
    %15:2 = scf.for %arg10 = %c1_i32 to %14 step %c1_i32_16 iter_args(%arg11 = %13, %arg12 = %13) -> (vector<16x1xf32>, vector<16x1xf32>)  : i32 {
      %c0_44 = arith.constant 0 : index
      %65 = arith.index_cast %arg10 : i32 to index
      %c0_45 = arith.constant 0 : index
      %c0_46 = arith.constant 0 : index
      %66 = vector.load %arg1[%c0_44, %65, %c0_45, %c0_46] : memref<1x18x16x456xf32, #tpu.memory_space<vmem>>, vector<1x1x16x456xf32>
      %67 = vector.shape_cast %66 : vector<1x1x16x456xf32> to vector<16x456xf32>
      %cst_47 = arith.constant dense<0.000000e+00> : vector<16xf32>
      %68 = vector.multi_reduction <add>, %67, %cst_47 [1] : vector<16x456xf32> to vector<16xf32>
      %69 = vector.shape_cast %68 : vector<16xf32> to vector<16x1xf32>
      %70 = arith.addf %arg11, %69 : vector<16x1xf32>
      %71 = arith.mulf %67, %67 : vector<16x456xf32>
      %cst_48 = arith.constant dense<0.000000e+00> : vector<16xf32>
      %72 = vector.multi_reduction <add>, %71, %cst_48 [1] : vector<16x456xf32> to vector<16xf32>
      %73 = vector.shape_cast %72 : vector<16xf32> to vector<16x1xf32>
      %74 = arith.addf %arg12, %73 : vector<16x1xf32>
      scf.yield %70, %74 : vector<16x1xf32>, vector<16x1xf32>
    }
    %c16_i32_17 = arith.constant 16 : i32
    %16 = tpu.concatenate %15#0, %15#1 in 1 : vector<16x1xf32>, vector<16x1xf32> -> vector<16x2xf32>
    %cst_18 = arith.constant dense<0.000000e+00> : vector<16x2xf32>
    %17 = tpu.matmul %2, %16, %cst_18 {dimension_numbers = #tpu.dot_dimension_numbers<[1], [0], [0], [1], [0, 0, 1, 1], [], []>} : vector<16x16xf32>, vector<16x2xf32>, vector<16x2xf32> -> vector<16x2xf32>
    %18 = vector.extract_strided_slice %17 {offsets = [0, 0], sizes = [16, 1], strides = [1, 1]} : vector<16x2xf32> to vector<16x1xf32>
    %19 = vector.extract_strided_slice %17 {offsets = [0, 1], sizes = [16, 1], strides = [1, 1]} : vector<16x2xf32> to vector<16x1xf32>
    %20 = arith.mulf %18, %18 : vector<16x1xf32>
    %21 = arith.subf %19, %20 : vector<16x1xf32>
    %cst_19 = arith.constant 9.99999974E-6 : f32
    %22 = vector.broadcast %cst_19 : f32 to vector<16x1xf32>
    %23 = arith.addf %21, %22 : vector<16x1xf32>
    %24 = math.rsqrt %23 : vector<16x1xf32>
    %25 = arith.mulf %7, %24 : vector<16x1xf32>
    %26 = arith.mulf %18, %25 : vector<16x1xf32>
    %27 = arith.subf %8, %26 : vector<16x1xf32>
    %28 = vector.broadcast %25 : vector<16x1xf32> to vector<16x456xf32>
    %29 = vector.broadcast %3 : vector<1x456xf32> to vector<16x456xf32>
    %30 = arith.mulf %28, %29 : vector<16x456xf32>
    %31 = vector.broadcast %27 : vector<16x1xf32> to vector<16x456xf32>
    %32 = vector.broadcast %3 : vector<1x456xf32> to vector<16x456xf32>
    %33 = arith.mulf %31, %32 : vector<16x456xf32>
    %cst_20 = arith.constant 0.000000e+00 : bf16
    %34 = vector.broadcast %cst_20 : bf16 to vector<16x456xbf16>
    %c0_21 = arith.constant 0 : index
    %c0_22 = arith.constant 0 : index
    %c0_23 = arith.constant 0 : index
    %35 = vector.load %arg8[%c0_21, %c0_22, %c0_23] : memref<18x16x456xbf16, #tpu.memory_space<vmem>>, vector<1x16x456xbf16>
    %36 = vector.shape_cast %35 : vector<1x16x456xbf16> to vector<16x456xbf16>
    %37 = vector.shape_cast %34 : vector<16x456xbf16> to vector<1x16x456xbf16>
    tpu.vector_store %arg8[%c0_21, %c0_22, %c0_23], %37 {strides = array<i32>} : memref<18x16x456xbf16, #tpu.memory_space<vmem>>, vector<1x16x456xbf16>,
    %c17 = arith.constant 17 : index
    %c0_24 = arith.constant 0 : index
    %c0_25 = arith.constant 0 : index
    %38 = vector.load %arg8[%c17, %c0_24, %c0_25] : memref<18x16x456xbf16, #tpu.memory_space<vmem>>, vector<1x16x456xbf16>
    %39 = vector.shape_cast %38 : vector<1x16x456xbf16> to vector<16x456xbf16>
    %40 = vector.shape_cast %34 : vector<16x456xbf16> to vector<1x16x456xbf16>
    tpu.vector_store %arg8[%c17, %c0_24, %c0_25], %40 {strides = array<i32>} : memref<18x16x456xbf16, #tpu.memory_space<vmem>>, vector<1x16x456xbf16>,
    %c1_i32_26 = arith.constant 1 : i32
    %c16_i32_27 = arith.constant 16 : i32
    %41 = arith.addi %c1_i32_26, %c16_i32_27 : i32
    %c1_i32_28 = arith.constant 1 : i32
    scf.for %arg10 = %c1_i32_26 to %41 step %c1_i32_28  : i32 {
      %c0_44 = arith.constant 0 : index
      %65 = arith.index_cast %arg10 : i32 to index
      %c0_45 = arith.constant 0 : index
      %c0_46 = arith.constant 0 : index
      %66 = vector.load %arg1[%c0_44, %65, %c0_45, %c0_46] : memref<1x18x16x456xf32, #tpu.memory_space<vmem>>, vector<1x1x16x456xf32>
      %67 = vector.shape_cast %66 : vector<1x1x16x456xf32> to vector<16x456xf32>
      %68 = arith.mulf %67, %30 : vector<16x456xf32>
      %69 = arith.addf %68, %33 : vector<16x456xf32>
      %cst_47 = arith.constant 0.000000e+00 : f32
      %70 = vector.broadcast %cst_47 : f32 to vector<16x456xf32>
      %71 = arith.maximumf %69, %70 : vector<16x456xf32>
      %72 = arith.truncf %71 : vector<16x456xf32> to vector<16x456xbf16>
      %73 = arith.index_cast %arg10 : i32 to index
      %c0_48 = arith.constant 0 : index
      %c0_49 = arith.constant 0 : index
      %74 = vector.load %arg8[%73, %c0_48, %c0_49] : memref<18x16x456xbf16, #tpu.memory_space<vmem>>, vector<1x16x456xbf16>
      %75 = vector.shape_cast %74 : vector<1x16x456xbf16> to vector<16x456xbf16>
      %76 = vector.shape_cast %72 : vector<16x456xbf16> to vector<1x16x456xbf16>
      tpu.vector_store %arg8[%73, %c0_48, %c0_49], %76 {strides = array<i32>} : memref<18x16x456xbf16, #tpu.memory_space<vmem>>, vector<1x16x456xbf16>,
    }
    %c16_i32_29 = arith.constant 16 : i32
    %cst_30 = arith.constant 0.000000e+00 : f32
    %42 = vector.broadcast %cst_30 : f32 to vector<16x1xf32>
    %c0_i32 = arith.constant 0 : i32
    %c16_i32_31 = arith.constant 16 : i32
    %43 = arith.addi %c0_i32, %c16_i32_31 : i32
    %c1_i32_32 = arith.constant 1 : i32
    %44:2 = scf.for %arg10 = %c0_i32 to %43 step %c1_i32_32 iter_args(%arg11 = %42, %arg12 = %42) -> (vector<16x1xf32>, vector<16x1xf32>)  : i32 {
      %65 = arith.index_cast %arg10 : i32 to index
      %c0_44 = arith.constant 0 : index
      %c0_45 = arith.constant 0 : index
      %66 = vector.load %arg8[%65, %c0_44, %c0_45] : memref<18x16x456xbf16, #tpu.memory_space<vmem>>, vector<3x16x456xbf16>
      %67 = vector.shape_cast %66 : vector<3x16x456xbf16> to vector<48x456xbf16>
      %68 = vector.extract_strided_slice %0 {offsets = [0, 0, 0], sizes = [1, 16, 48], strides = [1, 1, 1]} : vector<9x16x48xbf16> to vector<1x16x48xbf16>
      %69 = vector.shape_cast %68 : vector<1x16x48xbf16> to vector<16x48xbf16>
      %70 = vector.extract_strided_slice %67 {offsets = [0, 0], sizes = [48, 384], strides = [1, 1]} : vector<48x456xbf16> to vector<48x384xbf16>
      %cst_46 = arith.constant dense<0.000000e+00> : vector<16x384xf32>
      %71 = tpu.matmul %69, %70, %cst_46 {dimension_numbers = #tpu.dot_dimension_numbers<[1], [0], [0], [1], [0, 0, 1, 1], [], []>} : vector<16x48xbf16>, vector<48x384xbf16>, vector<16x384xf32> -> vector<16x384xf32>
      %72 = vector.extract_strided_slice %0 {offsets = [1, 0, 0], sizes = [1, 16, 48], strides = [1, 1, 1]} : vector<9x16x48xbf16> to vector<1x16x48xbf16>
      %73 = vector.shape_cast %72 : vector<1x16x48xbf16> to vector<16x48xbf16>
      %74 = vector.extract_strided_slice %67 {offsets = [0, 1], sizes = [48, 384], strides = [1, 1]} : vector<48x456xbf16> to vector<48x384xbf16>
      %cst_47 = arith.constant dense<0.000000e+00> : vector<16x384xf32>
      %75 = tpu.matmul %73, %74, %cst_47 {dimension_numbers = #tpu.dot_dimension_numbers<[1], [0], [0], [1], [0, 0, 1, 1], [], []>} : vector<16x48xbf16>, vector<48x384xbf16>, vector<16x384xf32> -> vector<16x384xf32>
      %76 = arith.addf %71, %75 : vector<16x384xf32>
      %77 = vector.extract_strided_slice %0 {offsets = [2, 0, 0], sizes = [1, 16, 48], strides = [1, 1, 1]} : vector<9x16x48xbf16> to vector<1x16x48xbf16>
      %78 = vector.shape_cast %77 : vector<1x16x48xbf16> to vector<16x48xbf16>
      %79 = vector.extract_strided_slice %67 {offsets = [0, 2], sizes = [48, 384], strides = [1, 1]} : vector<48x456xbf16> to vector<48x384xbf16>
      %cst_48 = arith.constant dense<0.000000e+00> : vector<16x384xf32>
      %80 = tpu.matmul %78, %79, %cst_48 {dimension_numbers = #tpu.dot_dimension_numbers<[1], [0], [0], [1], [0, 0, 1, 1], [], []>} : vector<16x48xbf16>, vector<48x384xbf16>, vector<16x384xf32> -> vector<16x384xf32>
      %81 = arith.addf %76, %80 : vector<16x384xf32>
      %82 = vector.extract_strided_slice %0 {offsets = [3, 0, 0], sizes = [1, 16, 48], strides = [1, 1, 1]} : vector<9x16x48xbf16> to vector<1x16x48xbf16>
      %83 = vector.shape_cast %82 : vector<1x16x48xbf16> to vector<16x48xbf16>
      %84 = vector.extract_strided_slice %67 {offsets = [0, 24], sizes = [48, 384], strides = [1, 1]} : vector<48x456xbf16> to vector<48x384xbf16>
      %cst_49 = arith.constant dense<0.000000e+00> : vector<16x384xf32>
      %85 = tpu.matmul %83, %84, %cst_49 {dimension_numbers = #tpu.dot_dimension_numbers<[1], [0], [0], [1], [0, 0, 1, 1], [], []>} : vector<16x48xbf16>, vector<48x384xbf16>, vector<16x384xf32> -> vector<16x384xf32>
      %86 = arith.addf %81, %85 : vector<16x384xf32>
      %87 = vector.extract_strided_slice %0 {offsets = [4, 0, 0], sizes = [1, 16, 48], strides = [1, 1, 1]} : vector<9x16x48xbf16> to vector<1x16x48xbf16>
      %88 = vector.shape_cast %87 : vector<1x16x48xbf16> to vector<16x48xbf16>
      %89 = vector.extract_strided_slice %67 {offsets = [0, 25], sizes = [48, 384], strides = [1, 1]} : vector<48x456xbf16> to vector<48x384xbf16>
      %cst_50 = arith.constant dense<0.000000e+00> : vector<16x384xf32>
      %90 = tpu.matmul %88, %89, %cst_50 {dimension_numbers = #tpu.dot_dimension_numbers<[1], [0], [0], [1], [0, 0, 1, 1], [], []>} : vector<16x48xbf16>, vector<48x384xbf16>, vector<16x384xf32> -> vector<16x384xf32>
      %91 = arith.addf %86, %90 : vector<16x384xf32>
      %92 = vector.extract_strided_slice %0 {offsets = [5, 0, 0], sizes = [1, 16, 48], strides = [1, 1, 1]} : vector<9x16x48xbf16> to vector<1x16x48xbf16>
      %93 = vector.shape_cast %92 : vector<1x16x48xbf16> to vector<16x48xbf16>
      %94 = vector.extract_strided_slice %67 {offsets = [0, 26], sizes = [48, 384], strides = [1, 1]} : vector<48x456xbf16> to vector<48x384xbf16>
      %cst_51 = arith.constant dense<0.000000e+00> : vector<16x384xf32>
      %95 = tpu.matmul %93, %94, %cst_51 {dimension_numbers = #tpu.dot_dimension_numbers<[1], [0], [0], [1], [0, 0, 1, 1], [], []>} : vector<16x48xbf16>, vector<48x384xbf16>, vector<16x384xf32> -> vector<16x384xf32>
      %96 = arith.addf %91, %95 : vector<16x384xf32>
      %97 = vector.extract_strided_slice %0 {offsets = [6, 0, 0], sizes = [1, 16, 48], strides = [1, 1, 1]} : vector<9x16x48xbf16> to vector<1x16x48xbf16>
      %98 = vector.shape_cast %97 : vector<1x16x48xbf16> to vector<16x48xbf16>
      %99 = vector.extract_strided_slice %67 {offsets = [0, 48], sizes = [48, 384], strides = [1, 1]} : vector<48x456xbf16> to vector<48x384xbf16>
      %cst_52 = arith.constant dense<0.000000e+00> : vector<16x384xf32>
      %100 = tpu.matmul %98, %99, %cst_52 {dimension_numbers = #tpu.dot_dimension_numbers<[1], [0], [0], [1], [0, 0, 1, 1], [], []>} : vector<16x48xbf16>, vector<48x384xbf16>, vector<16x384xf32> -> vector<16x384xf32>
      %101 = arith.addf %96, %100 : vector<16x384xf32>
      %102 = vector.extract_strided_slice %0 {offsets = [7, 0, 0], sizes = [1, 16, 48], strides = [1, 1, 1]} : vector<9x16x48xbf16> to vector<1x16x48xbf16>
      %103 = vector.shape_cast %102 : vector<1x16x48xbf16> to vector<16x48xbf16>
      %104 = vector.extract_strided_slice %67 {offsets = [0, 49], sizes = [48, 384], strides = [1, 1]} : vector<48x456xbf16> to vector<48x384xbf16>
      %cst_53 = arith.constant dense<0.000000e+00> : vector<16x384xf32>
      %105 = tpu.matmul %103, %104, %cst_53 {dimension_numbers = #tpu.dot_dimension_numbers<[1], [0], [0], [1], [0, 0, 1, 1], [], []>} : vector<16x48xbf16>, vector<48x384xbf16>, vector<16x384xf32> -> vector<16x384xf32>
      %106 = arith.addf %101, %105 : vector<16x384xf32>
      %107 = vector.extract_strided_slice %0 {offsets = [8, 0, 0], sizes = [1, 16, 48], strides = [1, 1, 1]} : vector<9x16x48xbf16> to vector<1x16x48xbf16>
      %108 = vector.shape_cast %107 : vector<1x16x48xbf16> to vector<16x48xbf16>
      %109 = vector.extract_strided_slice %67 {offsets = [0, 50], sizes = [48, 384], strides = [1, 1]} : vector<48x456xbf16> to vector<48x384xbf16>
      %cst_54 = arith.constant dense<0.000000e+00> : vector<16x384xf32>
      %110 = tpu.matmul %108, %109, %cst_54 {dimension_numbers = #tpu.dot_dimension_numbers<[1], [0], [0], [1], [0, 0, 1, 1], [], []>} : vector<16x48xbf16>, vector<48x384xbf16>, vector<16x384xf32> -> vector<16x384xf32>
      %111 = arith.addf %106, %110 : vector<16x384xf32>
      %112 = vector.broadcast %9 : vector<16x1xf32> to vector<16x384xf32>
      %113 = arith.addf %111, %112 : vector<16x384xf32>
      %114 = arith.index_cast %arg10 : i32 to index
      %c0_55 = arith.constant 0 : index
      %c0_56 = arith.constant 0 : index
      %115 = vector.load %arg9[%114, %c0_55, %c0_56] : memref<16x16x384xf32, #tpu.memory_space<vmem>>, vector<1x16x384xf32>
      %116 = vector.shape_cast %115 : vector<1x16x384xf32> to vector<16x384xf32>
      %117 = vector.shape_cast %113 : vector<16x384xf32> to vector<1x16x384xf32>
      tpu.vector_store %arg9[%114, %c0_55, %c0_56], %117 {strides = array<i32>} : memref<16x16x384xf32, #tpu.memory_space<vmem>>, vector<1x16x384xf32>,
      %118 = arith.mulf %113, %6 : vector<16x384xf32>
      %cst_57 = arith.constant dense<0.000000e+00> : vector<16xf32>
      %119 = vector.multi_reduction <add>, %118, %cst_57 [1] : vector<16x384xf32> to vector<16xf32>
      %120 = vector.shape_cast %119 : vector<16xf32> to vector<16x1xf32>
      %121 = arith.addf %arg11, %120 : vector<16x1xf32>
      %122 = arith.mulf %118, %118 : vector<16x384xf32>
      %cst_58 = arith.constant dense<0.000000e+00> : vector<16xf32>
      %123 = vector.multi_reduction <add>, %122, %cst_58 [1] : vector<16x384xf32> to vector<16xf32>
      %124 = vector.shape_cast %123 : vector<16xf32> to vector<16x1xf32>
      %125 = arith.addf %arg12, %124 : vector<16x1xf32>
      scf.yield %121, %125 : vector<16x1xf32>, vector<16x1xf32>
    }
    %c16_i32_33 = arith.constant 16 : i32
    %45 = tpu.concatenate %44#0, %44#1 in 1 : vector<16x1xf32>, vector<16x1xf32> -> vector<16x2xf32>
    %cst_34 = arith.constant dense<0.000000e+00> : vector<16x2xf32>
    %46 = tpu.matmul %2, %45, %cst_34 {dimension_numbers = #tpu.dot_dimension_numbers<[1], [0], [0], [1], [0, 0, 1, 1], [], []>} : vector<16x16xf32>, vector<16x2xf32>, vector<16x2xf32> -> vector<16x2xf32>
    %47 = vector.extract_strided_slice %46 {offsets = [0, 0], sizes = [16, 1], strides = [1, 1]} : vector<16x2xf32> to vector<16x1xf32>
    %48 = vector.extract_strided_slice %46 {offsets = [0, 1], sizes = [16, 1], strides = [1, 1]} : vector<16x2xf32> to vector<16x1xf32>
    %49 = arith.mulf %47, %47 : vector<16x1xf32>
    %50 = arith.subf %48, %49 : vector<16x1xf32>
    %cst_35 = arith.constant 9.99999974E-6 : f32
    %51 = vector.broadcast %cst_35 : f32 to vector<16x1xf32>
    %52 = arith.addf %50, %51 : vector<16x1xf32>
    %53 = math.rsqrt %52 : vector<16x1xf32>
    %54 = arith.mulf %10, %53 : vector<16x1xf32>
    %55 = arith.mulf %47, %54 : vector<16x1xf32>
    %56 = arith.subf %11, %55 : vector<16x1xf32>
    %57 = vector.broadcast %54 : vector<16x1xf32> to vector<16x384xf32>
    %58 = vector.broadcast %4 : vector<1x384xf32> to vector<16x384xf32>
    %59 = arith.mulf %57, %58 : vector<16x384xf32>
    %60 = vector.broadcast %56 : vector<16x1xf32> to vector<16x384xf32>
    %61 = vector.broadcast %4 : vector<1x384xf32> to vector<16x384xf32>
    %62 = arith.mulf %60, %61 : vector<16x384xf32>
    %c0_i32_36 = arith.constant 0 : i32
    %c16_i32_37 = arith.constant 16 : i32
    %63 = arith.addi %c0_i32_36, %c16_i32_37 : i32
    %c1_i32_38 = arith.constant 1 : i32
    scf.for %arg10 = %c0_i32_36 to %63 step %c1_i32_38  : i32 {
      %65 = arith.index_cast %arg10 : i32 to index
      %c0_44 = arith.constant 0 : index
      %c0_45 = arith.constant 0 : index
      %66 = vector.load %arg9[%65, %c0_44, %c0_45] : memref<16x16x384xf32, #tpu.memory_space<vmem>>, vector<1x16x384xf32>
      %67 = vector.shape_cast %66 : vector<1x16x384xf32> to vector<16x384xf32>
      %68 = arith.mulf %67, %59 : vector<16x384xf32>
      %69 = arith.addf %68, %62 : vector<16x384xf32>
      %cst_46 = arith.constant 0.000000e+00 : f32
      %70 = vector.broadcast %cst_46 : f32 to vector<16x384xf32>
      %71 = arith.maximumf %69, %70 : vector<16x384xf32>
      %72 = arith.truncf %71 : vector<16x384xf32> to vector<16x384xbf16>
      %c1_i32_47 = arith.constant 1 : i32
      %73 = arith.addi %arg10, %c1_i32_47 : i32
      %74 = arith.index_cast %73 : i32 to index
      %c0_48 = arith.constant 0 : index
      %c25 = arith.constant 25 : index
      %75 = vector.load %arg8[%74, %c0_48, %c25] : memref<18x16x456xbf16, #tpu.memory_space<vmem>>, vector<1x16x384xbf16>
      %76 = vector.shape_cast %75 : vector<1x16x384xbf16> to vector<16x384xbf16>
      %77 = vector.shape_cast %72 : vector<16x384xbf16> to vector<1x16x384xbf16>
      tpu.vector_store %arg8[%74, %c0_48, %c25], %77 {strides = array<i32>} : memref<18x16x456xbf16, #tpu.memory_space<vmem>>, vector<1x16x384xbf16>,
    }
    %c16_i32_39 = arith.constant 16 : i32
    %c0_i32_40 = arith.constant 0 : i32
    %c16_i32_41 = arith.constant 16 : i32
    %64 = arith.addi %c0_i32_40, %c16_i32_41 : i32
    %c1_i32_42 = arith.constant 1 : i32
    scf.for %arg10 = %c0_i32_40 to %64 step %c1_i32_42  : i32 {
      %65 = arith.index_cast %arg10 : i32 to index
      %c0_44 = arith.constant 0 : index
      %c0_45 = arith.constant 0 : index
      %66 = vector.load %arg8[%65, %c0_44, %c0_45] : memref<18x16x456xbf16, #tpu.memory_space<vmem>>, vector<3x16x456xbf16>
      %67 = vector.shape_cast %66 : vector<3x16x456xbf16> to vector<48x456xbf16>
      %68 = vector.extract_strided_slice %1 {offsets = [0, 0, 0], sizes = [1, 16, 48], strides = [1, 1, 1]} : vector<9x16x48xbf16> to vector<1x16x48xbf16>
      %69 = vector.shape_cast %68 : vector<1x16x48xbf16> to vector<16x48xbf16>
      %70 = vector.extract_strided_slice %67 {offsets = [0, 0], sizes = [48, 384], strides = [1, 1]} : vector<48x456xbf16> to vector<48x384xbf16>
      %cst_46 = arith.constant dense<0.000000e+00> : vector<16x384xf32>
      %71 = tpu.matmul %69, %70, %cst_46 {dimension_numbers = #tpu.dot_dimension_numbers<[1], [0], [0], [1], [0, 0, 1, 1], [], []>} : vector<16x48xbf16>, vector<48x384xbf16>, vector<16x384xf32> -> vector<16x384xf32>
      %72 = vector.extract_strided_slice %1 {offsets = [1, 0, 0], sizes = [1, 16, 48], strides = [1, 1, 1]} : vector<9x16x48xbf16> to vector<1x16x48xbf16>
      %73 = vector.shape_cast %72 : vector<1x16x48xbf16> to vector<16x48xbf16>
      %74 = vector.extract_strided_slice %67 {offsets = [0, 1], sizes = [48, 384], strides = [1, 1]} : vector<48x456xbf16> to vector<48x384xbf16>
      %cst_47 = arith.constant dense<0.000000e+00> : vector<16x384xf32>
      %75 = tpu.matmul %73, %74, %cst_47 {dimension_numbers = #tpu.dot_dimension_numbers<[1], [0], [0], [1], [0, 0, 1, 1], [], []>} : vector<16x48xbf16>, vector<48x384xbf16>, vector<16x384xf32> -> vector<16x384xf32>
      %76 = arith.addf %71, %75 : vector<16x384xf32>
      %77 = vector.extract_strided_slice %1 {offsets = [2, 0, 0], sizes = [1, 16, 48], strides = [1, 1, 1]} : vector<9x16x48xbf16> to vector<1x16x48xbf16>
      %78 = vector.shape_cast %77 : vector<1x16x48xbf16> to vector<16x48xbf16>
      %79 = vector.extract_strided_slice %67 {offsets = [0, 2], sizes = [48, 384], strides = [1, 1]} : vector<48x456xbf16> to vector<48x384xbf16>
      %cst_48 = arith.constant dense<0.000000e+00> : vector<16x384xf32>
      %80 = tpu.matmul %78, %79, %cst_48 {dimension_numbers = #tpu.dot_dimension_numbers<[1], [0], [0], [1], [0, 0, 1, 1], [], []>} : vector<16x48xbf16>, vector<48x384xbf16>, vector<16x384xf32> -> vector<16x384xf32>
      %81 = arith.addf %76, %80 : vector<16x384xf32>
      %82 = vector.extract_strided_slice %1 {offsets = [3, 0, 0], sizes = [1, 16, 48], strides = [1, 1, 1]} : vector<9x16x48xbf16> to vector<1x16x48xbf16>
      %83 = vector.shape_cast %82 : vector<1x16x48xbf16> to vector<16x48xbf16>
      %84 = vector.extract_strided_slice %67 {offsets = [0, 24], sizes = [48, 384], strides = [1, 1]} : vector<48x456xbf16> to vector<48x384xbf16>
      %cst_49 = arith.constant dense<0.000000e+00> : vector<16x384xf32>
      %85 = tpu.matmul %83, %84, %cst_49 {dimension_numbers = #tpu.dot_dimension_numbers<[1], [0], [0], [1], [0, 0, 1, 1], [], []>} : vector<16x48xbf16>, vector<48x384xbf16>, vector<16x384xf32> -> vector<16x384xf32>
      %86 = arith.addf %81, %85 : vector<16x384xf32>
      %87 = vector.extract_strided_slice %1 {offsets = [4, 0, 0], sizes = [1, 16, 48], strides = [1, 1, 1]} : vector<9x16x48xbf16> to vector<1x16x48xbf16>
      %88 = vector.shape_cast %87 : vector<1x16x48xbf16> to vector<16x48xbf16>
      %89 = vector.extract_strided_slice %67 {offsets = [0, 25], sizes = [48, 384], strides = [1, 1]} : vector<48x456xbf16> to vector<48x384xbf16>
      %cst_50 = arith.constant dense<0.000000e+00> : vector<16x384xf32>
      %90 = tpu.matmul %88, %89, %cst_50 {dimension_numbers = #tpu.dot_dimension_numbers<[1], [0], [0], [1], [0, 0, 1, 1], [], []>} : vector<16x48xbf16>, vector<48x384xbf16>, vector<16x384xf32> -> vector<16x384xf32>
      %91 = arith.addf %86, %90 : vector<16x384xf32>
      %92 = vector.extract_strided_slice %1 {offsets = [5, 0, 0], sizes = [1, 16, 48], strides = [1, 1, 1]} : vector<9x16x48xbf16> to vector<1x16x48xbf16>
      %93 = vector.shape_cast %92 : vector<1x16x48xbf16> to vector<16x48xbf16>
      %94 = vector.extract_strided_slice %67 {offsets = [0, 26], sizes = [48, 384], strides = [1, 1]} : vector<48x456xbf16> to vector<48x384xbf16>
      %cst_51 = arith.constant dense<0.000000e+00> : vector<16x384xf32>
      %95 = tpu.matmul %93, %94, %cst_51 {dimension_numbers = #tpu.dot_dimension_numbers<[1], [0], [0], [1], [0, 0, 1, 1], [], []>} : vector<16x48xbf16>, vector<48x384xbf16>, vector<16x384xf32> -> vector<16x384xf32>
      %96 = arith.addf %91, %95 : vector<16x384xf32>
      %97 = vector.extract_strided_slice %1 {offsets = [6, 0, 0], sizes = [1, 16, 48], strides = [1, 1, 1]} : vector<9x16x48xbf16> to vector<1x16x48xbf16>
      %98 = vector.shape_cast %97 : vector<1x16x48xbf16> to vector<16x48xbf16>
      %99 = vector.extract_strided_slice %67 {offsets = [0, 48], sizes = [48, 384], strides = [1, 1]} : vector<48x456xbf16> to vector<48x384xbf16>
      %cst_52 = arith.constant dense<0.000000e+00> : vector<16x384xf32>
      %100 = tpu.matmul %98, %99, %cst_52 {dimension_numbers = #tpu.dot_dimension_numbers<[1], [0], [0], [1], [0, 0, 1, 1], [], []>} : vector<16x48xbf16>, vector<48x384xbf16>, vector<16x384xf32> -> vector<16x384xf32>
      %101 = arith.addf %96, %100 : vector<16x384xf32>
      %102 = vector.extract_strided_slice %1 {offsets = [7, 0, 0], sizes = [1, 16, 48], strides = [1, 1, 1]} : vector<9x16x48xbf16> to vector<1x16x48xbf16>
      %103 = vector.shape_cast %102 : vector<1x16x48xbf16> to vector<16x48xbf16>
      %104 = vector.extract_strided_slice %67 {offsets = [0, 49], sizes = [48, 384], strides = [1, 1]} : vector<48x456xbf16> to vector<48x384xbf16>
      %cst_53 = arith.constant dense<0.000000e+00> : vector<16x384xf32>
      %105 = tpu.matmul %103, %104, %cst_53 {dimension_numbers = #tpu.dot_dimension_numbers<[1], [0], [0], [1], [0, 0, 1, 1], [], []>} : vector<16x48xbf16>, vector<48x384xbf16>, vector<16x384xf32> -> vector<16x384xf32>
      %106 = arith.addf %101, %105 : vector<16x384xf32>
      %107 = vector.extract_strided_slice %1 {offsets = [8, 0, 0], sizes = [1, 16, 48], strides = [1, 1, 1]} : vector<9x16x48xbf16> to vector<1x16x48xbf16>
      %108 = vector.shape_cast %107 : vector<1x16x48xbf16> to vector<16x48xbf16>
      %109 = vector.extract_strided_slice %67 {offsets = [0, 50], sizes = [48, 384], strides = [1, 1]} : vector<48x456xbf16> to vector<48x384xbf16>
      %cst_54 = arith.constant dense<0.000000e+00> : vector<16x384xf32>
      %110 = tpu.matmul %108, %109, %cst_54 {dimension_numbers = #tpu.dot_dimension_numbers<[1], [0], [0], [1], [0, 0, 1, 1], [], []>} : vector<16x48xbf16>, vector<48x384xbf16>, vector<16x384xf32> -> vector<16x384xf32>
      %111 = arith.addf %106, %110 : vector<16x384xf32>
      %112 = vector.broadcast %12 : vector<16x1xf32> to vector<16x384xf32>
      %113 = arith.addf %111, %112 : vector<16x384xf32>
      %c1_i32_55 = arith.constant 1 : i32
      %114 = arith.addi %arg10, %c1_i32_55 : i32
      %c0_56 = arith.constant 0 : index
      %115 = arith.index_cast %114 : i32 to index
      %c0_57 = arith.constant 0 : index
      %c25 = arith.constant 25 : index
      %116 = vector.load %arg1[%c0_56, %115, %c0_57, %c25] : memref<1x18x16x456xf32, #tpu.memory_space<vmem>>, vector<1x1x16x384xf32>
      %117 = vector.shape_cast %116 : vector<1x1x16x384xf32> to vector<16x384xf32>
      %118 = arith.addf %113, %117 : vector<16x384xf32>
      %c0_58 = arith.constant 0 : index
      %119 = arith.index_cast %arg10 : i32 to index
      %c0_59 = arith.constant 0 : index
      %c0_60 = arith.constant 0 : index
      %120 = vector.load %arg7[%c0_58, %119, %c0_59, %c0_60] : memref<1x16x16x384xf32, #tpu.memory_space<vmem>>, vector<1x1x16x384xf32>
      %121 = vector.shape_cast %120 : vector<1x1x16x384xf32> to vector<16x384xf32>
      %122 = vector.shape_cast %118 : vector<16x384xf32> to vector<1x1x16x384xf32>
      tpu.vector_store %arg7[%c0_58, %119, %c0_59, %c0_60], %122 {strides = array<i32>} : memref<1x16x16x384xf32, #tpu.memory_space<vmem>>, vector<1x1x16x384xf32>,
    }
    %c16_i32_43 = arith.constant 16 : i32
    return
  }
  func.func @transform_0(%arg0: i32) -> (i32, i32, i32, i32) {
    %c0_i32 = arith.constant 0 : i32
    %c0_i32_0 = arith.constant 0 : i32
    %c0_i32_1 = arith.constant 0 : i32
    %c0_i32_2 = arith.constant 0 : i32
    return %arg0, %c0_i32, %c0_i32_0, %c0_i32_1 : i32, i32, i32, i32
  }
  func.func @transform_1(%arg0: i32) -> (i32, i32, i32) {
    %c0_i32 = arith.constant 0 : i32
    %c0_i32_0 = arith.constant 0 : i32
    %c0_i32_1 = arith.constant 0 : i32
    %c0_i32_2 = arith.constant 0 : i32
    return %c0_i32, %c0_i32_0, %c0_i32_1 : i32, i32, i32
  }
  func.func @transform_2(%arg0: i32) -> (i32, i32, i32) {
    %c0_i32 = arith.constant 0 : i32
    %c0_i32_0 = arith.constant 0 : i32
    %c0_i32_1 = arith.constant 0 : i32
    %c0_i32_2 = arith.constant 0 : i32
    return %c0_i32, %c0_i32_0, %c0_i32_1 : i32, i32, i32
  }
  func.func @transform_3(%arg0: i32) -> (i32, i32) {
    %c0_i32 = arith.constant 0 : i32
    %c0_i32_0 = arith.constant 0 : i32
    %c0_i32_1 = arith.constant 0 : i32
    return %c0_i32, %c0_i32_0 : i32, i32
  }
  func.func @transform_4(%arg0: i32) -> (i32, i32) {
    %c0_i32 = arith.constant 0 : i32
    %c0_i32_0 = arith.constant 0 : i32
    %c0_i32_1 = arith.constant 0 : i32
    return %c0_i32, %c0_i32_0 : i32, i32
  }
  func.func @transform_5(%arg0: i32) -> (i32, i32) {
    %c0_i32 = arith.constant 0 : i32
    %c0_i32_0 = arith.constant 0 : i32
    %c0_i32_1 = arith.constant 0 : i32
    return %c0_i32, %c0_i32_0 : i32, i32
  }
  func.func @transform_6(%arg0: i32) -> (i32, i32, i32, i32) {
    %c0_i32 = arith.constant 0 : i32
    %c0_i32_0 = arith.constant 0 : i32
    %c0_i32_1 = arith.constant 0 : i32
    %c0_i32_2 = arith.constant 0 : i32
    return %arg0, %c0_i32, %c0_i32_0, %c0_i32_1 : i32, i32, i32, i32
  }
}

</mosaic_0001>

<bundles_post_ra>
// kernel: encoder_block_forward.1
= control target key start
LH: loop header
LB: loop body
LE: loop exit
PB: predicated region body
PF: predicated region fallthrough
CT: control target
= control target key end

     0   :  { %s4601_s21 = smov 0   ;;  %s5874_s0 = inlined_call_operand.vmem [shape: f32[2,18,16,456], index: 0, kind: input, shape index: {}]   ;;  %s5875_s1 = inlined_call_operand.vmem [shape: bf16[9,16,48], index: 1, kind: input, shape index: {}]   ;;  %s5876_s2 = inlined_call_operand.vmem [shape: bf16[9,16,48], index: 2, kind: input, shape index: {}]   ;;  %s5877_s3 = inlined_call_operand.vmem [shape: f32[16,6], index: 3, kind: input, shape index: {}]   ;;  %s5878_s4 = inlined_call_operand.vmem [shape: f32[16,16], index: 4, kind: input, shape index: {}]   ;;  %s5879_s5 = inlined_call_operand.vmem [shape: f32[1,456], index: 5, kind: input, shape index: {}]   ;;  %s5880_s6 = inlined_call_operand.vmem [shape: f32[2,16,16,384], index: 6, kind: output, shape index: {}]  }
   0x1 LB: > { %s3799_s22 = sadd.s32 4294967295, %s4477_s21   ;;  %p3803_p0 = scmp.ge.s32.totalorder %s4477_s21, 1  ;;  %s4477_s21 = sphi %s4601_s21, %s16_s21  }
   0x2   : > { %p212_p1 = scmp.lt.s32.totalorder %s4477_s21, 3 }
   0x4   : > { %p213_p2 = pnand %p3803_p0, %p212_p1 }
   0x6   : > { %216 = sbr.rel (%p213_p2) target bundleno = 3174 (0xc66), region = 44 }
   0xb   : > { %p242_p3 = scmp.lt.s32.totalorder %s3799_s22, 1  ;;  %v4612_v0 = vld [vmem:[%s5875_s1] sm:$0xf]  ;;  %v4617_v1 = vld [vmem:[%s5875_s1 + $0x4] sm:$0xf]  ;;  %v293_v3 = vlaneseq  ;;  %v4652_v9 = vld [vmem:[%s5878_s4 + $0x8] sm:$0xff] }
   0xc   : > { %5881 = vst [vmem:[#allocation4_spill] sm:$0xff] %v4612_v0  ;;  %5882 = vst [vmem:[#allocation5_spill] sm:$0xff] %v4617_v1  ;;  %v4622_v2 = vld [vmem:[%s5878_s4] sm:$0xff]  ;;  %v4627_v4 = vld [vmem:[%s5875_s1 + $0x8] sm:$0xf]  ;;  %v4830_v51 = vmov 0.0  }
   0xd   : > { %5883 = vst [vmem:[#allocation6_spill] sm:$0xff] %v4627_v4  ;;  %v4632_v5 = vld [vmem:[%s5875_s1 + $0xc] sm:$0xf]  ;;  %v4637_v6 = vld [vmem:[%s5875_s1 + $0x10] sm:$0xf]  ;;  %s5972_s22 = smov (!%p242_p3, %s3799_s22), 1 }
   0xe   : > { %5884 = vst [vmem:[#allocation7_spill] sm:$0xff] %v4632_v5  ;;  %5885 = vst [vmem:[#allocation8_spill] sm:$0xff] %v4637_v6  ;;  %v4642_v7 = vld [vmem:[%s5875_s1 + $0x14] sm:$0xf]  ;;  %v4647_v8 = vld [vmem:[%s5875_s1 + $0x18] sm:$0xf] }
   0xf   : > { %5886 = vst [vmem:[#allocation9_spill] sm:$0xff] %v4642_v7  ;;  %5887 = vst [vmem:[#allocation10_spill] sm:$0xff] %v4647_v8  ;;  %v4657_v10 = vld [vmem:[%s5875_s1 + $0x1c] sm:$0xf]  ;;  %v4662_v11 = vld [vmem:[%s5875_s1 + $0x20] sm:$0xf] }
  0x10   : > { %5888 = vst [vmem:[#allocation11_spill] sm:$0xff] %v4657_v10  ;;  %5889 = vst [vmem:[#allocation12_spill] sm:$0xff] %v4662_v11  ;;  %v4667_v12 = vld [vmem:[%s5875_s1 + $0x24] sm:$0xf]  ;;  %s4214_s25 = smul.u32 1152, %s5972_s22  ;;  %v294_v15 = vshrl.u32 %v293_v3, 7 }
  0x11   : > { %5890 = vst [vmem:[#allocation13_spill] sm:$0xff] %v4667_v12  ;;  %v4672_v13 = vld [vmem:[%s5875_s1 + $0x28] sm:$0xf]  ;;  %v4677_v14 = vld [vmem:[%s5875_s1 + $0x2c] sm:$0xf]  ;;  %s4215_s30 = smul.u32 768, %s5972_s22 }
  0x12   : > { %5891 = vst [vmem:[#allocation14_spill] sm:$0xff] %v4672_v13  ;;  %5892 = vst [vmem:[#allocation15_spill] sm:$0xff] %v4677_v14  ;;  %v4682_v16 = vld [vmem:[%s5875_s1 + $0x30] sm:$0xf]  ;;  %v4687_v17 = vld [vmem:[%s5875_s1 + $0x34] sm:$0xf]  ;;  %s4697_s15 = scalar_lea.vmem %s5874_s0, %s4214_s25 }
  0x13   : > { %5893 = vst [vmem:[#allocation16_spill] sm:$0xff] %v4682_v16  ;;  %5894 = vst [vmem:[#allocation17_spill] sm:$0xff] %v4687_v17  ;;  %v4692_v18 = vld [vmem:[%s5877_s3] sm:$0xff]  ;;  %v4702_v19 = vld [vmem:[%s5875_s1 + $0x38] sm:$0xf]  ;;  %s4717_s25 = scalar_lea.vmem %s5880_s6, %s4215_s30  ;;  %v295_v42 = vsub.s32 0, %v294_v15 }
  0x14   : > { %5895 = vst [vmem:[#allocation18_spill] sm:$0xff] %v4702_v19  ;;  %v4707_v20 = vld [vmem:[%s5875_s1 + $0x3c] sm:$0xf]  ;;  %v4712_v21 = vld [vmem:[%s5875_s1 + $0x40] sm:$0xf]  ;;  %v299_v43 = vsub.s32 1, %v294_v15 }
  0x15   : > { %v4722_v22 = vld [vmem:[%s5875_s1 + $0x44] sm:$0xf]  ;;  %v4727_v23 = vld [vmem:[%s5876_s2] sm:$0xf]  ;;  %v4737_v25 = vld [vmem:[%s5876_s2 + $0x8] sm:$0xf] }
  0x16   : > { %5896 = vst [vmem:[#allocation19_spill] sm:$0xff] %v4727_v23  ;;  %v4732_v24 = vld [vmem:[%s5876_s2 + $0x4] sm:$0xf]  ;;  %5898 = vst [vmem:[#allocation21_spill] sm:$0xff] %v4737_v25  ;;  %v4742_v26 = vld [vmem:[%s5876_s2 + $0xc] sm:$0xf] }
  0x17   : > { %5897 = vst [vmem:[#allocation20_spill] sm:$0xff] %v4732_v24  ;;  %5899 = vst [vmem:[#allocation22_spill] sm:$0xff] %v4742_v26  ;;  %v4747_v27 = vld [vmem:[%s5876_s2 + $0x10] sm:$0xf]  ;;  %v4752_v28 = vld [vmem:[%s5876_s2 + $0x14] sm:$0xf] }
  0x18   : > { %5900 = vst [vmem:[#allocation23_spill] sm:$0xff] %v4747_v27  ;;  %5901 = vst [vmem:[#allocation24_spill] sm:$0xff] %v4752_v28  ;;  %v4757_v29 = vld [vmem:[%s5876_s2 + $0x18] sm:$0xf]  ;;  %v4762_v30 = vld [vmem:[%s5876_s2 + $0x1c] sm:$0xf] }
  0x19   : > { %5902 = vst [vmem:[#allocation25_spill] sm:$0xff] %v4757_v29  ;;  %5903 = vst [vmem:[#allocation26_spill] sm:$0xff] %v4762_v30  ;;  %v4767_v31 = vld [vmem:[%s5876_s2 + $0x20] sm:$0xf]  ;;  %v4772_v32 = vld [vmem:[%s5876_s2 + $0x24] sm:$0xf] }
  0x1a   : > { %5904 = vst [vmem:[#allocation27_spill] sm:$0xff] %v4767_v31  ;;  %5905 = vst [vmem:[#allocation28_spill] sm:$0xff] %v4772_v32  ;;  %v4777_v33 = vld [vmem:[%s5876_s2 + $0x28] sm:$0xf]  ;;  %v4782_v34 = vld [vmem:[%s5876_s2 + $0x2c] sm:$0xf] }
  0x1b   : > { %5906 = vst [vmem:[#allocation29_spill] sm:$0xff] %v4777_v33  ;;  %5907 = vst [vmem:[#allocation30_spill] sm:$0xff] %v4782_v34  ;;  %v4787_v35 = vld [vmem:[%s5876_s2 + $0x30] sm:$0xf]  ;;  %v4792_v36 = vld [vmem:[%s5876_s2 + $0x34] sm:$0xf] }
  0x1c   : > { %5908 = vst [vmem:[#allocation31_spill] sm:$0xff] %v4787_v35  ;;  %5909 = vst [vmem:[#allocation32_spill] sm:$0xff] %v4792_v36  ;;  %v4797_v37 = vld [vmem:[%s5876_s2 + $0x38] sm:$0xf]  ;;  %v4802_v38 = vld [vmem:[%s5876_s2 + $0x3c] sm:$0xf] }
  0x1d   : > { %5910 = vst [vmem:[#allocation33_spill] sm:$0xff] %v4797_v37  ;;  %5911 = vst [vmem:[#allocation34_spill] sm:$0xff] %v4802_v38  ;;  %v4807_v39 = vld [vmem:[%s5876_s2 + $0x40] sm:$0xf]  ;;  %v4812_v40 = vld [vmem:[%s5876_s2 + $0x44] sm:$0xf] }
  0x1e   : > { %5912 = vst [vmem:[#allocation35_spill] sm:$0xff] %v4807_v39  ;;  %5913 = vst [vmem:[#allocation36_spill] sm:$0xff] %v4812_v40  ;;  %v291_v41 = vld [vmem:[%s5879_s5] sm:$0xf]  ;;  %v303_v44 = vsub.s32 2, %v294_v15  ;;  %v307_v45 = vsub.s32 3, %v294_v15 }
  0x1f   : > { %v4820_v46 = vld [vmem:[%s5877_s3 + $0x8] sm:$0xff]  ;;  %v4822_v47 = vrot.slane %v291_v41, %v295_v42  ;;  %v4824_v48 = vrot.slane %v291_v41, %v299_v43  ;;  %v4832_v52 = vmov 0.0   ;;  %v4834_v53 = vmov 0.0   ;;  %s4838_s26 = smov 1  }
  0x20   : > { %v4826_v49 = vrot.slane %v291_v41, %v303_v44  ;;  %v4828_v50 = vrot.slane %v291_v41, %v307_v45  ;;  %v4836_v54 = vmov 0.0  }
  0x21 LB: >> { %s3924_s27 = sshll.u32 %s4497_s26, 6  ;;  %vm338_vm0 = vcmask 588800   ;;  %s320_s26 = sadd.s32 1, %s4497_s26   ;;  %s4497_s26 = sphi %s4838_s26, %s320_s26   ;;  %v4493_v54 = vphi %v4836_v54, %v5917_v54   ;;  %v4489_v53 = vphi %v4834_v53, %v5916_v53   ;;  %v4485_v52 = vphi %v4832_v52, %v5915_v52   ;;  %v4481_v51 = vphi %v4830_v51, %v5914_v51  }
  0x22   : >> { %s327_s28 = scalar_lea.vmem %s4697_s15, %s3924_s27  ;;  %p317_p4 = scmp.ge.s32.totalorder %s320_s26, 17  }
  0x23   : >> { %v328_v55 = vld [vmem:[%s327_s28] sm:$0xff]  ;;  %v329_v56 = vld [vmem:[%s327_s28 + $0x8] sm:$0xff]  ;;  %v330_v57 = vld [vmem:[%s327_s28 + $0x10] sm:$0xff]  ;;  %vm373_vm1 = vcmask (%p317_p4), 7168   ;;  %vm376_vm2 = vcmask (%p317_p4), 130048   ;;  %s4531_s29 = smov (%p317_p4), 1  }
  0x24   : >> { %v331_v58 = vld [vmem:[%s327_s28 + $0x18] sm:$0xff]  ;;  %v351_v59 = vmul.f32 %v328_v55, %v328_v55  ;;  %v352_v60 = vmul.f32 %v329_v56, %v329_v56  ;;  %v353_v61 = vmul.f32 %v330_v57, %v330_v57  ;;  %v336_v62 = vadd.f32 %v329_v56, %v328_v55  ;;  %v332_v63 = vld [vmem:[%s327_s28 + $0x20] sm:$0xff]  ;;  %v333_v3 = vld [vmem:[%s327_s28 + $0x28] sm:$0xff]  ;;  %4024 = vmatprep.mubr.msk.f32.mxu0 (%p317_p4), %vm376_vm2, %v4622_v2  ;;  %s4533_s7 = smov (%p317_p4), 127   ;;  %s4921_s8 = smov (%p317_p4), 1  }
  0x25   : >> { %v354_v15 = vmul.f32 %v331_v58, %v331_v58  ;;  %v339_v41 = vsel %vm338_vm0, %v331_v58, 0.0  ;;  %v334_v42 = vld [vmem:[%s327_s28 + $0x30] sm:$0xff]  ;;  %v335_v43 = vld [vmem:[%s327_s28 + $0x38] sm:$0xff]  ;;  %v355_v44 = vmul.f32 %v332_v63, %v332_v63  ;;  %v356_v45 = vmul.f32 %v333_v3, %v333_v3 }
  0x26   : >> { %v359_v39 = vadd.f32 %v352_v60, %v351_v59  ;;  %v337_v40 = vadd.f32 %v336_v62, %v330_v57  ;;  %v357_v37 = vmul.f32 %v334_v42, %v334_v42  ;;  %v358_v38 = vmul.f32 %v335_v43, %v335_v43 }
  0x27   : >> { %v361_v35 = vsel %vm338_vm0, %v354_v15, 0.0  ;;  %v365_v36 = vadd.f32 %v356_v45, %v355_v44  ;;  %v343_v33 = vadd.f32 %v333_v3, %v332_v63  ;;  %v345_v55 = vsel %vm338_vm0, %v335_v43, 0.0 }
  0x28   : >> { %v360_v34 = vadd.f32 %v359_v39, %v353_v61  ;;  %v340_v31 = vadd.f32 %v339_v41, %v337_v40  ;;  %v367_v32 = vsel %vm338_vm0, %v358_v38, 0.0  ;;  %vm533_vm3 = vcmask (%p317_p4), 1043456  }
  0x29   : >> { %v366_v56 = vadd.f32 %v365_v36, %v357_v37  ;;  %v344_v58 = vadd.f32 %v343_v33, %v334_v42  ;;  %vm534_vm4 = vcmask (%p317_p4), 588804  }
  0x2a   : >> { %v362_v29 = vadd.f32 %v361_v35, %v360_v34  ;;  %341 = vadd.xlane.f32.xlu0 %v340_v31  ;;  %vm4873_vm5 = vmor (%p317_p4), %vm534_vm4, %vm533_vm3 }
  0x2b   : >> { %v346_v30 = vadd.f32 %v345_v55, %v344_v58  ;;  %v368_v59 = vadd.f32 %v367_v32, %v366_v56  ;;  %v4534_v58 = vmov (%p317_p4), 1  }
  0x2c   : >> { %363 = vadd.xlane.f32.xlu1 %v362_v29 }
  0x2e   : >> { %347 = vadd.xlane.f32.xlu0 %v346_v30 }
  0x30   : >> { %369 = vadd.xlane.f32.xlu1 %v368_v59 }
  0xb3   : >> { %v342_v57 = vpop.xlane.xlu0 %341 }
  0xb4   : >> { %v349_v60 = vadd.f32 %v4493_v54, %v342_v57  }
  0xb5   : >> { %v364_v62 = vpop.xlane.xlu1 %363 }
  0xb6   : >> { %v371_v15 = vadd.f32 %v4485_v52, %v364_v62   ;;  %v5917_v54 = vmov %v349_v60 }
  0xb7   : >> { %v348_v63 = vpop.xlane.xlu0 %347  ;;  %v4532_v54 = vmov (%p317_p4), 0  }
  0xb8   : >> { %v350_v39 = vadd.f32 %v4489_v53, %v348_v63   ;;  %v5915_v52 = vmov %v371_v15  ;;  %319 = sbr.rel (!%p317_p4) target bundleno = 33 (0x21), region = 120  ;;  %v374_v30 = vsel (%p317_p4), %vm373_vm1, %v349_v60, %v371_v15  ;;  %4363 = vset.pattern.permute.xlu0 (%p317_p4), %v4532_v54  ;;  %532 = vst [vmem:[#allocation2] sm:$0xff] (%p317_p4), %v4532_v54  ;;  %537 = vst [vmem:[#allocation2 + $0x10] sm:$0xff] (%p317_p4), %v4532_v54  ;;  %4364 = vset.pattern.permute.xlu1 (%p317_p4), %v4532_v54 }
  0xb9   : >> { %v370_v40 = vpop.xlane.xlu1 %369  ;;  %540 = vst [vmem:[#allocation2 + $0x220] sm:$0xff] (%p317_p4), %v4532_v54  ;;  %542 = vst [vmem:[#allocation2 + $0x230] sm:$0xff] (%p317_p4), %v4532_v54 }
  0xba   : >> { %v372_v61 = vadd.f32 %v4481_v51, %v370_v40   ;;  %v5916_v53 = vmov %v350_v39  ;;  %536 = vst.msk [vmem:[#allocation2 + $0x8] sm:$0xff] (%p317_p4), %vm4873_vm5, %v4532_v54  ;;  %538 = vst.msk [vmem:[#allocation2 + $0x18] sm:$0xff] (%p317_p4), %vm4873_vm5, %v4532_v54 }
  0xbb   : > { %541 = vst.msk [vmem:[#allocation2 + $0x228] sm:$0xff] (%p317_p4), %vm4873_vm5, %v4532_v54  ;;  %543 = vst.msk [vmem:[#allocation2 + $0x238] sm:$0xff] (%p317_p4), %vm4873_vm5, %v4532_v54 }
  0xbc   : >> { %v5914_v51 = vmov %v372_v61  ;;  %v375_v29 = vsel (%p317_p4), %vm373_vm1, %v350_v39, %v372_v61 }
  0xbd   : > { %4020 = vmatprep.subr.mxu0 %v375_v29 }
  0xbe   : > { %4021 = vmatpush3.msra.mxu0 %v375_v29 }
  0xbf   : > { %4022 = vmatprep.subr.mxu0 %v374_v30 }
  0xc0   : > { %4023 = vmatpush3.msra.mxu0 %v374_v30 }
  0xc1   : > { %4025 = vmatmul.mubr.msk.f32.vlgmr.msra.gmra.mxu0 %vm376_vm2, %v4652_v9 }
 0x181   : > { %v4026_v31 = vpop.f32.mrf.mxu0 }
 0x182   : > { %v459_v34 = vmul.f32 %v4026_v31, %v4026_v31 }
 0x183   : > { %v449_v32 = vpop.f32.mrf.mxu0 }
 0x184   : > { %v458_v33 = vmul.f32 %v449_v32, %v449_v32 }
 0x186   : > { %462 = vrot.lane.b32.xlu0 %v458_v33, %s4531_s29 }
 0x18a   : > { %464 = vrot.lane.b32.xlu0 %v459_v34, %s4531_s29 }
 0x1f8   : > { %v463_v35 = vpop.permute.xlu0 %462 }
 0x1f9   : > { %v468_v36 = vsub.f32 %v449_v32, %v463_v35 }
 0x1fb   : > { %v470_v37 = vadd.f32 1e-05, %v468_v36 }
 0x1fc   : > { %v465_v38 = vpop.permute.xlu0 %464 }
 0x1fd   : > { %4367 = vrsqrt.f32 %v470_v37  ;;  %v469_v51 = vsub.f32 %v4026_v31, %v465_v38 }
 0x1ff   : > { %v471_v52 = vadd.f32 1e-05, %v469_v51 }
 0x201   : > { %4369 = vrsqrt.f32 %v471_v52 }
 0x20a   : > { %v4368_v3 = vpop.eup %4367 }
 0x20b   : > { %476 = vrot.lane.b32.xlu1 %v4368_v3, %s4533_s7 }
 0x20e   : > { %v4370_v41 = vpop.eup %4369 }
 0x20f   : > { %478 = vrot.lane.b32.xlu1 %v4370_v41, %s4533_s7 }
 0x27d   : > { %v477_v42 = vpop.permute.xlu1 %476 }
 0x27e   : > { %v482_v43 = vmul.f32 %v477_v42, %v4692_v18 }
 0x280   : > { %v484_v44 = vmul.f32 %v482_v43, %v449_v32 }
 0x281   : > { %v479_v45 = vpop.permute.xlu1 %478 }
 0x282   : > { %v483_v55 = vmul.f32 %v479_v45, %v4820_v46  ;;  %488 = vrot.lane.b32.xlu0 %v484_v44, %s4531_s29 }
 0x284   : > { %v485_v56 = vmul.f32 %v4026_v31, %v483_v55 }
 0x286   : > { %498 = vperm.xlu0 %4363, %v482_v43   ;;  %490 = vrot.lane.b32.xlu1 %v485_v56, %s4531_s29 }
 0x28a   : > { %503 = vperm.xlu1 %4364, %v483_v55   ;;  %4366 = vset.pattern.permute.xlu0 %v4534_v58 }
 0x28e   : > { %4365 = vset.pattern.permute.xlu1 %v4534_v58 }
 0x2f4   : > { %v489_v59 = vpop.permute.xlu0 %488 }
 0x2f5   : > { %v494_v57 = vsub.f32 %v4692_v18, %v489_v59 }
 0x2f7   : > { %516 = vperm.xlu1 %4365, %v494_v57  }
 0x2f8   : > { %v491_v60 = vpop.permute.xlu1 %490 }
 0x2f9   : > { %v495_v62 = vsub.f32 %v4820_v46, %v491_v60 }
 0x2fb   : > { %521 = vperm.xlu0 %4366, %v495_v62  }
 0x301   : > { %v499_v15 = vpop.permute.xlu0 %498 }
 0x302   : > { %v4892_v63 = vmul.f32 %v499_v15, %v4822_v47  ;;  %v4895_v39 = vmul.f32 %v499_v15, %v4824_v48  ;;  %v4898_v40 = vmul.f32 %v499_v15, %v4826_v49  ;;  %v4901_v61 = vmul.f32 %v499_v15, %v4828_v50 }
 0x304   : > { %5920 = vst [vmem:[#allocation37_spill] sm:$0xff] %v4892_v63  ;;  %5921 = vst [vmem:[#allocation38_spill] sm:$0xff] %v4895_v39 }
 0x305   : > { %5922 = vst [vmem:[#allocation39_spill] sm:$0xff] %v4898_v40  ;;  %5923 = vst [vmem:[#allocation40_spill] sm:$0xff] %v4901_v61  ;;  %v504_v29 = vpop.permute.xlu1 %503 }
 0x306   : > { %v4904_v30 = vmul.f32 %v504_v29, %v4822_v47  ;;  %v4907_v31 = vmul.f32 %v504_v29, %v4824_v48  ;;  %v4910_v32 = vmul.f32 %v504_v29, %v4826_v49  ;;  %v513_v33 = vmul.f32 %v504_v29, %v4828_v50 }
 0x308   : > { %5924 = vst [vmem:[#allocation41_spill] sm:$0xff] %v4904_v30  ;;  %5925 = vst [vmem:[#allocation42_spill] sm:$0xff] %v4907_v31 }
 0x372   : > { %v517_v34 = vpop.permute.xlu1 %516 }
 0x373   : > { %v524_v35 = vmul.f32 %v517_v34, %v4822_v47  ;;  %v525_v36 = vmul.f32 %v517_v34, %v4824_v48  ;;  %v526_v37 = vmul.f32 %v517_v34, %v4826_v49  ;;  %v527_v38 = vmul.f32 %v517_v34, %v4828_v50 }
 0x376   : > { %v522_v51 = vpop.permute.xlu0 %521 }
 0x377   : > { %v528_v52 = vmul.f32 %v522_v51, %v4822_v47  ;;  %v529_v54 = vmul.f32 %v522_v51, %v4824_v48  ;;  %v530_v3 = vmul.f32 %v522_v51, %v4826_v49  ;;  %v531_v41 = vmul.f32 %v522_v51, %v4828_v50 }
 0x378 LB: >> { %s3925_s9 = sshll.u32 %s4501_s8, 6  ;;  %v5926_v63 = vld [vmem:[#allocation37_spill] sm:$0xff]  ;;  %v5927_v39 = vld [vmem:[#allocation38_spill] sm:$0xff]  ;;  %v5928_v40 = vld [vmem:[#allocation39_spill] sm:$0xff]  ;;  %s3930_s30 = sshll.u32 %s4501_s8, 5  ;;  %s4501_s8 = sphi %s4921_s8, %s549_s8  }
 0x379   : >> { %s552_s10 = scalar_lea.vmem %s4697_s15, %s3925_s9  ;;  %v5929_v61 = vld [vmem:[#allocation40_spill] sm:$0xff]  ;;  %v5930_v30 = vld [vmem:[#allocation41_spill] sm:$0xff]  ;;  %v5931_v31 = vld [vmem:[#allocation42_spill] sm:$0xff]  ;;  %s610_s11 = scalar_lea.vmem [#allocation2], %s3930_s30 }
 0x37a   : >> { %v553_v42 = vld [vmem:[%s552_s10] sm:$0xff]  ;;  %v554_v43 = vld [vmem:[%s552_s10 + $0x8] sm:$0xff]  ;;  %v555_v44 = vld [vmem:[%s552_s10 + $0x10] sm:$0xff]  ;;  %s549_s8 = sadd.s32 1, %s4501_s8  }
 0x37b   : >> { %v561_v45 = vmul.f32 %v553_v42, %v5926_v63  ;;  %v562_v55 = vmul.f32 %v554_v43, %v5927_v39  ;;  %v556_v56 = vld [vmem:[%s552_s10 + $0x18] sm:$0xff]  ;;  %v563_v58 = vmul.f32 %v555_v44, %v5928_v40  ;;  %v557_v59 = vld [vmem:[%s552_s10 + $0x20] sm:$0xff]  ;;  %v558_v57 = vld [vmem:[%s552_s10 + $0x28] sm:$0xff]  ;;  %p546_p5 = scmp.ge.s32.totalorder %s549_s8, 17  }
 0x37c   : >> { %v564_v60 = vmul.f32 %v556_v56, %v5929_v61  ;;  %v565_v62 = vmul.f32 %v557_v59, %v5930_v30  ;;  %v566_v15 = vmul.f32 %v558_v57, %v5931_v31  ;;  %v559_v29 = vld [vmem:[%s552_s10 + $0x30] sm:$0xff]  ;;  %v560_v34 = vld [vmem:[%s552_s10 + $0x38] sm:$0xff]  ;;  %s4951_s12 = smov (%p546_p5), 0  }
 0x37d   : >> { %v569_v51 = vadd.f32 %v561_v45, %v524_v35  ;;  %v570_v27 = vadd.f32 %v562_v55, %v525_v36  ;;  %v571_v28 = vadd.f32 %v563_v58, %v526_v37  ;;  %v567_v42 = vmul.f32 %v559_v29, %v4910_v32 }
 0x37e   : >> { %v572_v43 = vadd.f32 %v564_v60, %v527_v38  ;;  %v573_v39 = vadd.f32 %v565_v62, %v528_v52  ;;  %v574_v63 = vadd.f32 %v566_v15, %v529_v54  ;;  %v568_v44 = vmul.f32 %v560_v34, %v513_v33 }
 0x37f   : >> { %v577_v40 = vmax.f32 %v569_v51, 0.0  ;;  %v578_v23 = vmax.f32 %v570_v27, 0.0  ;;  %v579_v24 = vmax.f32 %v571_v28, 0.0  ;;  %v575_v56 = vadd.f32 %v567_v42, %v530_v3 }
 0x380   : >> { %v580_v61 = vmax.f32 %v572_v43, 0.0  ;;  %v581_v59 = vmax.f32 %v573_v39, 0.0  ;;  %v582_v30 = vmax.f32 %v574_v63, 0.0  ;;  %v576_v57 = vadd.f32 %v568_v44, %v531_v41 }
 0x381   : >> { %v3926_v31 = vpack.c.bf16 %v578_v23, %v577_v40  ;;  %v583_v25 = vmax.f32 %v575_v56, 0.0  ;;  %v4943_v23 = vmov (%p546_p5), 0.0   ;;  %v4947_v27 = vmov (%p546_p5), 0.0  }
 0x382   : >> { %v3927_v45 = vpack.c.bf16 %v580_v61, %v579_v24  ;;  %v3928_v55 = vpack.c.bf16 %v582_v30, %v581_v59  ;;  %v584_v26 = vmax.f32 %v576_v57, 0.0  ;;  %548 = sbr.rel (!%p546_p5) target bundleno = 888 (0x378), region = 131  ;;  %v4945_v24 = vmov (%p546_p5), 0.0  }
 0x383   : >> { %611 = vst [vmem:[%s610_s11] sm:$0xff] %v3926_v31  ;;  %v4949_v28 = vmov (%p546_p5), 0.0  }
 0x384   : >> { %612 = vst.msk [vmem:[%s610_s11 + $0x8] sm:$0xff] %vm4873_vm5, %v3927_v45  ;;  %613 = vst [vmem:[%s610_s11 + $0x10] sm:$0xff] %v3928_v55  ;;  %v3929_v58 = vpack.c.bf16 %v584_v26, %v583_v25 }
 0x386   : >> { %614 = vst.msk [vmem:[%s610_s11 + $0x18] sm:$0xff] %vm4873_vm5, %v3929_v58 }
 0x387 LB: >> { %s3931_s13 = sshll.u32 %s4521_s12, 5  ;;  %s4535_s22 = smov 127   ;;  %v4536_v63 = vmov 0.0   ;;  %v4537_v31 = vmov 0   ;;  %vm4538_vm6 = vmmov 0   ;;  %vm717_vm7 = vcmask 1039360   ;;  %s4521_s12 = sphi %s4951_s12, %s620_s12   ;;  %v4517_v28 = vphi %v4949_v28, %v5950_v28   ;;  %v4513_v27 = vphi %v4947_v27, %v5949_v27   ;;  %v4509_v24 = vphi %v4945_v24, %v5948_v24   ;;  %v4505_v23 = vphi %v4943_v23, %v5947_v23  }
 0x388   : >> { %s627_s14 = scalar_lea.vmem [#allocation2], %s3931_s13  ;;  %4027 = vmatprep.subr.bf16.mxu1 %v4536_v63  ;;  %772 = vmatprep.mubr.bf16.mxu0 %v4537_v31  ;;  %s4539_s16 = smov 126   ;;  %v5932_v5 = vld [vmem:[#allocation7_spill] sm:$0xff]  ;;  %v5933_v4 = vld [vmem:[#allocation6_spill] sm:$0xff]  ;;  %vm736_vm8 = vcmask 392192   ;;  %vm954_vm9 = vcmask 1031168  }
 0x389   : >> { %4033 = vmatprep.mubr.msk.bf16.mxu1 %vm4538_vm6, %v4536_v63  ;;  %s4540_s17 = smov 104   ;;  %s4541_s18 = smov 103   ;;  %v3819_v45 = vcombine.low %v5933_v4, %v5932_v5  ;;  %v5934_v1 = vld [vmem:[#allocation5_spill] sm:$0xff]  ;;  %v5935_v0 = vld [vmem:[#allocation4_spill] sm:$0xff]  ;;  %vm1095_vm10 = vcmask 850944   ;;  %v5938_v10 = vld [vmem:[#allocation11_spill] sm:$0xff] }
 0x38a   : >> { %s4542_s19 = smov 102   ;;  %s4543_s20 = smov 80   ;;  %v5936_v7 = vld [vmem:[#allocation9_spill] sm:$0xff]  ;;  %v5937_v6 = vld [vmem:[#allocation8_spill] sm:$0xff]  ;;  %v5939_v8 = vld [vmem:[#allocation10_spill] sm:$0xff]  ;;  %vm1236_vm11 = vcmask 842752  }
 0x38b   : >> { %s4544_s23 = smov 79   ;;  %s4545_s24 = smov 78   ;;  %v5940_v12 = vld [vmem:[#allocation13_spill] sm:$0xff]  ;;  %v5941_v11 = vld [vmem:[#allocation12_spill] sm:$0xff]  ;;  %vm1377_vm12 = vcmask 834560   ;;  %v5942_v14 = vld [vmem:[#allocation15_spill] sm:$0xff] }
 0x38c   : >> { %v5943_v13 = vld [vmem:[#allocation14_spill] sm:$0xff]  ;;  %vm1518_vm13 = vcmask 654336   ;;  %v5944_v17 = vld [vmem:[#allocation17_spill] sm:$0xff]  ;;  %v5945_v16 = vld [vmem:[#allocation16_spill] sm:$0xff]  ;;  %vm1659_vm14 = vcmask 646144   ;;  %vm1800_vm15 = vcmask 637952  }
 0x38d   : >> { %v4969_v25 = vld [vmem:[%s627_s14 + $0x44] ss:$16 sps:$4 sm:$0xff]   ;;  %v4971_v26 = vld [vmem:[%s627_s14 + $0x40] ss:$16 sps:$4 sm:$0xff]   ;;  %v4974_v53 = vld [vmem:[%s627_s14 + $0x48] ss:$16 sps:$4 sm:$0xff]  }
 0x38e   : >> { %711 = vrot.lane.b32.xlu0 %v4969_v25, %s4535_s22  ;;  %709 = vrot.lane.b32.xlu1 %v4971_v26, %s4535_s22  ;;  %v4978_v39 = vld [vmem:[%s627_s14 + $0x24] ss:$16 sps:$4 sm:$0xff]   ;;  %v4981_v40 = vld [vmem:[%s627_s14 + $0x28] ss:$16 sps:$4 sm:$0xff]   ;;  %s3932_s26 = smul.u32 48, %s4521_s12  ;;  %s620_s12 = sadd.s32 1, %s4521_s12  }
 0x38f   : >> { %v4984_v61 = vld [vmem:[%s627_s14 + $0x20] ss:$16 sps:$4 sm:$0xff]   ;;  %v4987_v30 = vld [vmem:[%s627_s14 + $0x4c] ss:$16 sps:$4 sm:$0xff]   ;;  %v4991_v32 = vld [vmem:[%s627_s14 + $0x4] ss:$16 sps:$4 sm:$0xff]  }
 0x390   : >> { %v4994_v33 = vld [vmem:[%s627_s14 + $0x8] ss:$16 sps:$4 sm:$0xff]   ;;  %v4997_v35 = vld [vmem:[%s627_s14] ss:$16 sps:$4 sm:$0xff]   ;;  %v5000_v36 = vld [vmem:[%s627_s14 + $0x2c] ss:$16 sps:$4 sm:$0xff]  }
 0x391   : >> { %v5005_v37 = vld [vmem:[%s627_s14 + $0xc] ss:$16 sps:$4 sm:$0xff]   ;;  %v5946_v19 = vld [vmem:[#allocation18_spill] sm:$0xff]  ;;  %s5328_s27 = scalar_lea.vmem [#allocation3], %s3932_s26  ;;  %p617_p6 = scmp.ge.s32.totalorder %s620_s12, 16  }
 0x392   : >> { %713 = vrot.lane.b32.xlu0 %v4974_v53, %s4535_s22  ;;  %703 = vrot.lane.b32.xlu1 %v4978_v39, %s4535_s22  ;;  %s4547_s28 = smov (%p617_p6), 2   ;;  %s4550_s7 = smov (%p617_p6), 4  }
 0x393   : > { %s5419_s8 = smov (%p617_p6), 0  }
 0x396   : >> { %705 = vrot.lane.b32.xlu0 %v4981_v40, %s4535_s22  ;;  %701 = vrot.lane.b32.xlu1 %v4984_v61, %s4535_s22 }
 0x39a   : >> { %715 = vrot.lane.b32.xlu0 %v4987_v30, %s4535_s22  ;;  %695 = vrot.lane.b32.xlu1 %v4991_v32, %s4535_s22 }
 0x39e   : >> { %697 = vrot.lane.b32.xlu0 %v4994_v33, %s4535_s22  ;;  %693 = vrot.lane.b32.xlu1 %v4997_v35, %s4535_s22 }
 0x3a2   : >> { %707 = vrot.lane.b32.xlu0 %v5000_v36, %s4535_s22  ;;  %699 = vrot.lane.b32.xlu1 %v5005_v37, %s4535_s22 }
 0x3a6   : >> { %948 = vrot.lane.b32.xlu0 %v4969_v25, %s4539_s16  ;;  %950 = vrot.lane.b32.xlu1 %v4974_v53, %s4539_s16 }
 0x3aa   : >> { %946 = vrot.lane.b32.xlu0 %v4971_v26, %s4539_s16  ;;  %940 = vrot.lane.b32.xlu1 %v4978_v39, %s4539_s16 }
 0x3ae   : >> { %942 = vrot.lane.b32.xlu0 %v4981_v40, %s4539_s16  ;;  %938 = vrot.lane.b32.xlu1 %v4984_v61, %s4539_s16 }
 0x3b2   : >> { %952 = vrot.lane.b32.xlu0 %v4987_v30, %s4539_s16  ;;  %932 = vrot.lane.b32.xlu1 %v4991_v32, %s4539_s16 }
 0x3b6   : >> { %934 = vrot.lane.b32.xlu0 %v4994_v33, %s4539_s16  ;;  %930 = vrot.lane.b32.xlu1 %v4997_v35, %s4539_s16 }
 0x3ba   : >> { %944 = vrot.lane.b32.xlu0 %v5000_v36, %s4539_s16  ;;  %1089 = vrot.lane.b32.xlu1 %v4969_v25, %s4540_s17 }
 0x3be   : >> { %1091 = vrot.lane.b32.xlu0 %v4974_v53, %s4540_s17  ;;  %936 = vrot.lane.b32.xlu1 %v5005_v37, %s4539_s16 }
 0x3c2   : >> { %1087 = vrot.lane.b32.xlu0 %v4971_v26, %s4540_s17  ;;  %1081 = vrot.lane.b32.xlu1 %v4978_v39, %s4540_s17 }
 0x3c6   : >> { %1083 = vrot.lane.b32.xlu0 %v4981_v40, %s4540_s17  ;;  %1079 = vrot.lane.b32.xlu1 %v4984_v61, %s4540_s17 }
 0x3ca   : >> { %1093 = vrot.lane.b32.xlu0 %v4987_v30, %s4540_s17  ;;  %1073 = vrot.lane.b32.xlu1 %v4991_v32, %s4540_s17 }
 0x3ce   : >> { %1075 = vrot.lane.b32.xlu0 %v4994_v33, %s4540_s17  ;;  %1071 = vrot.lane.b32.xlu1 %v4997_v35, %s4540_s17 }
 0x3d2   : >> { %1085 = vrot.lane.b32.xlu0 %v5000_v36, %s4540_s17  ;;  %1230 = vrot.lane.b32.xlu1 %v4969_v25, %s4541_s18 }
 0x3d6   : >> { %1232 = vrot.lane.b32.xlu0 %v4974_v53, %s4541_s18  ;;  %1077 = vrot.lane.b32.xlu1 %v5005_v37, %s4540_s17 }
 0x3da   : >> { %1228 = vrot.lane.b32.xlu0 %v4971_v26, %s4541_s18  ;;  %1222 = vrot.lane.b32.xlu1 %v4978_v39, %s4541_s18 }
 0x3de   : >> { %1224 = vrot.lane.b32.xlu0 %v4981_v40, %s4541_s18  ;;  %1220 = vrot.lane.b32.xlu1 %v4984_v61, %s4541_s18 }
 0x3e2   : >> { %1234 = vrot.lane.b32.xlu0 %v4987_v30, %s4541_s18  ;;  %1214 = vrot.lane.b32.xlu1 %v4991_v32, %s4541_s18 }
 0x3e6   : >> { %1216 = vrot.lane.b32.xlu0 %v4994_v33, %s4541_s18  ;;  %1212 = vrot.lane.b32.xlu1 %v4997_v35, %s4541_s18 }
 0x3ea   : >> { %1226 = vrot.lane.b32.xlu0 %v5000_v36, %s4541_s18  ;;  %1371 = vrot.lane.b32.xlu1 %v4969_v25, %s4542_s19 }
 0x3ee   : >> { %1373 = vrot.lane.b32.xlu0 %v4974_v53, %s4542_s19  ;;  %1218 = vrot.lane.b32.xlu1 %v5005_v37, %s4541_s18 }
 0x3f2   : >> { %1369 = vrot.lane.b32.xlu0 %v4971_v26, %s4542_s19  ;;  %1363 = vrot.lane.b32.xlu1 %v4978_v39, %s4542_s19 }
 0x3f6   : >> { %1365 = vrot.lane.b32.xlu0 %v4981_v40, %s4542_s19  ;;  %1361 = vrot.lane.b32.xlu1 %v4984_v61, %s4542_s19 }
 0x3fa   : >> { %1375 = vrot.lane.b32.xlu0 %v4987_v30, %s4542_s19  ;;  %1355 = vrot.lane.b32.xlu1 %v4991_v32, %s4542_s19 }
 0x3fe   : >> { %1357 = vrot.lane.b32.xlu0 %v4994_v33, %s4542_s19  ;;  %1353 = vrot.lane.b32.xlu1 %v4997_v35, %s4542_s19 }
 0x400   : >> { %v712_v38 = vpop.permute.xlu0 %711  ;;  %v710_v52 = vpop.permute.xlu1 %709 }
 0x401   : >> { %v724_v60 = vsel %vm717_vm7, %v710_v52, %v712_v38 }
 0x402   : >> { %1367 = vrot.lane.b32.xlu0 %v5000_v36, %s4542_s19  ;;  %1512 = vrot.lane.b32.xlu1 %v4969_v25, %s4543_s20 }
 0x404   : >> { %v714_v54 = vpop.permute.xlu0 %713  ;;  %v704_v3 = vpop.permute.xlu1 %703 }
 0x405   : >> { %v725_v41 = vsel %vm717_vm7, %v712_v38, %v714_v54 }
 0x406   : >> { %750 = vmatprep.subr.bf16.mxu0 %v725_v41  ;;  %1514 = vrot.lane.b32.xlu0 %v4974_v53, %s4543_s20 }
 0x407   : >> { %1359 = vrot.lane.b32.xlu1 %v5005_v37, %s4542_s19  ;;  %751 = vmatpush1.bf16.msra.mxu0 %v724_v60 }
 0x408   : >> { %v706_v62 = vpop.permute.xlu0 %705  ;;  %v702_v15 = vpop.permute.xlu1 %701 }
 0x409   : >> { %v722_v29 = vsel %vm717_vm7, %v704_v3, %v706_v62  ;;  %v721_v34 = vsel %vm717_vm7, %v702_v15, %v704_v3 }
 0x40a   : >> { %752 = vmatprep.subr.bf16.mxu0 %v722_v29  ;;  %1510 = vrot.lane.b32.xlu0 %v4971_v26, %s4543_s20 }
 0x40b   : >> { %1504 = vrot.lane.b32.xlu1 %v4978_v39, %s4543_s20  ;;  %753 = vmatpush1.bf16.msra.mxu0 %v721_v34 }
 0x40c   : >> { %v716_v51 = vpop.permute.xlu0 %715  ;;  %v696_v42 = vpop.permute.xlu1 %695 }
 0x40d   : >> { %v726_v43 = vsel %vm717_vm7, %v714_v54, %v716_v51 }
 0x40e   : >> { %4028 = vmatpush3.bf16.msra.mxu1 %v726_v43  ;;  %1506 = vrot.lane.b32.xlu0 %v4981_v40, %s4543_s20 }
 0x40f   : >> { %1502 = vrot.lane.b32.xlu1 %v4984_v61, %s4543_s20  ;;  %4029 = vmatprep.subr.bf16.mxu1 %v4536_v63 }
 0x410   : >> { %v698_v44 = vpop.permute.xlu0 %697  ;;  %v694_v56 = vpop.permute.xlu1 %693 }
 0x411   : >> { %v719_v59 = vsel %vm717_vm7, %v696_v42, %v698_v44  ;;  %v718_v57 = vsel %vm717_vm7, %v694_v56, %v696_v42 }
 0x412   : >> { %1516 = vrot.lane.b32.xlu0 %v4987_v30, %s4543_s20  ;;  %754 = vmatprep.subr.bf16.mxu0 %v719_v59 }
 0x413   : >> { %1496 = vrot.lane.b32.xlu1 %v4991_v32, %s4543_s20  ;;  %755 = vmatpush1.bf16.msra.mxu0 %v718_v57 }
 0x414   : >> { %v708_v55 = vpop.permute.xlu0 %707  ;;  %851 = vmatprep.subr.bf16.mxu0 %v4969_v25  ;;  %v700_v58 = vpop.permute.xlu1 %699 }
 0x415   : >> { %v723_v38 = vsel %vm717_vm7, %v706_v62, %v708_v55  ;;  %v720_v3 = vsel %vm717_vm7, %v698_v44, %v700_v58  ;;  %v3834_v62 = vcombine.low %v5935_v0, %v5934_v1 }
 0x416   : >> { %1498 = vrot.lane.b32.xlu0 %v4994_v33, %s4543_s20  ;;  %4030 = vmatpush3.bf16.msra.mxu1 %v723_v38 }
 0x417   : >> { %1494 = vrot.lane.b32.xlu1 %v4997_v35, %s4543_s20  ;;  %3832 = vmatmul.mubr.msk.bf16.vlgmr.msra.gmra.mxu0 %vm736_vm8, %v3819_v45 }
 0x418   : >> { %852 = vmatpush1.bf16.msra.mxu0 %v4971_v26  ;;  %v949_v52 = vpop.permute.xlu0 %948  ;;  %4031 = vmatprep.subr.bf16.mxu1 %v4536_v63  ;;  %v951_v54 = vpop.permute.xlu1 %950 }
 0x419   : >> { %853 = vmatprep.subr.bf16.mxu0 %v4978_v39  ;;  %873 = vmatprep.mubr.bf16.mxu0 %v4537_v31  ;;  %v962_v29 = vsel %vm954_vm9, %v949_v52, %v951_v54 }
 0x41a   : >> { %1508 = vrot.lane.b32.xlu0 %v5000_v36, %s4543_s20  ;;  %4032 = vmatpush3.bf16.msra.mxu1 %v720_v3 }
 0x41b   : >> { %1653 = vrot.lane.b32.xlu1 %v4969_v25, %s4544_s23  ;;  %4037 = vmatprep.subr.bf16.mxu1 %v4536_v63 }
 0x41c   : >> { %854 = vmatpush1.bf16.msra.mxu0 %v4984_v61  ;;  %v947_v41 = vpop.permute.xlu0 %946  ;;  %v941_v60 = vpop.permute.xlu1 %940 }
 0x41d   : >> { %4034 = vmatmul.mubr.msk.bf16.vlgmr.msra.gmra.mxu1 %vm736_vm8, %v3819_v45  ;;  %855 = vmatprep.subr.bf16.mxu0 %v4991_v32  ;;  %v961_v51 = vsel %vm954_vm9, %v947_v41, %v949_v52  ;;  %v3837_v52 = vcombine.low %v5937_v6, %v5936_v7 }
 0x41e   : >> { %1655 = vrot.lane.b32.xlu0 %v4974_v53, %s4544_s23  ;;  %4038 = vmatpush3.bf16.msra.mxu1 %v4974_v53 }
 0x41f   : >> { %1500 = vrot.lane.b32.xlu1 %v5005_v37, %s4543_s20  ;;  %4039 = vmatprep.subr.bf16.mxu1 %v4536_v63 }
 0x420   : >> { %856 = vmatpush1.bf16.msra.mxu0 %v4997_v35  ;;  %v943_v15 = vpop.permute.xlu0 %942  ;;  %4043 = vmatprep.mubr.msk.bf16.mxu1 %vm4538_vm6, %v4536_v63  ;;  %v939_v34 = vpop.permute.xlu1 %938 }
 0x421   : >> { %986 = vmatprep.subr.bf16.mxu0 %v962_v29  ;;  %v959_v43 = vsel %vm954_vm9, %v941_v60, %v943_v15  ;;  %v958_v56 = vsel %vm954_vm9, %v939_v34, %v941_v60 }
 0x422   : >> { %1651 = vrot.lane.b32.xlu0 %v4971_v26, %s4544_s23  ;;  %4040 = vmatpush3.bf16.msra.mxu1 %v4981_v40 }
 0x423   : >> { %1645 = vrot.lane.b32.xlu1 %v4978_v39, %s4544_s23  ;;  %3835 = vmatmul.mubr.msk.bf16.vlgmr.msra.gmra.mxu0 %vm736_vm8, %v3834_v62 }
 0x424   : >> { %987 = vmatpush1.bf16.msra.mxu0 %v961_v51  ;;  %v953_v42 = vpop.permute.xlu0 %952  ;;  %4041 = vmatprep.subr.bf16.mxu1 %v4536_v63  ;;  %v933_v44 = vpop.permute.xlu1 %932 }
 0x425   : >> { %988 = vmatprep.subr.bf16.mxu0 %v959_v43  ;;  %1008 = vmatprep.mubr.bf16.mxu0 %v4537_v31  ;;  %v963_v55 = vsel %vm954_vm9, %v951_v54, %v953_v42 }
 0x426   : >> { %1647 = vrot.lane.b32.xlu0 %v4981_v40, %s4544_s23  ;;  %4042 = vmatpush3.bf16.msra.mxu1 %v4994_v33 }
 0x427   : >> { %1643 = vrot.lane.b32.xlu1 %v4984_v61, %s4544_s23  ;;  %4047 = vmatprep.subr.bf16.mxu1 %v4536_v63 }
 0x428   : >> { %989 = vmatpush1.bf16.msra.mxu0 %v958_v56  ;;  %v935_v59 = vpop.permute.xlu0 %934  ;;  %v931_v57 = vpop.permute.xlu1 %930 }
 0x429   : >> { %4044 = vmatmul.mubr.msk.bf16.vlgmr.msra.gmra.mxu1 %vm736_vm8, %v3834_v62  ;;  %v956_v45 = vsel %vm954_vm9, %v933_v44, %v935_v59  ;;  %v955_v58 = vsel %vm954_vm9, %v931_v57, %v933_v44 }
 0x42a   : >> { %1657 = vrot.lane.b32.xlu0 %v4987_v30, %s4544_s23  ;;  %990 = vmatprep.subr.bf16.mxu0 %v956_v45 }
 0x42b   : >> { %1637 = vrot.lane.b32.xlu1 %v4991_v32, %s4544_s23  ;;  %4048 = vmatpush3.bf16.msra.mxu1 %v963_v55 }
 0x42c   : >> { %991 = vmatpush1.bf16.msra.mxu0 %v955_v58  ;;  %v945_v38 = vpop.permute.xlu0 %944  ;;  %4049 = vmatprep.subr.bf16.mxu1 %v4536_v63  ;;  %v1090_v54 = vpop.permute.xlu1 %1089 }
 0x42d   : >> { %v960_v3 = vsel %vm954_vm9, %v943_v15, %v945_v38  ;;  %4053 = vmatprep.mubr.msk.bf16.mxu1 %vm4538_vm6, %v4536_v63 }
 0x42e   : >> { %1639 = vrot.lane.b32.xlu0 %v4994_v33, %s4544_s23 }
 0x42f   : >> { %1635 = vrot.lane.b32.xlu1 %v4997_v35, %s4544_s23  ;;  %4050 = vmatpush3.bf16.msra.mxu1 %v960_v3 }
 0x430   : >> { %v1092_v41 = vpop.permute.xlu0 %1091  ;;  %4051 = vmatprep.subr.bf16.mxu1 %v4536_v63  ;;  %3838 = vmatmul.mubr.msk.bf16.vlgmr.msra.gmra.mxu0 %vm736_vm8, %v3837_v52  ;;  %v937_v60 = vpop.permute.xlu1 %936 }
 0x431   : >> { %v1103_v62 = vsel %vm1095_vm10, %v1090_v54, %v1092_v41  ;;  %1149 = vmatprep.mubr.bf16.mxu0 %v4537_v31  ;;  %v957_v15 = vsel %vm954_vm9, %v935_v59, %v937_v60 }
 0x432   : >> { %1649 = vrot.lane.b32.xlu0 %v5000_v36, %s4544_s23  ;;  %1127 = vmatprep.subr.bf16.mxu0 %v1103_v62 }
 0x433   : >> { %1794 = vrot.lane.b32.xlu1 %v4969_v25, %s4545_s24  ;;  %4052 = vmatpush3.bf16.msra.mxu1 %v957_v15 }
 0x434   : >> { %v1088_v29 = vpop.permute.xlu0 %1087  ;;  %4057 = vmatprep.subr.bf16.mxu1 %v4536_v63  ;;  %v1082_v51 = vpop.permute.xlu1 %1081 }
 0x435   : >> { %v1102_v34 = vsel %vm1095_vm10, %v1088_v29, %v1090_v54 }
 0x436   : >> { %1796 = vrot.lane.b32.xlu0 %v4974_v53, %s4545_s24  ;;  %1128 = vmatpush1.bf16.msra.mxu0 %v1102_v34 }
 0x437   : >> { %1641 = vrot.lane.b32.xlu1 %v5005_v37, %s4544_s23  ;;  %4054 = vmatmul.mubr.msk.bf16.vlgmr.msra.gmra.mxu1 %vm736_vm8, %v3837_v52 }
 0x438   : >> { %v1084_v42 = vpop.permute.xlu0 %1083  ;;  %4063 = vmatprep.mubr.msk.bf16.mxu1 %vm4538_vm6, %v4536_v63  ;;  %v1080_v25 = vpop.permute.xlu1 %1079 }
 0x439   : >> { %v1100_v43 = vsel %vm1095_vm10, %v1082_v51, %v1084_v42  ;;  %v1099_v44 = vsel %vm1095_vm10, %v1080_v25, %v1082_v51 }
 0x43a   : >> { %1792 = vrot.lane.b32.xlu0 %v4971_v26, %s4545_s24  ;;  %1129 = vmatprep.subr.bf16.mxu0 %v1100_v43  ;;  %v3843_v43 = vcombine.low %v5941_v11, %v5940_v12 }
 0x43b   : >> { %1786 = vrot.lane.b32.xlu1 %v4978_v39, %s4545_s24  ;;  %1130 = vmatpush1.bf16.msra.mxu0 %v1099_v44 }
 0x43c   : >> { %v1094_v53 = vpop.permute.xlu0 %1093  ;;  %v1074_v59 = vpop.permute.xlu1 %1073 }
 0x43d   : >> { %v1104_v56 = vsel %vm1095_vm10, %v1092_v41, %v1094_v53 }
 0x43e   : >> { %1788 = vrot.lane.b32.xlu0 %v4981_v40, %s4545_s24  ;;  %4058 = vmatpush3.bf16.msra.mxu1 %v1104_v56 }
 0x43f   : >> { %1784 = vrot.lane.b32.xlu1 %v4984_v61, %s4545_s24  ;;  %4059 = vmatprep.subr.bf16.mxu1 %v4536_v63  ;;  %v3840_v61 = vcombine.low %v5939_v8, %v5938_v10 }
 0x440   : >> { %v1076_v57 = vpop.permute.xlu0 %1075  ;;  %v1072_v26 = vpop.permute.xlu1 %1071 }
 0x441   : >> { %v1097_v45 = vsel %vm1095_vm10, %v1074_v59, %v1076_v57  ;;  %v1096_v39 = vsel %vm1095_vm10, %v1072_v26, %v1074_v59 }
 0x442   : >> { %1798 = vrot.lane.b32.xlu0 %v4987_v30, %s4545_s24  ;;  %1131 = vmatprep.subr.bf16.mxu0 %v1097_v45 }
 0x443   : >> { %1778 = vrot.lane.b32.xlu1 %v4991_v32, %s4545_s24  ;;  %1132 = vmatpush1.bf16.msra.mxu0 %v1096_v39  ;;  %v4546_v32 = vmov 2  }
 0x444   : >> { %v1086_v40 = vpop.permute.xlu0 %1085  ;;  %v1231_v58 = vpop.permute.xlu1 %1230  ;;  %4372 = vset.pattern.permute.xlu1 %v4546_v32  ;;  %4371 = vset.pattern.permute.xlu0 %v4546_v32 }
 0x445   : >> { %v1101_v55 = vsel %vm1095_vm10, %v1084_v42, %v1086_v40 }
 0x446   : >> { %1780 = vrot.lane.b32.xlu0 %v4994_v33, %s4545_s24  ;;  %4060 = vmatpush3.bf16.msra.mxu1 %v1101_v55 }
 0x447   : >> { %1776 = vrot.lane.b32.xlu1 %v4997_v35, %s4545_s24  ;;  %4061 = vmatprep.subr.bf16.mxu1 %v4536_v63 }
 0x448   : >> { %v1233_v30 = vpop.permute.xlu0 %1232  ;;  %3841 = vmatmul.mubr.msk.bf16.vlgmr.msra.gmra.mxu0 %vm736_vm8, %v3840_v61  ;;  %v1078_v38 = vpop.permute.xlu1 %1077 }
 0x449   : >> { %v1244_v52 = vsel %vm1236_vm11, %v1231_v58, %v1233_v30  ;;  %1290 = vmatprep.mubr.bf16.mxu0 %v4537_v31  ;;  %v1098_v33 = vsel %vm1095_vm10, %v1076_v57, %v1078_v38 }
 0x44a   : >> { %1790 = vrot.lane.b32.xlu0 %v5000_v36, %s4545_s24  ;;  %1268 = vmatprep.subr.bf16.mxu0 %v1244_v52 }
 0x44b   : >> { %1782 = vrot.lane.b32.xlu1 %v5005_v37, %s4545_s24  ;;  %4062 = vmatpush3.bf16.msra.mxu1 %v1098_v33 }
 0x44c   : >> { %v1229_v35 = vpop.permute.xlu0 %1228  ;;  %4067 = vmatprep.subr.bf16.mxu1 %v4536_v63  ;;  %v1223_v54 = vpop.permute.xlu1 %1222 }
 0x44d   : >> { %v1243_v3 = vsel %vm1236_vm11, %v1229_v35, %v1231_v58 }
 0x44e   : >> { %1269 = vmatpush1.bf16.msra.mxu0 %v1243_v3  ;;  %4064 = vmatmul.mubr.msk.bf16.vlgmr.msra.gmra.mxu1 %vm736_vm8, %v3840_v61 }
 0x44f   : >> { %4073 = vmatprep.mubr.msk.bf16.mxu1 %vm4538_vm6, %v4536_v63  ;;  %1919 = vperm.xlu1 %4372, %v4820_v46  }
 0x450   : >> { %v1225_v36 = vpop.permute.xlu0 %1224  ;;  %1914 = vperm.xlu0 %4371, %v4692_v18   ;;  %v1221_v41 = vpop.permute.xlu1 %1220 }
 0x451   : >> { %v1241_v37 = vsel %vm1236_vm11, %v1223_v54, %v1225_v36  ;;  %v1240_v60 = vsel %vm1236_vm11, %v1221_v41, %v1223_v54  ;;  %v3846_v41 = vcombine.low %v5943_v13, %v5942_v14 }
 0x452   : >> { %1270 = vmatprep.subr.bf16.mxu0 %v1241_v37 }
 0x453   : >> { %1271 = vmatpush1.bf16.msra.mxu0 %v1240_v60  ;;  %1937 = vrot.lane.b32.xlu1 %v4822_v47, %s4541_s18 }
 0x454   : >> { %v1235_v62 = vpop.permute.xlu0 %1234  ;;  %1939 = vrot.lane.b32.xlu0 %v4824_v48, %s4541_s18  ;;  %v1215_v29 = vpop.permute.xlu1 %1214 }
 0x455   : >> { %v1245_v15 = vsel %vm1236_vm11, %v1233_v30, %v1235_v62 }
 0x456   : >> { %4068 = vmatpush3.bf16.msra.mxu1 %v1245_v15 }
 0x457   : >> { %4069 = vmatprep.subr.bf16.mxu1 %v4536_v63  ;;  %1941 = vrot.lane.b32.xlu1 %v4826_v49, %s4541_s18 }
 0x458   : >> { %v1217_v34 = vpop.permute.xlu0 %1216  ;;  %1943 = vrot.lane.b32.xlu0 %v4828_v50, %s4541_s18  ;;  %v1213_v51 = vpop.permute.xlu1 %1212 }
 0x459   : >> { %v1238_v42 = vsel %vm1236_vm11, %v1215_v29, %v1217_v34  ;;  %v1237_v25 = vsel %vm1236_vm11, %v1213_v51, %v1215_v29 }
 0x45a   : >> { %1272 = vmatprep.subr.bf16.mxu0 %v1238_v42 }
 0x45b   : >> { %1273 = vmatpush1.bf16.msra.mxu0 %v1237_v25 }
 0x45c   : >> { %v1227_v44 = vpop.permute.xlu0 %1226  ;;  %v1372_v56 = vpop.permute.xlu1 %1371 }
 0x45d   : >> { %v1242_v53 = vsel %vm1236_vm11, %v1225_v36, %v1227_v44 }
 0x45e   : >> { %4070 = vmatpush3.bf16.msra.mxu1 %v1242_v53  ;;  %3844 = vmatmul.mubr.msk.bf16.vlgmr.msra.gmra.mxu0 %vm736_vm8, %v3843_v43 }
 0x45f   : >> { %4071 = vmatprep.subr.bf16.mxu1 %v4536_v63  ;;  %1431 = vmatprep.mubr.bf16.mxu0 %v4537_v31 }
 0x460   : >> { %v1374_v59 = vpop.permute.xlu0 %1373  ;;  %v1219_v57 = vpop.permute.xlu1 %1218 }
 0x461   : >> { %v1385_v26 = vsel %vm1377_vm12, %v1372_v56, %v1374_v59  ;;  %v1239_v45 = vsel %vm1236_vm11, %v1217_v34, %v1219_v57 }
 0x462   : >> { %1409 = vmatprep.subr.bf16.mxu0 %v1385_v26  ;;  %4072 = vmatpush3.bf16.msra.mxu1 %v1239_v45 }
 0x463   : >> { %4077 = vmatprep.subr.bf16.mxu1 %v4536_v63 }
 0x464   : >> { %v1370_v39 = vpop.permute.xlu0 %1369  ;;  %v1364_v61 = vpop.permute.xlu1 %1363 }
 0x465   : >> { %v1384_v40 = vsel %vm1377_vm12, %v1370_v39, %v1372_v56  ;;  %4074 = vmatmul.mubr.msk.bf16.vlgmr.msra.gmra.mxu1 %vm736_vm8, %v3843_v43 }
 0x466   : >> { %1410 = vmatpush1.bf16.msra.mxu0 %v1384_v40  ;;  %4083 = vmatprep.mubr.msk.bf16.mxu1 %vm4538_vm6, %v4536_v63 }
 0x468   : >> { %v1366_v55 = vpop.permute.xlu0 %1365  ;;  %v1362_v58 = vpop.permute.xlu1 %1361 }
 0x469   : >> { %v1382_v30 = vsel %vm1377_vm12, %v1364_v61, %v1366_v55  ;;  %v1381_v32 = vsel %vm1377_vm12, %v1362_v58, %v1364_v61  ;;  %v3849_v58 = vcombine.low %v5945_v16, %v5944_v17 }
 0x46a   : >> { %1411 = vmatprep.subr.bf16.mxu0 %v1382_v30 }
 0x46b   : >> { %1412 = vmatpush1.bf16.msra.mxu0 %v1381_v32 }
 0x46c   : >> { %v1376_v38 = vpop.permute.xlu0 %1375  ;;  %v1356_v33 = vpop.permute.xlu1 %1355 }
 0x46d   : >> { %v1386_v52 = vsel %vm1377_vm12, %v1374_v59, %v1376_v38 }
 0x46e   : >> { %4078 = vmatpush3.bf16.msra.mxu1 %v1386_v52 }
 0x46f   : >> { %4079 = vmatprep.subr.bf16.mxu1 %v4536_v63 }
 0x470   : >> { %v1358_v35 = vpop.permute.xlu0 %1357  ;;  %v1354_v3 = vpop.permute.xlu1 %1353 }
 0x471   : >> { %v1379_v54 = vsel %vm1377_vm12, %v1356_v33, %v1358_v35  ;;  %v1378_v36 = vsel %vm1377_vm12, %v1354_v3, %v1356_v33 }
 0x472   : >> { %1413 = vmatprep.subr.bf16.mxu0 %v1379_v54 }
 0x473   : >> { %1414 = vmatpush1.bf16.msra.mxu0 %v1378_v36 }
 0x474   : >> { %v1368_v37 = vpop.permute.xlu0 %1367  ;;  %v1513_v62 = vpop.permute.xlu1 %1512 }
 0x475   : >> { %v1383_v60 = vsel %vm1377_vm12, %v1366_v55, %v1368_v37 }
 0x476   : >> { %3847 = vmatmul.mubr.msk.bf16.vlgmr.msra.gmra.mxu0 %vm736_vm8, %v3846_v41  ;;  %4080 = vmatpush3.bf16.msra.mxu1 %v1383_v60 }
 0x477   : >> { %4081 = vmatprep.subr.bf16.mxu1 %v4536_v63  ;;  %1572 = vmatprep.mubr.bf16.mxu0 %v4537_v31 }
 0x478   : >> { %v1515_v15 = vpop.permute.xlu0 %1514 }
 0x479   : >> { %v1360_v29 = vpop.permute.xlu1 %1359  ;;  %v1526_v34 = vsel %vm1518_vm13, %v1513_v62, %v1515_v15 }
 0x47a   : >> { %v1380_v51 = vsel %vm1377_vm12, %v1358_v35, %v1360_v29  ;;  %1550 = vmatprep.subr.bf16.mxu0 %v1526_v34 }
 0x47b   : >> { %4082 = vmatpush3.bf16.msra.mxu1 %v1380_v51 }
 0x47c   : >> { %v1511_v42 = vpop.permute.xlu0 %1510  ;;  %4087 = vmatprep.subr.bf16.mxu1 %v4536_v63 }
 0x47d   : >> { %v1525_v25 = vsel %vm1518_vm13, %v1511_v42, %v1513_v62  ;;  %v1505_v43 = vpop.permute.xlu1 %1504 }
 0x47e   : >> { %4084 = vmatmul.mubr.msk.bf16.vlgmr.msra.gmra.mxu1 %vm736_vm8, %v3846_v41  ;;  %1551 = vmatpush1.bf16.msra.mxu0 %v1525_v25 }
 0x47f   : >> { %4093 = vmatprep.mubr.msk.bf16.mxu1 %vm4538_vm6, %v4536_v63 }
 0x480   : >> { %v1507_v44 = vpop.permute.xlu0 %1506 }
 0x481   : >> { %v1503_v53 = vpop.permute.xlu1 %1502  ;;  %v1523_v56 = vsel %vm1518_vm13, %v1505_v43, %v1507_v44 }
 0x482   : >> { %v1522_v59 = vsel %vm1518_vm13, %v1503_v53, %v1505_v43  ;;  %1552 = vmatprep.subr.bf16.mxu0 %v1523_v56  ;;  %v3852_v53 = vcombine.low %v5946_v19, %v4707_v20 }
 0x483   : >> { %1553 = vmatpush1.bf16.msra.mxu0 %v1522_v59 }
 0x484   : >> { %v1517_v57 = vpop.permute.xlu0 %1516 }
 0x485   : >> { %v1527_v26 = vsel %vm1518_vm13, %v1515_v15, %v1517_v57  ;;  %v1497_v45 = vpop.permute.xlu1 %1496 }
 0x486   : >> { %4088 = vmatpush3.bf16.msra.mxu1 %v1527_v26 }
 0x487   : >> { %4089 = vmatprep.subr.bf16.mxu1 %v4536_v63 }
 0x488   : >> { %v1499_v39 = vpop.permute.xlu0 %1498 }
 0x489   : >> { %v1495_v40 = vpop.permute.xlu1 %1494  ;;  %v1520_v61 = vsel %vm1518_vm13, %v1497_v45, %v1499_v39 }
 0x48a   : >> { %v1519_v55 = vsel %vm1518_vm13, %v1495_v40, %v1497_v45  ;;  %1554 = vmatprep.subr.bf16.mxu0 %v1520_v61 }
 0x48b   : >> { %1555 = vmatpush1.bf16.msra.mxu0 %v1519_v55 }
 0x48c   : >> { %v1509_v30 = vpop.permute.xlu0 %1508 }
 0x48d   : >> { %v1524_v32 = vsel %vm1518_vm13, %v1507_v44, %v1509_v30  ;;  %v1654_v38 = vpop.permute.xlu1 %1653 }
 0x48e   : >> { %3850 = vmatmul.mubr.msk.bf16.vlgmr.msra.gmra.mxu0 %vm736_vm8, %v3849_v58  ;;  %4090 = vmatpush3.bf16.msra.mxu1 %v1524_v32 }
 0x48f   : >> { %4091 = vmatprep.subr.bf16.mxu1 %v4536_v63  ;;  %1713 = vmatprep.mubr.bf16.mxu0 %v4537_v31 }
 0x490   : >> { %v1656_v52 = vpop.permute.xlu0 %1655 }
 0x491   : >> { %v1501_v33 = vpop.permute.xlu1 %1500  ;;  %v1667_v35 = vsel %vm1659_vm14, %v1654_v38, %v1656_v52 }
 0x492   : >> { %v1521_v3 = vsel %vm1518_vm13, %v1499_v39, %v1501_v33  ;;  %1691 = vmatprep.subr.bf16.mxu0 %v1667_v35 }
 0x493   : >> { %4092 = vmatpush3.bf16.msra.mxu1 %v1521_v3 }
 0x494   : >> { %v1652_v54 = vpop.permute.xlu0 %1651  ;;  %4097 = vmatprep.subr.bf16.mxu1 %v4536_v63 }
 0x495   : >> { %v1666_v36 = vsel %vm1659_vm14, %v1652_v54, %v1654_v38  ;;  %v1646_v41 = vpop.permute.xlu1 %1645 }
 0x496   : >> { %4094 = vmatmul.mubr.msk.bf16.vlgmr.msra.gmra.mxu1 %vm736_vm8, %v3849_v58  ;;  %1692 = vmatpush1.bf16.msra.mxu0 %v1666_v36 }
 0x497   : >> { %4103 = vmatprep.mubr.msk.bf16.mxu1 %vm4538_vm6, %v4536_v63 }
 0x498   : >> { %v1648_v37 = vpop.permute.xlu0 %1647 }
 0x499   : >> { %v1644_v60 = vpop.permute.xlu1 %1643  ;;  %v1664_v62 = vsel %vm1659_vm14, %v1646_v41, %v1648_v37 }
 0x49a   : >> { %v1663_v15 = vsel %vm1659_vm14, %v1644_v60, %v1646_v41  ;;  %1693 = vmatprep.subr.bf16.mxu0 %v1664_v62 }
 0x49b   : >> { %1694 = vmatpush1.bf16.msra.mxu0 %v1663_v15 }
 0x49c   : >> { %v1658_v29 = vpop.permute.xlu0 %1657 }
 0x49d   : >> { %v1668_v34 = vsel %vm1659_vm14, %v1656_v52, %v1658_v29  ;;  %v1638_v51 = vpop.permute.xlu1 %1637 }
 0x49e   : >> { %4098 = vmatpush3.bf16.msra.mxu1 %v1668_v34 }
 0x49f   : >> { %4099 = vmatprep.subr.bf16.mxu1 %v4536_v63 }
 0x4a0   : >> { %v1640_v42 = vpop.permute.xlu0 %1639 }
 0x4a1   : >> { %v1636_v25 = vpop.permute.xlu1 %1635  ;;  %v1661_v43 = vsel %vm1659_vm14, %v1638_v51, %v1640_v42 }
 0x4a2   : >> { %v1660_v44 = vsel %vm1659_vm14, %v1636_v25, %v1638_v51  ;;  %1695 = vmatprep.subr.bf16.mxu0 %v1661_v43 }
 0x4a3   : >> { %1696 = vmatpush1.bf16.msra.mxu0 %v1660_v44 }
 0x4a4   : >> { %v1650_v56 = vpop.permute.xlu0 %1649 }
 0x4a5   : >> { %v1665_v59 = vsel %vm1659_vm14, %v1648_v37, %v1650_v56  ;;  %v1795_v57 = vpop.permute.xlu1 %1794  ;;  %v3855_v37 = vcombine.low %v4712_v21, %v4722_v22 }
 0x4a6   : >> { %3853 = vmatmul.mubr.msk.bf16.vlgmr.msra.gmra.mxu0 %vm736_vm8, %v3852_v53  ;;  %4100 = vmatpush3.bf16.msra.mxu1 %v1665_v59 }
 0x4a7   : >> { %4101 = vmatprep.subr.bf16.mxu1 %v4536_v63  ;;  %1854 = vmatprep.mubr.bf16.mxu0 %v4537_v31 }
 0x4a8   : >> { %v1797_v26 = vpop.permute.xlu0 %1796 }
 0x4a9   : >> { %v1642_v45 = vpop.permute.xlu1 %1641  ;;  %v1808_v39 = vsel %vm1800_vm15, %v1795_v57, %v1797_v26 }
 0x4aa   : >> { %v1662_v40 = vsel %vm1659_vm14, %v1640_v42, %v1642_v45  ;;  %1832 = vmatprep.subr.bf16.mxu0 %v1808_v39 }
 0x4ab   : >> { %4102 = vmatpush3.bf16.msra.mxu1 %v1662_v40 }
 0x4ac   : >> { %v1793_v61 = vpop.permute.xlu0 %1792  ;;  %4107 = vmatprep.subr.bf16.mxu1 %v4536_v63 }
 0x4ad   : >> { %v1807_v55 = vsel %vm1800_vm15, %v1793_v61, %v1795_v57  ;;  %v1787_v58 = vpop.permute.xlu1 %1786 }
 0x4ae   : >> { %4104 = vmatmul.mubr.msk.bf16.vlgmr.msra.gmra.mxu1 %vm736_vm8, %v3852_v53  ;;  %1833 = vmatpush1.bf16.msra.mxu0 %v1807_v55 }
 0x4af   : >> { %4113 = vmatprep.mubr.msk.bf16.mxu1 %vm4538_vm6, %v4536_v63 }
 0x4b0   : >> { %v1789_v31 = vpop.permute.xlu0 %1788 }
 0x4b1   : >> { %v1785_v30 = vpop.permute.xlu1 %1784  ;;  %v1805_v32 = vsel %vm1800_vm15, %v1787_v58, %v1789_v31 }
 0x4b2   : >> { %v1804_v38 = vsel %vm1800_vm15, %v1785_v30, %v1787_v58  ;;  %1834 = vmatprep.subr.bf16.mxu0 %v1805_v32 }
 0x4b3   : >> { %1835 = vmatpush1.bf16.msra.mxu0 %v1804_v38 }
 0x4b4   : >> { %v1799_v52 = vpop.permute.xlu0 %1798 }
 0x4b5   : >> { %v1809_v33 = vsel %vm1800_vm15, %v1797_v26, %v1799_v52  ;;  %v1779_v35 = vpop.permute.xlu1 %1778 }
 0x4b6   : >> { %4108 = vmatpush3.bf16.msra.mxu1 %v1809_v33 }
 0x4b7   : >> { %4109 = vmatprep.subr.bf16.mxu1 %v4536_v63 }
 0x4b8   : >> { %v1781_v3 = vpop.permute.xlu0 %1780 }
 0x4b9   : >> { %v1777_v54 = vpop.permute.xlu1 %1776  ;;  %v1802_v36 = vsel %vm1800_vm15, %v1779_v35, %v1781_v3 }
 0x4ba   : >> { %v1801_v41 = vsel %vm1800_vm15, %v1777_v54, %v1779_v35  ;;  %1836 = vmatprep.subr.bf16.mxu0 %v1802_v36 }
 0x4bb   : >> { %1837 = vmatpush1.bf16.msra.mxu0 %v1801_v41 }
 0x4bc   : >> { %v1791_v60 = vpop.permute.xlu0 %1790 }
 0x4bd   : >> { %v1806_v62 = vsel %vm1800_vm15, %v1789_v31, %v1791_v60  ;;  %v1783_v15 = vpop.permute.xlu1 %1782 }
 0x4be   : >> { %3856 = vmatmul.mubr.msk.bf16.vlgmr.msra.gmra.mxu0 %vm736_vm8, %v3855_v37  ;;  %4110 = vmatpush3.bf16.msra.mxu1 %v1806_v62  ;;  %v1803_v29 = vsel %vm1800_vm15, %v1781_v3, %v1783_v15 }
 0x4bf   : >> { %4111 = vmatprep.subr.bf16.mxu1 %v4536_v63  ;;  %4121 = vmatprep.mubr.msk.f32.mxu0 (%p617_p6), %vm376_vm2, %v4622_v2 }
 0x4c2   : >> { %4112 = vmatpush3.bf16.msra.mxu1 %v1803_v29 }
 0x4c5   : >> { %4114 = vmatmul.mubr.msk.bf16.vlgmr.msra.gmra.mxu1 %vm736_vm8, %v3855_v37 }
 0x4ca   : >> { %v5324_v14 = vpop.permute.xlu1 %1919 }
 0x4d7   : >> { %v774_v55 = vpop.f32.mrf.mxu0 }
 0x4d9   : >> { %v776_v58 = vpop.f32.mrf.mxu0 }
 0x4db   : >> { %v778_v31 = vpop.f32.mrf.mxu0 }
 0x4dd   : >> { %v817_v34 = vpop.f32.mrf.mxu1  ;;  %v780_v52 = vpop.f32.mrf.mxu0 }
 0x4df   : >> { %v4035_v51 = vpop.f32.mrf.mxu1 }
 0x4e1   : >> { %v820_v42 = vpop.f32.mrf.mxu1 }
 0x4e3   : >> { %v4036_v25 = vpop.f32.mrf.mxu1  ;;  %v875_v54 = vpop.f32.mrf.mxu0 }
 0x4e4   : >> { %v876_v4 = vadd.f32 %v875_v54, %v774_v55 }
 0x4e5   : >> { %v877_v36 = vpop.f32.mrf.mxu0 }
 0x4e7   : >> { %v879_v41 = vpop.f32.mrf.mxu0 }
 0x4e8   : >> { %v880_v5 = vadd.f32 %v879_v41, %v778_v31  ;;  %v1915_v41 = vpop.permute.xlu0 %1914 }
 0x4e9   : >> { %v918_v43 = vpop.f32.mrf.mxu1  ;;  %v881_v37 = vpop.f32.mrf.mxu0 }
 0x4ea   : >> { %v919_v44 = vadd.f32 %v918_v43, %v817_v34  ;;  %v882_v10 = vadd.f32 %v881_v37, %v780_v52 }
 0x4eb   : >> { %v4045_v53 = vpop.f32.mrf.mxu1 }
 0x4ed   : >> { %v921_v56 = vpop.f32.mrf.mxu1 }
 0x4ee   : >> { %v922_v59 = vadd.f32 %v921_v56, %v820_v42 }
 0x4ef   : >> { %v4046_v57 = vpop.f32.mrf.mxu1 }
 0x4f0   : >> { %v1010_v60 = vpop.f32.mrf.mxu0 }
 0x4f1   : >> { %v1060_v6 = vadd.f32 %v1010_v60, %v876_v4 }
 0x4f2   : >> { %v1012_v34 = vpop.f32.mrf.mxu0 }
 0x4f4   : >> { %v1014_v43 = vpop.f32.mrf.mxu0 }
 0x4f7   : >> { %v1053_v26 = vpop.f32.mrf.mxu1 }
 0x4f8   : >> { %v1062_v45 = vadd.f32 %v1053_v26, %v919_v44  ;;  %v1016_v44 = vpop.f32.mrf.mxu0 }
 0x4f9   : >> { %v4055_v39 = vpop.f32.mrf.mxu1  ;;  %v1064_v17 = vadd.f32 %v1016_v44, %v882_v10 }
 0x4fb   : >> { %v1056_v40 = vpop.f32.mrf.mxu1 }
 0x4fc   : >> { %v1065_v63 = vadd.f32 %v1056_v40, %v922_v59 }
 0x4fd   : >> { %v4056_v61 = vpop.f32.mrf.mxu1 }
 0x508   : >> { %v1151_v53 = vpop.f32.mrf.mxu0 }
 0x509   : >> { %v1201_v13 = vadd.f32 %v1151_v53, %v1060_v6 }
 0x50a   : >> { %v1153_v56 = vpop.f32.mrf.mxu0 }
 0x50c   : >> { %v1155_v59 = vpop.f32.mrf.mxu0 }
 0x50e   : >> { %v1194_v30 = vpop.f32.mrf.mxu1  ;;  %v1157_v39 = vpop.f32.mrf.mxu0 }
 0x50f   : >> { %v1203_v32 = vadd.f32 %v1194_v30, %v1062_v45 }
 0x510   : >> { %v4065_v38 = vpop.f32.mrf.mxu1 }
 0x512   : >> { %v1197_v33 = vpop.f32.mrf.mxu1 }
 0x513   : >> { %v1206_v35 = vadd.f32 %v1197_v33, %v1065_v63 }
 0x514   : >> { %v4066_v3 = vpop.f32.mrf.mxu1 }
 0x51e   : >> { %v1292_v30 = vpop.f32.mrf.mxu0 }
 0x525   : >> { %v1335_v62 = vpop.f32.mrf.mxu1 }
 0x526   : >> { %v1344_v15 = vadd.f32 %v1335_v62, %v1203_v32  ;;  %v1294_v32 = vpop.f32.mrf.mxu0 }
 0x527   : >> { %v4075_v29 = vpop.f32.mrf.mxu1 }
 0x528   : >> { %v1296_v38 = vpop.f32.mrf.mxu0 }
 0x529   : >> { %v1338_v51 = vpop.f32.mrf.mxu1 }
 0x52a   : >> { %v1347_v42 = vadd.f32 %v1338_v51, %v1206_v35  ;;  %v1298_v33 = vpop.f32.mrf.mxu0 }
 0x52b   : >> { %v4076_v25 = vpop.f32.mrf.mxu1 }
 0x536   : >> { %v1433_v35 = vpop.f32.mrf.mxu0 }
 0x538   : >> { %v1435_v62 = vpop.f32.mrf.mxu0 }
 0x53a   : >> { %v1437_v25 = vpop.f32.mrf.mxu0 }
 0x53e   : >> { %v1476_v57 = vpop.f32.mrf.mxu1 }
 0x53f   : >> { %v5318_v26 = vadd.f32 %v1476_v57, %v1344_v15  ;;  %v1439_v15 = vpop.f32.mrf.mxu0 }
 0x540   : >> { %v4085_v45 = vpop.f32.mrf.mxu1 }
 0x542   : >> { %v1479_v40 = vpop.f32.mrf.mxu1 }
 0x543   : >> { %v5320_v63 = vadd.f32 %v1479_v40, %v1347_v42  ;;  %v878_v42 = vadd.f32 %v877_v36, %v776_v58  ;;  %v1342_v58 = vadd.f32 %v1292_v30, %v1201_v13  ;;  %v1205_v36 = vadd.f32 %v1157_v39, %v1064_v17 }
 0x544   : >> { %v4086_v61 = vpop.f32.mrf.mxu1 }
 0x545   : >> { %v1061_v11 = vadd.f32 %v1012_v34, %v878_v42  ;;  %v1483_v4 = vadd.f32 %v1433_v35, %v1342_v58  ;;  %v1346_v6 = vadd.f32 %v1298_v33, %v1205_v36 }
 0x547   : >> { %v1202_v19 = vadd.f32 %v1153_v56, %v1061_v11  ;;  %v1487_v10 = vadd.f32 %v1439_v15, %v1346_v6  ;;  %v1940_v56 = vpop.permute.xlu0 %1939 }
 0x549   : >> { %v1343_v31 = vadd.f32 %v1294_v32, %v1202_v19 }
 0x54b   : >> { %v1484_v37 = vadd.f32 %v1435_v62, %v1343_v31 }
 0x54e   : >> { %v1574_v57 = vpop.f32.mrf.mxu0 }
 0x54f   : >> { %v1624_v60 = vadd.f32 %v1574_v57, %v1483_v4  ;;  %v1944_v57 = vpop.permute.xlu0 %1943 }
 0x550   : >> { %v1576_v45 = vpop.f32.mrf.mxu0 }
 0x552   : >> { %v1578_v1 = vpop.f32.mrf.mxu0 }
 0x554   : >> { %v1580_v40 = vpop.f32.mrf.mxu0 }
 0x556   : >> { %v1617_v3 = vpop.f32.mrf.mxu1 }
 0x558   : >> { %v4095_v29 = vpop.f32.mrf.mxu1 }
 0x559   : >> { %v1063_v29 = vadd.f32 %v1014_v43, %v880_v5  ;;  %v1625_v43 = vadd.f32 %v1576_v45, %v1484_v37 }
 0x55a   : >> { %v5322_v51 = vpop.f32.mrf.mxu1 }
 0x55b   : >> { %v1204_v55 = vadd.f32 %v1155_v59, %v1063_v29  ;;  %v1628_v59 = vadd.f32 %v1580_v40, %v1487_v10  ;;  %v1629_v40 = vadd.f32 %v5322_v51, %v5320_v63 }
 0x55c   : >> { %v4096_v0 = vpop.f32.mrf.mxu1 }
 0x55d   : >> { %v1345_v52 = vadd.f32 %v1296_v38, %v1204_v55  ;;  %v1626_v38 = vadd.f32 %v1617_v3, %v5318_v26 }
 0x55f   : >> { %v1486_v34 = vadd.f32 %v1437_v25, %v1345_v52 }
 0x561   : >> { %v1627_v11 = vadd.f32 %v1578_v1, %v1486_v34 }
 0x566   : >> { %v1715_v7 = vpop.f32.mrf.mxu0 }
 0x567   : >> { %v1765_v53 = vadd.f32 %v1715_v7, %v1624_v60 }
 0x568   : >> { %v1717_v0 = vpop.f32.mrf.mxu0 }
 0x569   : >> { %v1766_v44 = vadd.f32 %v1717_v0, %v1625_v43 }
 0x56a   : >> { %v1719_v54 = vpop.f32.mrf.mxu0 }
 0x56b   : >> { %v1768_v39 = vadd.f32 %v1719_v54, %v1627_v11 }
 0x56c   : >> { %v1721_v5 = vpop.f32.mrf.mxu0 }
 0x56d   : >> { %v1769_v62 = vadd.f32 %v1721_v5, %v1628_v59 }
 0x56e   : >> { %v1758_v61 = vpop.f32.mrf.mxu1 }
 0x56f   : >> { %v1767_v25 = vadd.f32 %v1758_v61, %v1626_v38 }
 0x570   : >> { %v4105_v8 = vpop.f32.mrf.mxu1 }
 0x571   : >> { %v1938_v8 = vpop.permute.xlu1 %1937 }
 0x572   : >> { %v1761_v12 = vpop.f32.mrf.mxu1  ;;  %v1946_v45 = vsel %vm1236_vm11, %v1938_v8, %v1940_v56 }
 0x573   : >> { %v1770_v54 = vadd.f32 %v1761_v12, %v1629_v40 }
 0x574   : >> { %v4106_v16 = vpop.f32.mrf.mxu1 }
 0x575   : >> { %v1942_v19 = vpop.permute.xlu1 %1941 }
 0x576   : >> { %v1947_v33 = vsel %vm1236_vm11, %v1940_v56, %v1942_v19  ;;  %v1948_v58 = vsel %vm1236_vm11, %v1942_v19, %v1944_v57  ;;  %v4548_v57 = vmov (%p617_p6), 3  }
 0x577   : > { %4391 = vset.pattern.permute.xlu0 (%p617_p6), %v4548_v57  ;;  %4392 = vset.pattern.permute.xlu1 (%p617_p6), %v4548_v57 }
 0x57e   : >> { %v1856_v16 = vpop.f32.mrf.mxu0 }
 0x57f   : >> { %v1906_v13 = vadd.f32 %v1856_v16, %v1765_v53 }
 0x580   : >> { %v1858_v17 = vpop.f32.mrf.mxu0 }
 0x581   : >> { %v1922_v30 = vadd.f32 %v1915_v41, %v1906_v13  ;;  %v1907_v32 = vadd.f32 %v1858_v17, %v1766_v44 }
 0x582   : >> { %v1860_v35 = vpop.f32.mrf.mxu0 }
 0x583   : >> { %1931 = vst [vmem:[%s5328_s27] sm:$0xff] %v1922_v30  ;;  %v1923_v1 = vadd.f32 %v1915_v41, %v1907_v32  ;;  %v1909_v7 = vadd.f32 %v1860_v35, %v1768_v39  ;;  %v1952_v36 = vmul.f32 %v1946_v45, %v1922_v30 }
 0x584   : >> { %v1862_v15 = vpop.f32.mrf.mxu0 }
 0x585   : >> { %1932 = vst [vmem:[%s5328_s27 + $0x8] sm:$0xff] %v1923_v1  ;;  %v1925_v26 = vadd.f32 %v5324_v14, %v1909_v7  ;;  %v1910_v3 = vadd.f32 %v1862_v15, %v1769_v62  ;;  %v1899_v42 = vpop.f32.mrf.mxu1  ;;  %v1953_v29 = vmul.f32 %v1947_v33, %v1923_v1 }
 0x586   : >> { %v1908_v0 = vadd.f32 %v1899_v42, %v1767_v25 }
 0x587   : >> { %1934 = vst [vmem:[%s5328_s27 + $0x18] sm:$0xff] %v1925_v26  ;;  %v1926_v55 = vadd.f32 %v5324_v14, %v1910_v3  ;;  %v4115_v61 = vpop.f32.mrf.mxu1  ;;  %v1955_v52 = vmul.f32 %v1946_v45, %v1925_v26  ;;  %v1958_v37 = vadd.f32 %v1953_v29, %v1952_v36  ;;  %v1969_v53 = vmul.f32 %v1953_v29, %v1953_v29 }
 0x588   : >> { %v1924_v31 = vadd.f32 %v1915_v41, %v1908_v0  ;;  %v1968_v41 = vmul.f32 %v1952_v36, %v1952_v36  ;;  %v4551_v61 = vmov (%p617_p6), 4  }
 0x589   : >> { %1935 = vst [vmem:[%s5328_s27 + $0x20] sm:$0xff] %v1926_v55  ;;  %v1956_v4 = vmul.f32 %v1947_v33, %v1926_v55  ;;  %v1902_v8 = vpop.f32.mrf.mxu1  ;;  %v1971_v43 = vmul.f32 %v1955_v52, %v1955_v52 }
 0x58a   : >> { %1933 = vst [vmem:[%s5328_s27 + $0x10] sm:$0xff] %v1924_v31  ;;  %v1954_v60 = vmul.f32 %v1948_v58, %v1924_v31  ;;  %v1911_v63 = vadd.f32 %v1902_v8, %v1770_v54  ;;  %v1974_v17 = vadd.f32 %v1969_v53, %v1968_v41 }
 0x58b   : >> { %v4116_v51 = vpop.f32.mrf.mxu1  ;;  %v1972_v5 = vmul.f32 %v1956_v4, %v1956_v4  ;;  %v1962_v16 = vadd.f32 %v1956_v4, %v1955_v52 }
 0x58c   : >> { %v1927_v6 = vadd.f32 %v5324_v14, %v1911_v63  ;;  %v1959_v34 = vadd.f32 %v1958_v37, %v1954_v60  ;;  %v1970_v10 = vmul.f32 %v1954_v60, %v1954_v60 }
 0x58d   : >> { %v1978_v13 = vadd.f32 %v1972_v5, %v1971_v43 }
 0x58e   : >> { %1936 = vst [vmem:[%s5328_s27 + $0x28] sm:$0xff] %v1927_v6  ;;  %v1957_v12 = vmul.f32 %v1948_v58, %v1927_v6  ;;  %1960 = vadd.xlane.f32.xlu1 %v1959_v34  ;;  %v1975_v19 = vadd.f32 %v1974_v17, %v1970_v10 }
 0x590   : >> { %v1963_v11 = vadd.f32 %v1962_v16, %v1957_v12  ;;  %v1973_v44 = vmul.f32 %v1957_v12, %v1957_v12 }
 0x592   : >> { %1964 = vadd.xlane.f32.xlu0 %v1963_v11  ;;  %v1979_v56 = vadd.f32 %v1978_v13, %v1973_v44 }
 0x594   : >> { %1980 = vadd.xlane.f32.xlu1 %v1979_v56 }
 0x596   : >> { %1976 = vadd.xlane.f32.xlu0 %v1975_v19 }
 0x617   : >> { %v1961_v59 = vpop.xlane.xlu1 %1960 }
 0x618   : >> { %v1966_v14 = vadd.f32 %v4517_v28, %v1961_v59  }
 0x61a   : >> { %v5950_v28 = vmov %v1966_v14 }
 0x61b   : >> { %v1965_v39 = vpop.xlane.xlu0 %1964 }
 0x61c   : >> { %v1967_v30 = vadd.f32 %v4513_v27, %v1965_v39  }
 0x61d   : >> { %v1981_v32 = vpop.xlane.xlu1 %1980 }
 0x61e   : >> { %v1983_v38 = vadd.f32 %v4505_v23, %v1981_v32   ;;  %v5949_v27 = vmov %v1967_v30  ;;  %619 = sbr.rel (!%p617_p6) target bundleno = 903 (0x387), region = 142 }
 0x61f   : >> { %v1977_v35 = vpop.xlane.xlu0 %1976 }
 0x620   : >> { %v1982_v62 = vadd.f32 %v4509_v24, %v1977_v35   ;;  %v5947_v23 = vmov %v1983_v38  ;;  %v1985_v28 = vsel (%p617_p6), %vm373_vm1, %v1967_v30, %v1983_v38 }
 0x621   : > { %4117 = vmatprep.subr.mxu0 (%p617_p6), %v1985_v28 }
 0x622   : >> { %v5948_v24 = vmov %v1982_v62  ;;  %v1984_v1 = vsel (%p617_p6), %vm373_vm1, %v1966_v14, %v1982_v62  ;;  %4118 = vmatpush3.msra.mxu0 (%p617_p6), %v1985_v28 }
 0x623   : > { %4119 = vmatprep.subr.mxu0 %v1984_v1 }
 0x624   : > { %4120 = vmatpush3.msra.mxu0 %v1984_v1 }
 0x625   : > { %4122 = vmatmul.mubr.msk.f32.vlgmr.msra.gmra.mxu0 %vm376_vm2, %v4652_v9 }
 0x6e5   : > { %v4123_v7 = vpop.f32.mrf.mxu0 }
 0x6e6   : > { %v2062_v15 = vmul.f32 %v4123_v7, %v4123_v7 }
 0x6e7   : > { %v2052_v33 = vpop.f32.mrf.mxu0 }
 0x6e8   : > { %v2061_v25 = vmul.f32 %v2052_v33, %v2052_v33 }
 0x6ea   : > { %2065 = vrot.lane.b32.xlu0 %v2061_v25, %s4531_s29 }
 0x6ee   : > { %2067 = vrot.lane.b32.xlu0 %v2062_v15, %s4531_s29  ;;  %s4549_s29 = smov 125  }
 0x75c   : > { %v2066_v20 = vpop.permute.xlu0 %2065 }
 0x75d   : > { %v2071_v21 = vsub.f32 %v2052_v33, %v2066_v20 }
 0x75f   : > { %v2073_v22 = vadd.f32 1e-05, %v2071_v21 }
 0x760   : > { %v2068_v23 = vpop.permute.xlu0 %2067 }
 0x761   : > { %4395 = vrsqrt.f32 %v2073_v22  ;;  %v2072_v2 = vsub.f32 %v4123_v7, %v2068_v23 }
 0x763   : > { %v2074_v24 = vadd.f32 1e-05, %v2072_v2 }
 0x765   : > { %4397 = vrsqrt.f32 %v2074_v24 }
 0x76e   : > { %v4396_v27 = vpop.eup %4395 }
 0x76f   : > { %2079 = vrot.lane.b32.xlu1 %v4396_v27, %s4547_s28 }
 0x772   : > { %v4398_v9 = vpop.eup %4397 }
 0x773   : > { %2081 = vrot.lane.b32.xlu1 %v4398_v9, %s4547_s28 }
 0x7e1   : > { %v2080_v45 = vpop.permute.xlu1 %2079 }
 0x7e2   : > { %v2085_v26 = vmul.f32 %v2080_v45, %v4692_v18 }
 0x7e4   : > { %2089 = vrot.lane.b32.xlu0 %v2085_v26, %s4549_s29 }
 0x7e5   : > { %v2082_v3 = vpop.permute.xlu1 %2081 }
 0x7e6   : > { %v2086_v42 = vmul.f32 %v2082_v3, %v4820_v46 }
 0x7e8   : > { %2091 = vrot.lane.b32.xlu1 %v2086_v42, %s4549_s29 }
 0x856   : > { %v2090_v40 = vpop.permute.xlu0 %2089 }
 0x857   : > { %v2095_v29 = vmul.f32 %v2090_v40, %v2052_v33 }
 0x859   : > { %2099 = vrot.lane.b32.xlu0 %v2095_v29, %s4550_s7 }
 0x85a   : > { %v2092_v0 = vpop.permute.xlu1 %2091 }
 0x85b   : > { %v2096_v55 = vmul.f32 %v4123_v7, %v2092_v0 }
 0x85d   : > { %2101 = vrot.lane.b32.xlu1 %v2096_v55, %s4550_s7  ;;  %2108 = vperm.xlu0 %4391, %v2085_v26  }
 0x861   : > { %2112 = vperm.xlu1 %4392, %v2086_v42   ;;  %4394 = vset.pattern.permute.xlu0 %v4551_v61 }
 0x865   : > { %4393 = vset.pattern.permute.xlu1 %v4551_v61 }
 0x8cb   : > { %v2100_v58 = vpop.permute.xlu0 %2099 }
 0x8cc   : > { %v2105_v54 = vsub.f32 %v4692_v18, %v2100_v58 }
 0x8ce   : > { %2125 = vperm.xlu1 %4393, %v2105_v54  }
 0x8cf   : > { %v2102_v36 = vpop.permute.xlu1 %2101 }
 0x8d0   : > { %v2106_v31 = vsub.f32 %v4820_v46, %v2102_v36 }
 0x8d2   : > { %2130 = vperm.xlu0 %4394, %v2106_v31  }
 0x8d8   : > { %v2109_v4 = vpop.permute.xlu0 %2108 }
 0x8d9   : > { %v5372_v8 = vmul.f32 %v2109_v4, %v4822_v47  ;;  %v5375_v52 = vmul.f32 %v2109_v4, %v4824_v48  ;;  %v5378_v37 = vmul.f32 %v2109_v4, %v4826_v49  ;;  %v5381_v60 = vmul.f32 %v2109_v4, %v4828_v50 }
 0x8dc   : > { %v2113_v63 = vpop.permute.xlu1 %2112 }
 0x8dd   : > { %v5384_v51 = vmul.f32 %v2113_v63, %v4822_v47  ;;  %v5387_v5 = vmul.f32 %v2113_v63, %v4824_v48  ;;  %v5390_v6 = vmul.f32 %v2113_v63, %v4826_v49  ;;  %v5393_v34 = vmul.f32 %v2113_v63, %v4828_v50 }
 0x949   : > { %v2126_v43 = vpop.permute.xlu1 %2125 }
 0x94a   : > { %v5396_v53 = vmul.f32 %v2126_v43, %v4822_v47  ;;  %v5399_v12 = vmul.f32 %v2126_v43, %v4824_v48  ;;  %v5402_v16 = vmul.f32 %v2126_v43, %v4826_v49  ;;  %v5405_v41 = vmul.f32 %v2126_v43, %v4828_v50 }
 0x94d   : > { %v2131_v10 = vpop.permute.xlu0 %2130 }
 0x94e   : > { %v5408_v11 = vmul.f32 %v2131_v10, %v4822_v47  ;;  %v5411_v44 = vmul.f32 %v2131_v10, %v4824_v48  ;;  %v5414_v13 = vmul.f32 %v2131_v10, %v4826_v49  ;;  %v5417_v56 = vmul.f32 %v2131_v10, %v4828_v50 }
 0x94f LB: >> { %s4552_s9 = smov 103   ;;  %s3933_s10 = smul.u32 48, %s4525_s8  ;;  %vm2291_vm0 = vcmask 1043656   ;;  %vm2292_vm1 = vcmask 1047556   ;;  %vm2295_vm2 = vcmask 203780   ;;  %vm2276_vm4 = vcmask 203776   ;;  %s4525_s8 = sphi %s5419_s8, %s2146_s8  }
 0x950   : >> { %2168 = vrot.lane.b32.xlu1 %v5378_v37, %s4552_s9  ;;  %2164 = vrot.lane.b32.xlu0 %v5372_v8, %s4552_s9  ;;  %s4553_s11 = smov 25   ;;  %s3866_s12 = sshll.u32 %s4525_s8, 5  ;;  %vm5454_vm5 = vmor %vm2292_vm1, %vm2291_vm0 }
 0x951   : >> { %s2149_s30 = scalar_lea.vmem [#allocation3], %s3933_s10  ;;  %vm2296_vm6 = vmor %vm2295_vm2, %vm533_vm3  ;;  %s3717_s13 = scalar_lea.vmem [#allocation2], %s3866_s12 }
 0x952   : >> { %v2150_v39 = vld [vmem:[%s2149_s30] sm:$0xff]  ;;  %v2152_v35 = vld [vmem:[%s2149_s30 + $0x10] sm:$0xff]  ;;  %v2151_v28 = vld [vmem:[%s2149_s30 + $0x8] sm:$0xff]  ;;  %s2146_s8 = sadd.s32 1, %s4525_s8  }
 0x953   : >> { %v2153_v9 = vld [vmem:[%s2149_s30 + $0x18] sm:$0xff]  ;;  %v2154_v29 = vld [vmem:[%s2149_s30 + $0x20] sm:$0xff]  ;;  %v2155_v0 = vld [vmem:[%s2149_s30 + $0x28] sm:$0xff]  ;;  %p2143_p7 = scmp.ge.s32.totalorder %s2146_s8, 16  }
 0x954   : >> { %2170 = vrot.lane.b32.xlu1 %v5381_v60, %s4552_s9  ;;  %2166 = vrot.lane.b32.xlu0 %v5375_v52, %s4552_s9  ;;  %s5472_s14 = smov (%p2143_p7), 0  }
 0x958   : >> { %2174 = vrot.lane.b32.xlu1 %v5387_v5, %s4552_s9  ;;  %2172 = vrot.lane.b32.xlu0 %v5384_v51, %s4552_s9 }
 0x95c   : >> { %2178 = vrot.lane.b32.xlu1 %v5393_v34, %s4552_s9  ;;  %2176 = vrot.lane.b32.xlu0 %v5390_v6, %s4552_s9 }
 0x960   : >> { %2209 = vrot.lane.b32.xlu1 %v5399_v12, %s4552_s9  ;;  %2207 = vrot.lane.b32.xlu0 %v5396_v53, %s4552_s9 }
 0x964   : >> { %2213 = vrot.lane.b32.xlu1 %v5405_v41, %s4552_s9  ;;  %2211 = vrot.lane.b32.xlu0 %v5402_v16, %s4552_s9 }
 0x968   : >> { %2217 = vrot.lane.b32.xlu1 %v5411_v44, %s4552_s9  ;;  %2215 = vrot.lane.b32.xlu0 %v5408_v11, %s4552_s9 }
 0x96c   : >> { %2221 = vrot.lane.b32.xlu1 %v5417_v56, %s4552_s9  ;;  %2219 = vrot.lane.b32.xlu0 %v5414_v13, %s4552_s9 }
 0x9c2   : >> { %v2169_v47 = vpop.permute.xlu1 %2168  ;;  %v2165_v48 = vpop.permute.xlu0 %2164 }
 0x9c6   : >> { %v2171_v49 = vpop.permute.xlu1 %2170  ;;  %v2167_v50 = vpop.permute.xlu0 %2166 }
 0x9c7   : >> { %v2181_v30 = vsel %vm1236_vm11, %v2165_v48, %v2167_v50  ;;  %v2183_v62 = vsel %vm1236_vm11, %v2169_v47, %v2171_v49  ;;  %v2182_v1 = vsel %vm1236_vm11, %v2167_v50, %v2169_v47 }
 0x9c8   : >> { %v2193_v33 = vmul.f32 %v2181_v30, %v2150_v39  ;;  %v2195_v25 = vmul.f32 %v2183_v62, %v2152_v35  ;;  %v2194_v15 = vmul.f32 %v2182_v1, %v2151_v28 }
 0x9ca   : >> { %v2175_v17 = vpop.permute.xlu1 %2174  ;;  %v2173_v19 = vpop.permute.xlu0 %2172 }
 0x9cb   : >> { %v2184_v57 = vsel %vm1236_vm11, %v2173_v19, %v2175_v17 }
 0x9cc   : >> { %v2196_v54 = vmul.f32 %v2184_v57, %v2153_v9 }
 0x9ce   : >> { %v2179_v59 = vpop.permute.xlu1 %2178  ;;  %v2177_v14 = vpop.permute.xlu0 %2176 }
 0x9cf   : >> { %v2185_v55 = vsel %vm1236_vm11, %v2175_v17, %v2177_v14  ;;  %v2186_v61 = vsel %vm1236_vm11, %v2177_v14, %v2179_v59 }
 0x9d0   : >> { %v2197_v4 = vmul.f32 %v2185_v55, %v2154_v29  ;;  %v2198_v63 = vmul.f32 %v2186_v61, %v2155_v0 }
 0x9d2   : >> { %v2210_v32 = vpop.permute.xlu1 %2209  ;;  %v2208_v38 = vpop.permute.xlu0 %2207 }
 0x9d3   : >> { %v2223_v7 = vsel %vm1236_vm11, %v2208_v38, %v2210_v32 }
 0x9d4   : >> { %v2235_v20 = vadd.f32 %v2223_v7, %v2193_v33 }
 0x9d6   : >> { %v2214_v21 = vpop.permute.xlu1 %2213  ;;  %v2212_v22 = vpop.permute.xlu0 %2211  ;;  %v2241_v45 = vmax.f32 %v2235_v20, 0.0 }
 0x9d7   : >> { %v2224_v23 = vsel %vm1236_vm11, %v2210_v32, %v2212_v22  ;;  %v2225_v2 = vsel %vm1236_vm11, %v2212_v22, %v2214_v21 }
 0x9d8   : >> { %v2236_v24 = vadd.f32 %v2224_v23, %v2194_v15  ;;  %v2237_v27 = vadd.f32 %v2225_v2, %v2195_v25 }
 0x9da   : >> { %v2242_v26 = vmax.f32 %v2236_v24, 0.0  ;;  %v2243_v3 = vmax.f32 %v2237_v27, 0.0  ;;  %v2218_v42 = vpop.permute.xlu1 %2217  ;;  %v2216_v40 = vpop.permute.xlu0 %2215 }
 0x9db   : >> { %v2226_v58 = vsel %vm1236_vm11, %v2216_v40, %v2218_v42 }
 0x9dc   : >> { %v3935_v36 = vpack.c.bf16 %v2243_v3, %v2243_v3  ;;  %v3934_v31 = vpack.c.bf16 %v2242_v26, %v2241_v45  ;;  %v2238_v43 = vadd.f32 %v2226_v58, %v2196_v54 }
 0x9de   : >> { %v2222_v10 = vpop.permute.xlu1 %2221  ;;  %v2220_v47 = vpop.permute.xlu0 %2219  ;;  %2266 = vrot.lane.b32.xlu1 %v3935_v36, %s4553_s11  ;;  %2264 = vrot.lane.b32.xlu0 %v3934_v31, %s4553_s11  ;;  %v2244_v19 = vmax.f32 %v2238_v43, 0.0 }
 0x9df   : >> { %v2227_v48 = vsel %vm1236_vm11, %v2218_v42, %v2220_v47  ;;  %v2228_v49 = vsel %vm1236_vm11, %v2220_v47, %v2222_v10 }
 0x9e0   : >> { %v2239_v50 = vadd.f32 %v2227_v48, %v2197_v4  ;;  %v2240_v17 = vadd.f32 %v2228_v49, %v2198_v63 }
 0x9e2   : >> { %v2245_v59 = vmax.f32 %v2239_v50, 0.0  ;;  %v2246_v14 = vmax.f32 %v2240_v17, 0.0 }
 0x9e4   : >> { %v3937_v39 = vpack.c.bf16 %v2246_v14, %v2246_v14  ;;  %v3936_v30 = vpack.c.bf16 %v2245_v59, %v2244_v19 }
 0x9e6   : >> { %2270 = vrot.lane.b32.xlu1 %v3937_v39, %s4553_s11  ;;  %2268 = vrot.lane.b32.xlu0 %v3936_v30, %s4553_s11 }
 0xa50   : >> { %v2267_v32 = vpop.permute.xlu1 %2266  ;;  %v2265_v38 = vpop.permute.xlu0 %2264 }
 0xa51   : >> { %v2273_v35 = vrot.slane %v2267_v32, 4  ;;  %v2272_v28 = vrot.slane %v2265_v38, 4 }
 0xa53   : >> { %v2277_v1 = vsel %vm2276_vm4, %v2272_v28, %v2265_v38  ;;  %v2279_v7 = vsel %vm533_vm3, %v2272_v28, %v2273_v35 }
 0xa54   : >> { %v2280_v33 = vsel %vm2276_vm4, %v2279_v7, %v2267_v32  ;;  %3867 = vst.msk [vmem:[%s3717_s13 + $0x20] sm:$0xff] %vm5454_vm5, %v2277_v1 }
 0xa55   : >> { %3868 = vst.msk [vmem:[%s3717_s13 + $0x28] sm:$0xff] %vm2296_vm6, %v2280_v33 }
 0xa58   : >> { %v2271_v25 = vpop.permute.xlu1 %2270  ;;  %v2269_v15 = vpop.permute.xlu0 %2268 }
 0xa59   : >> { %v2275_v20 = vrot.slane %v2271_v25, 4  ;;  %v2274_v21 = vrot.slane %v2269_v15, 4  ;;  %2145 = sbr.rel (!%p2143_p7) target bundleno = 2383 (0x94f), region = 153 }
 0xa5b   : >> { %v2281_v22 = vsel %vm2276_vm4, %v2274_v21, %v2269_v15  ;;  %v2282_v23 = vsel %vm533_vm3, %v2274_v21, %v2275_v20 }
 0xa5c   : >> { %v2283_v2 = vsel %vm2276_vm4, %v2282_v23, %v2271_v25  ;;  %3869 = vst.msk [vmem:[%s3717_s13 + $0x30] sm:$0xff] %vm5454_vm5, %v2281_v22 }
 0xa5d   : >> { %3870 = vst.msk [vmem:[%s3717_s13 + $0x38] sm:$0xff] %vm2296_vm6, %v2283_v2 }
 0xa5e LB: >> { %v4554_v24 = vmov 0.0   ;;  %s3938_s22 = sshll.u32 %s4529_s14, 5  ;;  %s4555_s17 = smov 127   ;;  %v4556_v34 = vmov 0   ;;  %vm4557_vm3 = vmmov 0   ;;  %v5953_v63 = vld [vmem:[#allocation22_spill] sm:$0xff]  ;;  %s4529_s14 = sphi %s5472_s14, %s2305_s14  }
 0xa5f   : >> { %4124 = vmatprep.subr.bf16.mxu1 %v4554_v24  ;;  %s2308_s16 = scalar_lea.vmem [#allocation2], %s3938_s22  ;;  %2453 = vmatprep.mubr.bf16.mxu0 %v4556_v34  ;;  %s4558_s18 = smov 126   ;;  %v5954_v43 = vld [vmem:[#allocation21_spill] sm:$0xff]  ;;  %v5955_v14 = vld [vmem:[#allocation20_spill] sm:$0xff]  ;;  %v5956_v39 = vld [vmem:[#allocation19_spill] sm:$0xff] }
 0xa60   : >> { %4130 = vmatprep.mubr.msk.bf16.mxu1 %vm4557_vm3, %v4554_v24  ;;  %s4559_s19 = smov 104   ;;  %s4560_s20 = smov 103   ;;  %v3873_v10 = vcombine.low %v5954_v43, %v5953_v63  ;;  %v3888_v30 = vcombine.low %v5956_v39, %v5955_v14 }
 0xa61   : >> { %s4561_s23 = smov 102   ;;  %s4562_s24 = smov 80  }
 0xa62   : >> { %s4563_s26 = smov 79   ;;  %s4564_s27 = smov 78  }
 0xa63   : >> { %s3912_s28 = sshll.u32 %s4529_s14, 6  ;;  %s3939_s7 = smul.u32 48, %s4529_s14 }
 0xa64   : >> { %v5479_v27 = vld [vmem:[%s2308_s16 + $0x44] ss:$16 sps:$4 sm:$0xff]   ;;  %v5481_v9 = vld [vmem:[%s2308_s16 + $0x40] ss:$16 sps:$4 sm:$0xff]   ;;  %v5484_v8 = vld [vmem:[%s2308_s16 + $0x48] ss:$16 sps:$4 sm:$0xff]   ;;  %s5743_s29 = scalar_lea.vmem %s4697_s15, %s3912_s28 }
 0xa65   : >> { %2392 = vrot.lane.b32.xlu0 %v5479_v27, %s4555_s17  ;;  %2390 = vrot.lane.b32.xlu1 %v5481_v9, %s4555_s17  ;;  %v5487_v52 = vld [vmem:[%s2308_s16 + $0x4c] ss:$16 sps:$4 sm:$0xff]   ;;  %v5490_v37 = vld [vmem:[%s2308_s16 + $0x24] ss:$16 sps:$4 sm:$0xff]   ;;  %s5851_s8 = scalar_lea.vmem %s4717_s25, %s3939_s7  ;;  %s2305_s14 = sadd.s32 1, %s4529_s14  }
 0xa66   : >> { %v5493_v60 = vld [vmem:[%s2308_s16 + $0x28] ss:$16 sps:$4 sm:$0xff]   ;;  %v5496_v51 = vld [vmem:[%s2308_s16 + $0x20] ss:$16 sps:$4 sm:$0xff]   ;;  %v5499_v5 = vld [vmem:[%s2308_s16 + $0x2c] ss:$16 sps:$4 sm:$0xff]  }
 0xa67   : >> { %v5502_v6 = vld [vmem:[%s2308_s16 + $0x4] ss:$16 sps:$4 sm:$0xff]   ;;  %v5506_v53 = vld [vmem:[%s2308_s16 + $0x8] ss:$16 sps:$4 sm:$0xff]   ;;  %v5511_v12 = vld [vmem:[%s2308_s16] ss:$16 sps:$4 sm:$0xff]  }
 0xa68   : >> { %v5514_v16 = vld [vmem:[%s2308_s16 + $0xc] ss:$16 sps:$4 sm:$0xff]   ;;  %p2302_p8 = scmp.ge.s32.totalorder %s2305_s14, 16  }
 0xa69   : >> { %2394 = vrot.lane.b32.xlu0 %v5484_v8, %s4555_s17  ;;  %2396 = vrot.lane.b32.xlu1 %v5487_v52, %s4555_s17 }
 0xa6d   : >> { %2384 = vrot.lane.b32.xlu0 %v5490_v37, %s4555_s17  ;;  %2386 = vrot.lane.b32.xlu1 %v5493_v60, %s4555_s17 }
 0xa71   : >> { %2382 = vrot.lane.b32.xlu0 %v5496_v51, %s4555_s17  ;;  %2388 = vrot.lane.b32.xlu1 %v5499_v5, %s4555_s17 }
 0xa75   : >> { %2376 = vrot.lane.b32.xlu0 %v5502_v6, %s4555_s17  ;;  %2378 = vrot.lane.b32.xlu1 %v5506_v53, %s4555_s17 }
 0xa79   : >> { %2374 = vrot.lane.b32.xlu0 %v5511_v12, %s4555_s17  ;;  %2380 = vrot.lane.b32.xlu1 %v5514_v16, %s4555_s17 }
 0xa7d   : >> { %2629 = vrot.lane.b32.xlu0 %v5479_v27, %s4558_s18  ;;  %2631 = vrot.lane.b32.xlu1 %v5484_v8, %s4558_s18 }
 0xa81   : >> { %2627 = vrot.lane.b32.xlu0 %v5481_v9, %s4558_s18  ;;  %2633 = vrot.lane.b32.xlu1 %v5487_v52, %s4558_s18 }
 0xa85   : >> { %2621 = vrot.lane.b32.xlu0 %v5490_v37, %s4558_s18  ;;  %2623 = vrot.lane.b32.xlu1 %v5493_v60, %s4558_s18 }
 0xa89   : >> { %2619 = vrot.lane.b32.xlu0 %v5496_v51, %s4558_s18  ;;  %2625 = vrot.lane.b32.xlu1 %v5499_v5, %s4558_s18 }
 0xa8d   : >> { %2613 = vrot.lane.b32.xlu0 %v5502_v6, %s4558_s18  ;;  %2615 = vrot.lane.b32.xlu1 %v5506_v53, %s4558_s18 }
 0xa91   : >> { %2611 = vrot.lane.b32.xlu0 %v5511_v12, %s4558_s18  ;;  %2617 = vrot.lane.b32.xlu1 %v5514_v16, %s4558_s18 }
 0xa95   : >> { %2770 = vrot.lane.b32.xlu0 %v5479_v27, %s4559_s19  ;;  %2772 = vrot.lane.b32.xlu1 %v5484_v8, %s4559_s19 }
 0xa99   : >> { %2768 = vrot.lane.b32.xlu0 %v5481_v9, %s4559_s19  ;;  %2774 = vrot.lane.b32.xlu1 %v5487_v52, %s4559_s19 }
 0xa9d   : >> { %2762 = vrot.lane.b32.xlu0 %v5490_v37, %s4559_s19  ;;  %2764 = vrot.lane.b32.xlu1 %v5493_v60, %s4559_s19 }
 0xaa1   : >> { %2760 = vrot.lane.b32.xlu0 %v5496_v51, %s4559_s19  ;;  %2766 = vrot.lane.b32.xlu1 %v5499_v5, %s4559_s19 }
 0xaa5   : >> { %2754 = vrot.lane.b32.xlu0 %v5502_v6, %s4559_s19  ;;  %2756 = vrot.lane.b32.xlu1 %v5506_v53, %s4559_s19 }
 0xaa9   : >> { %2752 = vrot.lane.b32.xlu0 %v5511_v12, %s4559_s19  ;;  %2758 = vrot.lane.b32.xlu1 %v5514_v16, %s4559_s19 }
 0xaad   : >> { %2911 = vrot.lane.b32.xlu0 %v5479_v27, %s4560_s20  ;;  %2913 = vrot.lane.b32.xlu1 %v5484_v8, %s4560_s20 }
 0xab1   : >> { %2909 = vrot.lane.b32.xlu0 %v5481_v9, %s4560_s20  ;;  %2915 = vrot.lane.b32.xlu1 %v5487_v52, %s4560_s20 }
 0xab5   : >> { %2903 = vrot.lane.b32.xlu0 %v5490_v37, %s4560_s20  ;;  %2905 = vrot.lane.b32.xlu1 %v5493_v60, %s4560_s20 }
 0xab9   : >> { %2901 = vrot.lane.b32.xlu0 %v5496_v51, %s4560_s20  ;;  %2907 = vrot.lane.b32.xlu1 %v5499_v5, %s4560_s20 }
 0xabd   : >> { %2895 = vrot.lane.b32.xlu0 %v5502_v6, %s4560_s20  ;;  %2897 = vrot.lane.b32.xlu1 %v5506_v53, %s4560_s20 }
 0xac1   : >> { %2893 = vrot.lane.b32.xlu0 %v5511_v12, %s4560_s20  ;;  %2899 = vrot.lane.b32.xlu1 %v5514_v16, %s4560_s20 }
 0xac5   : >> { %3052 = vrot.lane.b32.xlu0 %v5479_v27, %s4561_s23  ;;  %3054 = vrot.lane.b32.xlu1 %v5484_v8, %s4561_s23 }
 0xac9   : >> { %3050 = vrot.lane.b32.xlu0 %v5481_v9, %s4561_s23  ;;  %3056 = vrot.lane.b32.xlu1 %v5487_v52, %s4561_s23 }
 0xacd   : >> { %3044 = vrot.lane.b32.xlu0 %v5490_v37, %s4561_s23  ;;  %3046 = vrot.lane.b32.xlu1 %v5493_v60, %s4561_s23 }
 0xad1   : >> { %3042 = vrot.lane.b32.xlu0 %v5496_v51, %s4561_s23  ;;  %3048 = vrot.lane.b32.xlu1 %v5499_v5, %s4561_s23 }
 0xad5   : >> { %3036 = vrot.lane.b32.xlu0 %v5502_v6, %s4561_s23  ;;  %3038 = vrot.lane.b32.xlu1 %v5506_v53, %s4561_s23 }
 0xad7   : >> { %v2393_v41 = vpop.permute.xlu0 %2392  ;;  %v2391_v11 = vpop.permute.xlu1 %2390 }
 0xad8   : >> { %v2405_v45 = vsel %vm717_vm7, %v2391_v11, %v2393_v41  ;;  %v5958_v11 = vld [vmem:[#allocation23_spill] sm:$0xff] }
 0xad9   : >> { %3034 = vrot.lane.b32.xlu0 %v5511_v12, %s4561_s23  ;;  %3040 = vrot.lane.b32.xlu1 %v5514_v16, %s4561_s23 }
 0xadb   : >> { %v2395_v44 = vpop.permute.xlu0 %2394  ;;  %v2397_v13 = vpop.permute.xlu1 %2396 }
 0xadc   : >> { %v2406_v56 = vsel %vm717_vm7, %v2393_v41, %v2395_v44  ;;  %v2407_v57 = vsel %vm717_vm7, %v2395_v44, %v2397_v13  ;;  %v5957_v41 = vld [vmem:[#allocation24_spill] sm:$0xff] }
 0xadd   : >> { %2431 = vmatprep.subr.bf16.mxu0 %v2406_v56  ;;  %3193 = vrot.lane.b32.xlu0 %v5479_v27, %s4562_s24  ;;  %v3891_v44 = vcombine.low %v5958_v11, %v5957_v41 }
 0xade   : >> { %4125 = vmatpush3.bf16.msra.mxu1 %v2407_v57  ;;  %3195 = vrot.lane.b32.xlu1 %v5484_v8, %s4562_s24 }
 0xadf   : >> { %2432 = vmatpush1.bf16.msra.mxu0 %v2405_v45  ;;  %v2385_v26 = vpop.permute.xlu0 %2384  ;;  %4126 = vmatprep.subr.bf16.mxu1 %v4554_v24  ;;  %v2387_v3 = vpop.permute.xlu1 %2386 }
 0xae0   : >> { %v2403_v42 = vsel %vm717_vm7, %v2385_v26, %v2387_v3 }
 0xae1   : >> { %3191 = vrot.lane.b32.xlu0 %v5481_v9, %s4562_s24  ;;  %2433 = vmatprep.subr.bf16.mxu0 %v2403_v42 }
 0xae2   : >> { %3197 = vrot.lane.b32.xlu1 %v5487_v52, %s4562_s24 }
 0xae3   : >> { %v2383_v40 = vpop.permute.xlu0 %2382  ;;  %v2389_v29 = vpop.permute.xlu1 %2388 }
 0xae4   : >> { %v2402_v0 = vsel %vm717_vm7, %v2383_v40, %v2385_v26  ;;  %v2404_v55 = vsel %vm717_vm7, %v2387_v3, %v2389_v29 }
 0xae5   : >> { %2434 = vmatpush1.bf16.msra.mxu0 %v2402_v0  ;;  %3185 = vrot.lane.b32.xlu0 %v5490_v37, %s4562_s24 }
 0xae6   : >> { %4127 = vmatpush3.bf16.msra.mxu1 %v2404_v55  ;;  %3187 = vrot.lane.b32.xlu1 %v5493_v60, %s4562_s24 }
 0xae7   : >> { %v2377_v61 = vpop.permute.xlu0 %2376  ;;  %4128 = vmatprep.subr.bf16.mxu1 %v4554_v24  ;;  %v2379_v58 = vpop.permute.xlu1 %2378 }
 0xae8   : >> { %v2400_v54 = vsel %vm717_vm7, %v2377_v61, %v2379_v58 }
 0xae9   : >> { %3183 = vrot.lane.b32.xlu0 %v5496_v51, %s4562_s24  ;;  %2435 = vmatprep.subr.bf16.mxu0 %v2400_v54 }
 0xaea   : >> { %3189 = vrot.lane.b32.xlu1 %v5499_v5, %s4562_s24 }
 0xaeb   : >> { %v2375_v36 = vpop.permute.xlu0 %2374  ;;  %v2381_v31 = vpop.permute.xlu1 %2380 }
 0xaec   : >> { %v2399_v4 = vsel %vm717_vm7, %v2375_v36, %v2377_v61  ;;  %v2401_v47 = vsel %vm717_vm7, %v2379_v58, %v2381_v31  ;;  %v5959_v31 = vld [vmem:[#allocation26_spill] sm:$0xff] }
 0xaed   : >> { %3177 = vrot.lane.b32.xlu0 %v5502_v6, %s4562_s24  ;;  %2436 = vmatpush1.bf16.msra.mxu0 %v2399_v4  ;;  %v5960_v4 = vld [vmem:[#allocation25_spill] sm:$0xff] }
 0xaee   : >> { %3179 = vrot.lane.b32.xlu1 %v5506_v53, %s4562_s24  ;;  %4129 = vmatpush3.bf16.msra.mxu1 %v2401_v47  ;;  %v3894_v63 = vcombine.low %v5960_v4, %v5959_v31 }
 0xaef   : >> { %v2630_v48 = vpop.permute.xlu0 %2629  ;;  %2532 = vmatprep.subr.bf16.mxu0 %v5479_v27  ;;  %4134 = vmatprep.subr.bf16.mxu1 %v4554_v24  ;;  %v2632_v49 = vpop.permute.xlu1 %2631 }
 0xaf0   : >> { %3886 = vmatmul.mubr.msk.bf16.vlgmr.msra.gmra.mxu0 %vm736_vm8, %v3873_v10  ;;  %v2643_v32 = vsel %vm954_vm9, %v2630_v48, %v2632_v49 }
 0xaf1   : >> { %4131 = vmatmul.mubr.msk.bf16.vlgmr.msra.gmra.mxu1 %vm736_vm8, %v3873_v10  ;;  %3175 = vrot.lane.b32.xlu0 %v5511_v12, %s4562_s24 }
 0xaf2   : >> { %3181 = vrot.lane.b32.xlu1 %v5514_v16, %s4562_s24  ;;  %4135 = vmatpush3.bf16.msra.mxu1 %v5484_v8 }
 0xaf3   : >> { %2533 = vmatpush1.bf16.msra.mxu0 %v5481_v9  ;;  %v2628_v50 = vpop.permute.xlu0 %2627  ;;  %4136 = vmatprep.subr.bf16.mxu1 %v4554_v24  ;;  %v2634_v17 = vpop.permute.xlu1 %2633 }
 0xaf4   : >> { %2534 = vmatprep.subr.bf16.mxu0 %v5490_v37  ;;  %2554 = vmatprep.mubr.bf16.mxu0 %v4556_v34  ;;  %v2644_v62 = vsel %vm954_vm9, %v2632_v49, %v2634_v17  ;;  %v2642_v28 = vsel %vm954_vm9, %v2628_v50, %v2630_v48 }
 0xaf5   : >> { %3334 = vrot.lane.b32.xlu0 %v5479_v27, %s4563_s26  ;;  %4140 = vmatprep.mubr.msk.bf16.mxu1 %vm4557_vm3, %v4554_v24 }
 0xaf6   : >> { %3336 = vrot.lane.b32.xlu1 %v5484_v8, %s4563_s26  ;;  %4137 = vmatpush3.bf16.msra.mxu1 %v5493_v60 }
 0xaf7   : >> { %2535 = vmatpush1.bf16.msra.mxu0 %v5496_v51  ;;  %v2622_v19 = vpop.permute.xlu0 %2621  ;;  %4138 = vmatprep.subr.bf16.mxu1 %v4554_v24  ;;  %v2624_v59 = vpop.permute.xlu1 %2623 }
 0xaf8   : >> { %2536 = vmatprep.subr.bf16.mxu0 %v5502_v6  ;;  %v2640_v7 = vsel %vm954_vm9, %v2622_v19, %v2624_v59 }
 0xaf9   : >> { %3332 = vrot.lane.b32.xlu0 %v5481_v9, %s4563_s26 }
 0xafa   : >> { %3338 = vrot.lane.b32.xlu1 %v5487_v52, %s4563_s26  ;;  %4139 = vmatpush3.bf16.msra.mxu1 %v5506_v53 }
 0xafb   : >> { %2537 = vmatpush1.bf16.msra.mxu0 %v5511_v12  ;;  %v2620_v38 = vpop.permute.xlu0 %2619  ;;  %4144 = vmatprep.subr.bf16.mxu1 %v4554_v24  ;;  %v2626_v35 = vpop.permute.xlu1 %2625 }
 0xafc   : >> { %2667 = vmatprep.subr.bf16.mxu0 %v2643_v32  ;;  %v2641_v25 = vsel %vm954_vm9, %v2624_v59, %v2626_v35  ;;  %v2639_v20 = vsel %vm954_vm9, %v2620_v38, %v2622_v19 }
 0xafd   : >> { %4141 = vmatmul.mubr.msk.bf16.vlgmr.msra.gmra.mxu1 %vm736_vm8, %v3888_v30  ;;  %3326 = vrot.lane.b32.xlu0 %v5490_v37, %s4563_s26 }
 0xafe   : >> { %3328 = vrot.lane.b32.xlu1 %v5493_v60, %s4563_s26  ;;  %4145 = vmatpush3.bf16.msra.mxu1 %v2644_v62  ;;  %v5961_v62 = vld [vmem:[#allocation28_spill] sm:$0xff] }
 0xaff   : >> { %3889 = vmatmul.mubr.msk.bf16.vlgmr.msra.gmra.mxu0 %vm736_vm8, %v3888_v30  ;;  %v2614_v1 = vpop.permute.xlu0 %2613  ;;  %4146 = vmatprep.subr.bf16.mxu1 %v4554_v24  ;;  %v2616_v33 = vpop.permute.xlu1 %2615 }
 0xb00   : >> { %2668 = vmatpush1.bf16.msra.mxu0 %v2642_v28  ;;  %2689 = vmatprep.mubr.bf16.mxu0 %v4556_v34  ;;  %v2637_v15 = vsel %vm954_vm9, %v2614_v1, %v2616_v33  ;;  %v5962_v28 = vld [vmem:[#allocation27_spill] sm:$0xff] }
 0xb01   : >> { %2669 = vmatprep.subr.bf16.mxu0 %v2640_v7  ;;  %3324 = vrot.lane.b32.xlu0 %v5496_v51, %s4563_s26 }
 0xb02   : >> { %3330 = vrot.lane.b32.xlu1 %v5499_v5, %s4563_s26  ;;  %4147 = vmatpush3.bf16.msra.mxu1 %v2641_v25  ;;  %v3914_v25 = vld [vmem:[%s5743_s29 + $0x48] sm:$0xff] }
 0xb03   : >> { %v2612_v21 = vpop.permute.xlu0 %2611  ;;  %4148 = vmatprep.subr.bf16.mxu1 %v4554_v24  ;;  %4150 = vmatprep.mubr.msk.bf16.mxu1 %vm4557_vm3, %v4554_v24  ;;  %v2618_v22 = vpop.permute.xlu1 %2617 }
 0xb04   : >> { %2670 = vmatpush1.bf16.msra.mxu0 %v2639_v20  ;;  %v2638_v23 = vsel %vm954_vm9, %v2616_v33, %v2618_v22  ;;  %v2636_v2 = vsel %vm954_vm9, %v2612_v21, %v2614_v1  ;;  %v3897_v1 = vcombine.low %v5962_v28, %v5961_v62  ;;  %v3913_v33 = vld [vmem:[%s5743_s29 + $0x40] sm:$0xff] }
 0xb05   : >> { %2671 = vmatprep.subr.bf16.mxu0 %v2637_v15  ;;  %3318 = vrot.lane.b32.xlu0 %v5502_v6, %s4563_s26 }
 0xb06   : >> { %3320 = vrot.lane.b32.xlu1 %v5506_v53, %s4563_s26  ;;  %4149 = vmatpush3.bf16.msra.mxu1 %v2638_v23 }
 0xb07   : >> { %v2771_v13 = vpop.permute.xlu0 %2770  ;;  %4154 = vmatprep.subr.bf16.mxu1 %v4554_v24  ;;  %v2773_v56 = vpop.permute.xlu1 %2772 }
 0xb08   : >> { %2672 = vmatpush1.bf16.msra.mxu0 %v2636_v2  ;;  %v2784_v57 = vsel %vm1095_vm10, %v2771_v13, %v2773_v56 }
 0xb09   : >> { %3316 = vrot.lane.b32.xlu0 %v5511_v12, %s4563_s26  ;;  %4151 = vmatmul.mubr.msk.bf16.vlgmr.msra.gmra.mxu1 %vm736_vm8, %v3891_v44 }
 0xb0a   : >> { %3322 = vrot.lane.b32.xlu1 %v5514_v16, %s4563_s26  ;;  %2808 = vmatprep.subr.bf16.mxu0 %v2784_v57  ;;  %v3916_v57 = vld [vmem:[%s5743_s29 + $0x58] sm:$0xff] }
 0xb0b   : >> { %v2769_v45 = vpop.permute.xlu0 %2768  ;;  %3892 = vmatmul.mubr.msk.bf16.vlgmr.msra.gmra.mxu0 %vm736_vm8, %v3891_v44  ;;  %4160 = vmatprep.mubr.msk.bf16.mxu1 %vm4557_vm3, %v4554_v24  ;;  %v2775_v26 = vpop.permute.xlu1 %2774 }
 0xb0c   : >> { %v2783_v3 = vsel %vm1095_vm10, %v2769_v45, %v2771_v13  ;;  %2830 = vmatprep.mubr.bf16.mxu0 %v4556_v34  ;;  %v2785_v42 = vsel %vm1095_vm10, %v2773_v56, %v2775_v26  ;;  %v3915_v13 = vld [vmem:[%s5743_s29 + $0x50] sm:$0xff] }
 0xb0d   : >> { %3475 = vrot.lane.b32.xlu0 %v5479_v27, %s4564_s27  ;;  %2809 = vmatpush1.bf16.msra.mxu0 %v2783_v3 }
 0xb0e   : >> { %3477 = vrot.lane.b32.xlu1 %v5484_v8, %s4564_s27  ;;  %4155 = vmatpush3.bf16.msra.mxu1 %v2785_v42  ;;  %v3917_v42 = vld [vmem:[%s5743_s29 + $0x60] sm:$0xff] }
 0xb0f   : >> { %v2763_v40 = vpop.permute.xlu0 %2762  ;;  %4156 = vmatprep.subr.bf16.mxu1 %v4554_v24  ;;  %v2765_v29 = vpop.permute.xlu1 %2764 }
 0xb10   : >> { %v2781_v0 = vsel %vm1095_vm10, %v2763_v40, %v2765_v29 }
 0xb11   : >> { %3473 = vrot.lane.b32.xlu0 %v5481_v9, %s4564_s27  ;;  %2810 = vmatprep.subr.bf16.mxu0 %v2781_v0 }
 0xb12   : >> { %3479 = vrot.lane.b32.xlu1 %v5487_v52, %s4564_s27 }
 0xb13   : >> { %v2761_v55 = vpop.permute.xlu0 %2760  ;;  %v2767_v27 = vpop.permute.xlu1 %2766 }
 0xb14   : >> { %v2780_v61 = vsel %vm1095_vm10, %v2761_v55, %v2763_v40  ;;  %v2782_v8 = vsel %vm1095_vm10, %v2765_v29, %v2767_v27  ;;  %v3918_v29 = vld [vmem:[%s5743_s29 + $0x68] sm:$0xff] }
 0xb15   : >> { %3467 = vrot.lane.b32.xlu0 %v5490_v37, %s4564_s27  ;;  %2811 = vmatpush1.bf16.msra.mxu0 %v2780_v61  ;;  %v4565_v37 = vmov 5  }
 0xb16   : >> { %3469 = vrot.lane.b32.xlu1 %v5493_v60, %s4564_s27  ;;  %4157 = vmatpush3.bf16.msra.mxu1 %v2782_v8 }
 0xb17   : >> { %v2755_v9 = vpop.permute.xlu0 %2754  ;;  %4158 = vmatprep.subr.bf16.mxu1 %v4554_v24  ;;  %v2757_v58 = vpop.permute.xlu1 %2756  ;;  %4400 = vset.pattern.permute.xlu1 %v4565_v37 }
 0xb18   : >> { %v2778_v52 = vsel %vm1095_vm10, %v2755_v9, %v2757_v58  ;;  %4399 = vset.pattern.permute.xlu0 %v4565_v37  ;;  %v3919_v37 = vld [vmem:[%s5743_s29 + $0x70] sm:$0xff] }
 0xb19   : >> { %3465 = vrot.lane.b32.xlu0 %v5496_v51, %s4564_s27  ;;  %2812 = vmatprep.subr.bf16.mxu0 %v2778_v52  ;;  %v5964_v52 = vld [vmem:[#allocation29_spill] sm:$0xff] }
 0xb1a   : >> { %3471 = vrot.lane.b32.xlu1 %v5499_v5, %s4564_s27 }
 0xb1b   : >> { %v2753_v54 = vpop.permute.xlu0 %2752  ;;  %v2759_v36 = vpop.permute.xlu1 %2758 }
 0xb1c   : >> { %v2777_v60 = vsel %vm1095_vm10, %v2753_v54, %v2755_v9  ;;  %v2779_v43 = vsel %vm1095_vm10, %v2757_v58, %v2759_v36  ;;  %v5963_v58 = vld [vmem:[#allocation30_spill] sm:$0xff] }
 0xb1d   : >> { %3459 = vrot.lane.b32.xlu0 %v5502_v6, %s4564_s27  ;;  %2813 = vmatpush1.bf16.msra.mxu0 %v2777_v60  ;;  %v3900_v54 = vcombine.low %v5964_v52, %v5963_v58  ;;  %v3920_v60 = vld [vmem:[%s5743_s29 + $0x78] sm:$0xff] }
 0xb1e   : >> { %3461 = vrot.lane.b32.xlu1 %v5506_v53, %s4564_s27  ;;  %4159 = vmatpush3.bf16.msra.mxu1 %v2779_v43 }
 0xb1f   : >> { %v2912_v51 = vpop.permute.xlu0 %2911  ;;  %4164 = vmatprep.subr.bf16.mxu1 %v4554_v24  ;;  %v2914_v5 = vpop.permute.xlu1 %2913 }
 0xb20   : >> { %3895 = vmatmul.mubr.msk.bf16.vlgmr.msra.gmra.mxu0 %vm736_vm8, %v3894_v63  ;;  %v2925_v10 = vsel %vm1236_vm11, %v2912_v51, %v2914_v5 }
 0xb21   : >> { %3457 = vrot.lane.b32.xlu0 %v5511_v12, %s4564_s27  ;;  %4161 = vmatmul.mubr.msk.bf16.vlgmr.msra.gmra.mxu1 %vm736_vm8, %v3894_v63 }
 0xb22   : >> { %3463 = vrot.lane.b32.xlu1 %v5514_v16, %s4564_s27  ;;  %2949 = vmatprep.subr.bf16.mxu0 %v2925_v10 }
 0xb23   : >> { %v2910_v6 = vpop.permute.xlu0 %2909  ;;  %2971 = vmatprep.mubr.bf16.mxu0 %v4556_v34  ;;  %4170 = vmatprep.mubr.msk.bf16.mxu1 %vm4557_vm3, %v4554_v24  ;;  %v2916_v53 = vpop.permute.xlu1 %2915 }
 0xb24   : >> { %v2924_v47 = vsel %vm1236_vm11, %v2910_v6, %v2912_v51  ;;  %v2926_v48 = vsel %vm1236_vm11, %v2914_v5, %v2916_v53 }
 0xb25   : >> { %2950 = vmatpush1.bf16.msra.mxu0 %v2924_v47  ;;  %3595 = vperm.xlu0 %4399, %v4692_v18  }
 0xb26   : >> { %4165 = vmatpush3.bf16.msra.mxu1 %v2926_v48  ;;  %3600 = vperm.xlu1 %4400, %v4820_v46  }
 0xb27   : >> { %v2904_v12 = vpop.permute.xlu0 %2903  ;;  %4166 = vmatprep.subr.bf16.mxu1 %v4554_v24  ;;  %v2906_v16 = vpop.permute.xlu1 %2905 }
 0xb28   : >> { %v2922_v49 = vsel %vm1236_vm11, %v2904_v12, %v2906_v16 }
 0xb29   : >> { %2951 = vmatprep.subr.bf16.mxu0 %v2922_v49  ;;  %3631 = vrot.lane.b32.xlu0 %v3914_v25, %s4560_s20 }
 0xb2a   : >> { %3629 = vrot.lane.b32.xlu1 %v3913_v33, %s4560_s20 }
 0xb2b   : >> { %v2902_v50 = vpop.permute.xlu0 %2901  ;;  %v2908_v17 = vpop.permute.xlu1 %2907 }
 0xb2c   : >> { %v2921_v19 = vsel %vm1236_vm11, %v2902_v50, %v2904_v12  ;;  %v2923_v59 = vsel %vm1236_vm11, %v2906_v16, %v2908_v17 }
 0xb2d   : >> { %2952 = vmatpush1.bf16.msra.mxu0 %v2921_v19  ;;  %4167 = vmatpush3.bf16.msra.mxu1 %v2923_v59 }
 0xb2e   : >> { %4168 = vmatprep.subr.bf16.mxu1 %v4554_v24  ;;  %3633 = vrot.lane.b32.xlu1 %v3915_v13, %s4560_s20 }
 0xb2f   : >> { %v2896_v14 = vpop.permute.xlu0 %2895  ;;  %v2898_v39 = vpop.permute.xlu1 %2897  ;;  %3635 = vrot.lane.b32.xlu0 %v3916_v57, %s4560_s20 }
 0xb30   : >> { %v2919_v30 = vsel %vm1236_vm11, %v2896_v14, %v2898_v39 }
 0xb31   : >> { %2953 = vmatprep.subr.bf16.mxu0 %v2919_v30  ;;  %v5965_v30 = vld [vmem:[#allocation32_spill] sm:$0xff] }
 0xb32   : >> { %3637 = vrot.lane.b32.xlu1 %v3917_v42, %s4560_s20  ;;  %v5968_v42 = vld [vmem:[#allocation33_spill] sm:$0xff] }
 0xb33   : >> { %v2894_v32 = vpop.permute.xlu0 %2893  ;;  %v2900_v38 = vpop.permute.xlu1 %2899  ;;  %3639 = vrot.lane.b32.xlu0 %v3918_v29, %s4560_s20 }
 0xb34   : >> { %v2918_v35 = vsel %vm1236_vm11, %v2894_v32, %v2896_v14  ;;  %v2920_v7 = vsel %vm1236_vm11, %v2898_v39, %v2900_v38  ;;  %v5966_v32 = vld [vmem:[#allocation31_spill] sm:$0xff] }
 0xb35   : >> { %2954 = vmatpush1.bf16.msra.mxu0 %v2918_v35  ;;  %4169 = vmatpush3.bf16.msra.mxu1 %v2920_v7  ;;  %v3903_v38 = vcombine.low %v5966_v32, %v5965_v30 }
 0xb36   : >> { %4174 = vmatprep.subr.bf16.mxu1 %v4554_v24  ;;  %3641 = vrot.lane.b32.xlu1 %v3919_v37, %s4560_s20 }
 0xb37   : >> { %v3053_v15 = vpop.permute.xlu0 %3052  ;;  %v3055_v20 = vpop.permute.xlu1 %3054  ;;  %3643 = vrot.lane.b32.xlu0 %v3920_v60, %s4560_s20 }
 0xb38   : >> { %3898 = vmatmul.mubr.msk.bf16.vlgmr.msra.gmra.mxu0 %vm736_vm8, %v3897_v1  ;;  %v3066_v21 = vsel %vm1377_vm12, %v3053_v15, %v3055_v20  ;;  %4171 = vmatmul.mubr.msk.bf16.vlgmr.msra.gmra.mxu1 %vm736_vm8, %v3897_v1 }
 0xb39   : >> { %3112 = vmatprep.mubr.bf16.mxu0 %v4556_v34  ;;  %3090 = vmatprep.subr.bf16.mxu0 %v3066_v21 }
 0xb3a   : >> { %4180 = vmatprep.mubr.msk.bf16.mxu1 %vm4557_vm3, %v4554_v24 }
 0xb3b   : >> { %v3051_v22 = vpop.permute.xlu0 %3050  ;;  %v3057_v23 = vpop.permute.xlu1 %3056 }
 0xb3c   : >> { %v3065_v2 = vsel %vm1377_vm12, %v3051_v22, %v3053_v15  ;;  %v3067_v41 = vsel %vm1377_vm12, %v3055_v20, %v3057_v23 }
 0xb3d   : >> { %3091 = vmatpush1.bf16.msra.mxu0 %v3065_v2  ;;  %4175 = vmatpush3.bf16.msra.mxu1 %v3067_v41 }
 0xb3e   : >> { %4176 = vmatprep.subr.bf16.mxu1 %v4554_v24 }
 0xb3f   : >> { %v3045_v11 = vpop.permute.xlu0 %3044  ;;  %v3047_v44 = vpop.permute.xlu1 %3046 }
 0xb40   : >> { %v3063_v56 = vsel %vm1377_vm12, %v3045_v11, %v3047_v44 }
 0xb41   : >> { %3092 = vmatprep.subr.bf16.mxu0 %v3063_v56 }
 0xb43   : >> { %v3043_v45 = vpop.permute.xlu0 %3042  ;;  %v3049_v26 = vpop.permute.xlu1 %3048 }
 0xb44   : >> { %v3062_v3 = vsel %vm1377_vm12, %v3043_v45, %v3045_v11  ;;  %v3064_v40 = vsel %vm1377_vm12, %v3047_v44, %v3049_v26 }
 0xb45   : >> { %3093 = vmatpush1.bf16.msra.mxu0 %v3062_v3  ;;  %4177 = vmatpush3.bf16.msra.mxu1 %v3064_v40  ;;  %v5967_v3 = vld [vmem:[#allocation34_spill] sm:$0xff] }
 0xb46   : >> { %4178 = vmatprep.subr.bf16.mxu1 %v4554_v24  ;;  %v3906_v40 = vcombine.low %v5968_v42, %v5967_v3 }
 0xb47   : >> { %v3037_v0 = vpop.permute.xlu0 %3036  ;;  %v3039_v55 = vpop.permute.xlu1 %3038 }
 0xb48   : >> { %v3060_v27 = vsel %vm1377_vm12, %v3037_v0, %v3039_v55 }
 0xb49   : >> { %3094 = vmatprep.subr.bf16.mxu0 %v3060_v27 }
 0xb4b   : >> { %v3035_v61 = vpop.permute.xlu0 %3034  ;;  %v3041_v8 = vpop.permute.xlu1 %3040 }
 0xb4c   : >> { %v3059_v9 = vsel %vm1377_vm12, %v3035_v61, %v3037_v0  ;;  %v3061_v36 = vsel %vm1377_vm12, %v3039_v55, %v3041_v8 }
 0xb4d   : >> { %3095 = vmatpush1.bf16.msra.mxu0 %v3059_v9  ;;  %4179 = vmatpush3.bf16.msra.mxu1 %v3061_v36 }
 0xb4e   : >> { %4184 = vmatprep.subr.bf16.mxu1 %v4554_v24 }
 0xb4f   : >> { %v3194_v31 = vpop.permute.xlu0 %3193 }
 0xb50   : >> { %v3196_v4 = vpop.permute.xlu1 %3195  ;;  %3901 = vmatmul.mubr.msk.bf16.vlgmr.msra.gmra.mxu0 %vm736_vm8, %v3900_v54  ;;  %4181 = vmatmul.mubr.msk.bf16.vlgmr.msra.gmra.mxu1 %vm736_vm8, %v3900_v54 }
 0xb51   : >> { %v3207_v63 = vsel %vm1518_vm13, %v3194_v31, %v3196_v4  ;;  %3253 = vmatprep.mubr.bf16.mxu0 %v4556_v34  ;;  %4190 = vmatprep.mubr.msk.bf16.mxu1 %vm4557_vm3, %v4554_v24 }
 0xb52   : >> { %3231 = vmatprep.subr.bf16.mxu0 %v3207_v63 }
 0xb53   : >> { %v3192_v43 = vpop.permute.xlu0 %3191 }
 0xb54   : >> { %v3198_v51 = vpop.permute.xlu1 %3197  ;;  %v3206_v5 = vsel %vm1518_vm13, %v3192_v43, %v3194_v31 }
 0xb55   : >> { %v3208_v10 = vsel %vm1518_vm13, %v3196_v4, %v3198_v51  ;;  %3232 = vmatpush1.bf16.msra.mxu0 %v3206_v5 }
 0xb56   : >> { %4185 = vmatpush3.bf16.msra.mxu1 %v3208_v10 }
 0xb57   : >> { %v3186_v6 = vpop.permute.xlu0 %3185  ;;  %4186 = vmatprep.subr.bf16.mxu1 %v4554_v24 }
 0xb58   : >> { %v3188_v53 = vpop.permute.xlu1 %3187 }
 0xb59   : >> { %v3204_v47 = vsel %vm1518_vm13, %v3186_v6, %v3188_v53 }
 0xb5a   : >> { %3233 = vmatprep.subr.bf16.mxu0 %v3204_v47 }
 0xb5b   : >> { %v3184_v48 = vpop.permute.xlu0 %3183 }
 0xb5c   : >> { %v3190_v12 = vpop.permute.xlu1 %3189  ;;  %v3203_v16 = vsel %vm1518_vm13, %v3184_v48, %v3186_v6  ;;  %v5969_v6 = vld [vmem:[#allocation36_spill] sm:$0xff] }
 0xb5d   : >> { %v3205_v49 = vsel %vm1518_vm13, %v3188_v53, %v3190_v12  ;;  %3234 = vmatpush1.bf16.msra.mxu0 %v3203_v16  ;;  %v5970_v53 = vld [vmem:[#allocation35_spill] sm:$0xff] }
 0xb5e   : >> { %4187 = vmatpush3.bf16.msra.mxu1 %v3205_v49  ;;  %v3909_v47 = vcombine.low %v5970_v53, %v5969_v6 }
 0xb5f   : >> { %v3178_v50 = vpop.permute.xlu0 %3177  ;;  %4188 = vmatprep.subr.bf16.mxu1 %v4554_v24 }
 0xb60   : >> { %v3180_v17 = vpop.permute.xlu1 %3179 }
 0xb61   : >> { %v3201_v19 = vsel %vm1518_vm13, %v3178_v50, %v3180_v17 }
 0xb62   : >> { %3235 = vmatprep.subr.bf16.mxu0 %v3201_v19 }
 0xb63   : >> { %v3176_v59 = vpop.permute.xlu0 %3175 }
 0xb64   : >> { %v3182_v14 = vpop.permute.xlu1 %3181  ;;  %v3200_v39 = vsel %vm1518_vm13, %v3176_v59, %v3178_v50 }
 0xb65   : >> { %v3202_v35 = vsel %vm1518_vm13, %v3180_v17, %v3182_v14  ;;  %3236 = vmatpush1.bf16.msra.mxu0 %v3200_v39 }
 0xb66   : >> { %4189 = vmatpush3.bf16.msra.mxu1 %v3202_v35 }
 0xb67   : >> { %v3335_v62 = vpop.permute.xlu0 %3334  ;;  %4194 = vmatprep.subr.bf16.mxu1 %v4554_v24 }
 0xb68   : >> { %v3337_v28 = vpop.permute.xlu1 %3336  ;;  %3904 = vmatmul.mubr.msk.bf16.vlgmr.msra.gmra.mxu0 %vm736_vm8, %v3903_v38 }
 0xb69   : >> { %4191 = vmatmul.mubr.msk.bf16.vlgmr.msra.gmra.mxu1 %vm736_vm8, %v3903_v38  ;;  %v3348_v1 = vsel %vm1659_vm14, %v3335_v62, %v3337_v28  ;;  %3394 = vmatprep.mubr.bf16.mxu0 %v4556_v34 }
 0xb6a   : >> { %3372 = vmatprep.subr.bf16.mxu0 %v3348_v1  ;;  %4200 = vmatprep.mubr.msk.bf16.mxu1 %vm4557_vm3, %v4554_v24 }
 0xb6b   : >> { %v3333_v7 = vpop.permute.xlu0 %3332 }
 0xb6c   : >> { %v3339_v33 = vpop.permute.xlu1 %3338  ;;  %v3347_v25 = vsel %vm1659_vm14, %v3333_v7, %v3335_v62 }
 0xb6d   : >> { %v3349_v15 = vsel %vm1659_vm14, %v3337_v28, %v3339_v33  ;;  %3373 = vmatpush1.bf16.msra.mxu0 %v3347_v25 }
 0xb6e   : >> { %4195 = vmatpush3.bf16.msra.mxu1 %v3349_v15 }
 0xb6f   : >> { %v3327_v20 = vpop.permute.xlu0 %3326  ;;  %4196 = vmatprep.subr.bf16.mxu1 %v4554_v24 }
 0xb70   : >> { %v3329_v21 = vpop.permute.xlu1 %3328 }
 0xb71   : >> { %v3345_v22 = vsel %vm1659_vm14, %v3327_v20, %v3329_v21 }
 0xb72   : >> { %3374 = vmatprep.subr.bf16.mxu0 %v3345_v22 }
 0xb73   : >> { %v3325_v23 = vpop.permute.xlu0 %3324 }
 0xb74   : >> { %v3331_v2 = vpop.permute.xlu1 %3330  ;;  %v3344_v41 = vsel %vm1659_vm14, %v3325_v23, %v3327_v20 }
 0xb75   : >> { %v3346_v11 = vsel %vm1659_vm14, %v3329_v21, %v3331_v2  ;;  %3375 = vmatpush1.bf16.msra.mxu0 %v3344_v41 }
 0xb76   : >> { %4197 = vmatpush3.bf16.msra.mxu1 %v3346_v11 }
 0xb77   : >> { %v3319_v44 = vpop.permute.xlu0 %3318  ;;  %4198 = vmatprep.subr.bf16.mxu1 %v4554_v24 }
 0xb78   : >> { %v3321_v13 = vpop.permute.xlu1 %3320 }
 0xb79   : >> { %v3342_v56 = vsel %vm1659_vm14, %v3319_v44, %v3321_v13 }
 0xb7a   : >> { %3376 = vmatprep.subr.bf16.mxu0 %v3342_v56 }
 0xb7b   : >> { %v3317_v57 = vpop.permute.xlu0 %3316 }
 0xb7c   : >> { %v3323_v45 = vpop.permute.xlu1 %3322  ;;  %v3341_v26 = vsel %vm1659_vm14, %v3317_v57, %v3319_v44 }
 0xb7d   : >> { %v3343_v29 = vsel %vm1659_vm14, %v3321_v13, %v3323_v45  ;;  %3377 = vmatpush1.bf16.msra.mxu0 %v3341_v26 }
 0xb7e   : >> { %4199 = vmatpush3.bf16.msra.mxu1 %v3343_v29 }
 0xb7f   : >> { %v3476_v0 = vpop.permute.xlu0 %3475  ;;  %4204 = vmatprep.subr.bf16.mxu1 %v4554_v24 }
 0xb80   : >> { %v3478_v55 = vpop.permute.xlu1 %3477  ;;  %3907 = vmatmul.mubr.msk.bf16.vlgmr.msra.gmra.mxu0 %vm736_vm8, %v3906_v40 }
 0xb81   : >> { %4201 = vmatmul.mubr.msk.bf16.vlgmr.msra.gmra.mxu1 %vm736_vm8, %v3906_v40  ;;  %v3489_v27 = vsel %vm1800_vm15, %v3476_v0, %v3478_v55  ;;  %3535 = vmatprep.mubr.bf16.mxu0 %v4556_v34 }
 0xb82   : >> { %3513 = vmatprep.subr.bf16.mxu0 %v3489_v27  ;;  %4210 = vmatprep.mubr.msk.bf16.mxu1 %vm4557_vm3, %v4554_v24 }
 0xb83   : >> { %v3474_v61 = vpop.permute.xlu0 %3473 }
 0xb84   : >> { %v3480_v8 = vpop.permute.xlu1 %3479  ;;  %v3488_v9 = vsel %vm1800_vm15, %v3474_v61, %v3476_v0 }
 0xb85   : >> { %v3490_v58 = vsel %vm1800_vm15, %v3478_v55, %v3480_v8  ;;  %3514 = vmatpush1.bf16.msra.mxu0 %v3488_v9 }
 0xb86   : >> { %4205 = vmatpush3.bf16.msra.mxu1 %v3490_v58 }
 0xb87   : >> { %v3468_v52 = vpop.permute.xlu0 %3467  ;;  %4206 = vmatprep.subr.bf16.mxu1 %v4554_v24 }
 0xb88   : >> { %v3470_v54 = vpop.permute.xlu1 %3469 }
 0xb89   : >> { %v3486_v37 = vsel %vm1800_vm15, %v3468_v52, %v3470_v54 }
 0xb8a   : >> { %3515 = vmatprep.subr.bf16.mxu0 %v3486_v37 }
 0xb8b   : >> { %v3466_v34 = vpop.permute.xlu0 %3465 }
 0xb8c   : >> { %v3472_v36 = vpop.permute.xlu1 %3471  ;;  %v3485_v60 = vsel %vm1800_vm15, %v3466_v34, %v3468_v52 }
 0xb8d   : >> { %v3487_v31 = vsel %vm1800_vm15, %v3470_v54, %v3472_v36  ;;  %3516 = vmatpush1.bf16.msra.mxu0 %v3485_v60 }
 0xb8e   : >> { %4207 = vmatpush3.bf16.msra.mxu1 %v3487_v31 }
 0xb8f   : >> { %v3460_v4 = vpop.permute.xlu0 %3459  ;;  %4208 = vmatprep.subr.bf16.mxu1 %v4554_v24 }
 0xb90   : >> { %v3462_v63 = vpop.permute.xlu1 %3461 }
 0xb91   : >> { %v3483_v43 = vsel %vm1800_vm15, %v3460_v4, %v3462_v63 }
 0xb92   : >> { %3517 = vmatprep.subr.bf16.mxu0 %v3483_v43 }
 0xb93   : >> { %v3458_v51 = vpop.permute.xlu0 %3457 }
 0xb94   : >> { %v3464_v5 = vpop.permute.xlu1 %3463  ;;  %v3482_v10 = vsel %vm1800_vm15, %v3458_v51, %v3460_v4 }
 0xb95   : >> { %v3484_v48 = vsel %vm1800_vm15, %v3462_v63, %v3464_v5  ;;  %3518 = vmatpush1.bf16.msra.mxu0 %v3482_v10 }
 0xb96   : >> { %4209 = vmatpush3.bf16.msra.mxu1 %v3484_v48 }
 0xb98   : >> { %3910 = vmatmul.mubr.msk.bf16.vlgmr.msra.gmra.mxu0 %vm736_vm8, %v3909_v47 }
 0xb99   : >> { %4211 = vmatmul.mubr.msk.bf16.vlgmr.msra.gmra.mxu1 %vm736_vm8, %v3909_v47 }
 0xbb0   : >> { %v2455_v1 = vpop.f32.mrf.mxu0 }
 0xbb1   : >> { %v2498_v24 = vpop.f32.mrf.mxu1 }
 0xbb2   : >> { %v2457_v15 = vpop.f32.mrf.mxu0 }
 0xbb3   : >> { %v4132_v12 = vpop.f32.mrf.mxu1 }
 0xbb4   : >> { %v2459_v23 = vpop.f32.mrf.mxu0 }
 0xbb5   : >> { %v2501_v16 = vpop.f32.mrf.mxu1 }
 0xbb6   : >> { %v2461_v2 = vpop.f32.mrf.mxu0 }
 0xbb7   : >> { %v4133_v49 = vpop.f32.mrf.mxu1 }
 0xbbd   : >> { %v2599_v50 = vpop.f32.mrf.mxu1 }
 0xbbe   : >> { %v2600_v17 = vadd.f32 %v2599_v50, %v2498_v24 }
 0xbbf   : >> { %v4142_v19 = vpop.f32.mrf.mxu1  ;;  %v2556_v41 = vpop.f32.mrf.mxu0 }
 0xbc0   : >> { %v2557_v19 = vadd.f32 %v2556_v41, %v2455_v1 }
 0xbc1   : >> { %v2602_v59 = vpop.f32.mrf.mxu1  ;;  %v2558_v11 = vpop.f32.mrf.mxu0 }
 0xbc2   : >> { %v2603_v14 = vadd.f32 %v2602_v59, %v2501_v16 }
 0xbc3   : >> { %v4143_v39 = vpop.f32.mrf.mxu1  ;;  %v2560_v44 = vpop.f32.mrf.mxu0 }
 0xbc4   : >> { %v2559_v39 = vadd.f32 %v2558_v11, %v2457_v15 }
 0xbc5   : >> { %v2562_v45 = vpop.f32.mrf.mxu0 }
 0xbc9   : >> { %v2734_v30 = vpop.f32.mrf.mxu1 }
 0xbca   : >> { %v2743_v32 = vadd.f32 %v2734_v30, %v2600_v17  ;;  %v5841_v17 = vpop.permute.xlu0 %3595 }
 0xbcb   : >> { %v4152_v38 = vpop.f32.mrf.mxu1  ;;  %v2691_v40 = vpop.f32.mrf.mxu0 }
 0xbcc   : >> { %v2561_v38 = vadd.f32 %v2560_v44, %v2459_v23 }
 0xbcd   : >> { %v2737_v35 = vpop.f32.mrf.mxu1  ;;  %v2693_v29 = vpop.f32.mrf.mxu0 }
 0xbce   : >> { %v2746_v62 = vadd.f32 %v2737_v35, %v2603_v14  ;;  %v5843_v14 = vpop.permute.xlu1 %3600  ;;  %v2741_v35 = vadd.f32 %v2691_v40, %v2557_v19 }
 0xbcf   : >> { %v4153_v28 = vpop.f32.mrf.mxu1  ;;  %v2695_v0 = vpop.f32.mrf.mxu0 }
 0xbd0   : >> { %v3632_v28 = vpop.permute.xlu0 %3631 }
 0xbd1   : >> { %v2697_v55 = vpop.f32.mrf.mxu0 }
 0xbe0   : >> { %v2832_v27 = vpop.f32.mrf.mxu0 }
 0xbe1   : >> { %v2875_v7 = vpop.f32.mrf.mxu1 }
 0xbe2   : >> { %v2884_v33 = vadd.f32 %v2875_v7, %v2743_v32  ;;  %v2834_v58 = vpop.f32.mrf.mxu0  ;;  %v2563_v7 = vadd.f32 %v2562_v45, %v2461_v2 }
 0xbe3   : >> { %v4162_v25 = vpop.f32.mrf.mxu1 }
 0xbe4   : >> { %v2836_v34 = vpop.f32.mrf.mxu0  ;;  %v3630_v25 = vpop.permute.xlu1 %3629 }
 0xbe5   : >> { %v2878_v20 = vpop.f32.mrf.mxu1 }
 0xbe6   : >> { %v2887_v21 = vadd.f32 %v2878_v20, %v2746_v62  ;;  %v2838_v36 = vpop.f32.mrf.mxu0  ;;  %v2744_v20 = vadd.f32 %v2695_v0, %v2561_v38 }
 0xbe7   : >> { %v4163_v22 = vpop.f32.mrf.mxu1 }
 0xbe8   : >> { %v2885_v1 = vadd.f32 %v2836_v34, %v2744_v20 }
 0xbf8   : >> { %v3016_v13 = vpop.f32.mrf.mxu1  ;;  %v2973_v60 = vpop.f32.mrf.mxu0 }
 0xbf9   : >> { %v3025_v56 = vadd.f32 %v3016_v13, %v2884_v33  ;;  %v2742_v33 = vadd.f32 %v2693_v29, %v2559_v39  ;;  %v2745_v13 = vadd.f32 %v2697_v55, %v2563_v7 }
 0xbfa   : >> { %v4172_v57 = vpop.f32.mrf.mxu1  ;;  %v2975_v31 = vpop.f32.mrf.mxu0 }
 0xbfb   : >> { %v3636_v57 = vpop.permute.xlu0 %3635  ;;  %v2886_v15 = vadd.f32 %v2838_v36, %v2745_v13 }
 0xbfc   : >> { %v3019_v26 = vpop.f32.mrf.mxu1  ;;  %v2977_v4 = vpop.f32.mrf.mxu0 }
 0xbfd   : >> { %v3028_v3 = vadd.f32 %v3019_v26, %v2887_v21  ;;  %v2882_v21 = vadd.f32 %v2832_v27, %v2741_v35  ;;  %v3026_v44 = vadd.f32 %v2977_v4, %v2885_v1 }
 0xbfe   : >> { %v4173_v42 = vpop.f32.mrf.mxu1  ;;  %v2979_v51 = vpop.f32.mrf.mxu0 }
 0xbff   : >> { %v3023_v41 = vadd.f32 %v2973_v60, %v2882_v21  ;;  %v3640_v29 = vpop.permute.xlu0 %3639  ;;  %v3027_v0 = vadd.f32 %v2979_v51, %v2886_v15 }
 0xc10   : >> { %v3157_v61 = vpop.f32.mrf.mxu1  ;;  %v3114_v10 = vpop.f32.mrf.mxu0 }
 0xc11   : >> { %v3166_v8 = vadd.f32 %v3157_v61, %v3025_v56  ;;  %v2883_v56 = vadd.f32 %v2834_v58, %v2742_v33  ;;  %v3164_v23 = vadd.f32 %v3114_v10, %v3023_v41 }
 0xc12   : >> { %v4182_v9 = vpop.f32.mrf.mxu1  ;;  %v3116_v53 = vpop.f32.mrf.mxu0 }
 0xc13   : >> { %v3024_v11 = vadd.f32 %v2975_v31, %v2883_v56 }
 0xc14   : >> { %v3160_v52 = vpop.f32.mrf.mxu1  ;;  %v3118_v47 = vpop.f32.mrf.mxu0 }
 0xc15   : >> { %v5839_v54 = vadd.f32 %v3160_v52, %v3028_v3  ;;  %v3634_v3 = vpop.permute.xlu1 %3633  ;;  %v3165_v42 = vadd.f32 %v3116_v53, %v3024_v11  ;;  %v3167_v27 = vadd.f32 %v3118_v47, %v3026_v44 }
 0xc16   : >> { %v4183_v37 = vpop.f32.mrf.mxu1  ;;  %v3120_v48 = vpop.f32.mrf.mxu0 }
 0xc17   : >> { %v3168_v37 = vadd.f32 %v3120_v48, %v3027_v0  ;;  %v3648_v48 = vsel %vm1236_vm11, %v3634_v3, %v3636_v57 }
 0xc19   : >> { %v3638_v52 = vpop.permute.xlu1 %3637 }
 0xc1a   : >> { %v3649_v20 = vsel %vm1236_vm11, %v3638_v52, %v3640_v29 }
 0xc1d   : >> { %v3642_v38 = vpop.permute.xlu1 %3641 }
 0xc1e   : >> { %v3650_v13 = vsel %vm1236_vm11, %v3640_v29, %v3642_v38 }
 0xc28   : >> { %v3255_v24 = vpop.f32.mrf.mxu0 }
 0xc29   : >> { %v3298_v63 = vpop.f32.mrf.mxu1  ;;  %v3305_v40 = vadd.f32 %v3255_v24, %v3164_v23  ;;  %v3646_v24 = vsel %vm1236_vm11, %v3630_v25, %v3632_v28 }
 0xc2a   : >> { %v3257_v12 = vpop.f32.mrf.mxu0  ;;  %v3307_v2 = vadd.f32 %v3298_v63, %v3166_v8 }
 0xc2b   : >> { %v4192_v43 = vpop.f32.mrf.mxu1  ;;  %v3306_v61 = vadd.f32 %v3257_v12, %v3165_v42 }
 0xc2c   : >> { %v3259_v50 = vpop.f32.mrf.mxu0 }
 0xc2d   : >> { %v3301_v5 = vpop.f32.mrf.mxu1  ;;  %v3308_v34 = vadd.f32 %v3259_v50, %v3167_v27 }
 0xc2e   : >> { %v3261_v32 = vpop.f32.mrf.mxu0  ;;  %v3310_v4 = vadd.f32 %v3301_v5, %v5839_v54  ;;  %v3644_v54 = vpop.permute.xlu0 %3643 }
 0xc2f   : >> { %v4193_v6 = vpop.f32.mrf.mxu1  ;;  %v3309_v63 = vadd.f32 %v3261_v32, %v3168_v37 }
 0xc40   : >> { %v3396_v62 = vpop.f32.mrf.mxu0 }
 0xc41   : >> { %v3439_v16 = vpop.f32.mrf.mxu1  ;;  %v3446_v55 = vadd.f32 %v3396_v62, %v3305_v40 }
 0xc42   : >> { %v3398_v22 = vpop.f32.mrf.mxu0  ;;  %v3448_v9 = vadd.f32 %v3439_v16, %v3307_v2 }
 0xc43   : >> { %v4202_v49 = vpop.f32.mrf.mxu1  ;;  %v3447_v36 = vadd.f32 %v3398_v22, %v3306_v61 }
 0xc44   : >> { %v3400_v26 = vpop.f32.mrf.mxu0 }
 0xc45   : >> { %v3442_v59 = vpop.f32.mrf.mxu1  ;;  %v3449_v10 = vadd.f32 %v3400_v26, %v3308_v34 }
 0xc46   : >> { %v3402_v45 = vpop.f32.mrf.mxu0  ;;  %v3451_v47 = vadd.f32 %v3442_v59, %v3310_v4  ;;  %v3647_v59 = vsel %vm1236_vm11, %v3632_v28, %v3634_v3 }
 0xc47   : >> { %v4203_v30 = vpop.f32.mrf.mxu1  ;;  %v3450_v5 = vadd.f32 %v3402_v45, %v3309_v63 }
 0xc58   : >> { %v3537_v58 = vpop.f32.mrf.mxu0 }
 0xc59   : >> { %v3587_v60 = vadd.f32 %v3537_v58, %v3446_v55  ;;  %v3580_v31 = vpop.f32.mrf.mxu1 }
 0xc5a   : >> { %v3589_v43 = vadd.f32 %v3580_v31, %v3448_v9  ;;  %v3539_v8 = vpop.f32.mrf.mxu0 }
 0xc5b   : >> { %v3603_v51 = vadd.f32 %v5841_v17, %v3587_v60  ;;  %v3588_v6 = vadd.f32 %v3539_v8, %v3447_v36  ;;  %v4212_v53 = vpop.f32.mrf.mxu1 }
 0xc5c   : >> { %v3605_v12 = vadd.f32 %v5841_v17, %v3589_v43  ;;  %v3541_v16 = vpop.f32.mrf.mxu0 }
 0xc5d   : >> { %v3658_v49 = vadd.f32 %v3646_v24, %v3603_v51  ;;  %v3604_v50 = vadd.f32 %v5841_v17, %v3588_v6  ;;  %v3590_v19 = vadd.f32 %v3541_v16, %v3449_v10  ;;  %v3583_v39 = vpop.f32.mrf.mxu1  ;;  %v3651_v17 = vsel %vm1236_vm11, %v3642_v38, %v3644_v54 }
 0xc5e   : >> { %v3660_v30 = vadd.f32 %v3648_v48, %v3605_v12  ;;  %v3592_v32 = vadd.f32 %v3583_v39, %v3451_v47  ;;  %v3543_v35 = vpop.f32.mrf.mxu0 }
 0xc5f   : >> { %3667 = vst [vmem:[%s5851_s8] sm:$0xff] %v3658_v49  ;;  %v3659_v62 = vadd.f32 %v3647_v59, %v3604_v50  ;;  %v3606_v7 = vadd.f32 %v5843_v14, %v3590_v19  ;;  %v3591_v33 = vadd.f32 %v3543_v35, %v3450_v5  ;;  %v4213_v25 = vpop.f32.mrf.mxu1 }
 0xc60   : >> { %3669 = vst [vmem:[%s5851_s8 + $0x10] sm:$0xff] %v3660_v30  ;;  %v3608_v28 = vadd.f32 %v5843_v14, %v3592_v32 }
 0xc61   : >> { %3668 = vst [vmem:[%s5851_s8 + $0x8] sm:$0xff] %v3659_v62  ;;  %v3661_v21 = vadd.f32 %v3649_v20, %v3606_v7  ;;  %v3607_v22 = vadd.f32 %v5843_v14, %v3591_v33  ;;  %2304 = sbr.rel (!%p2302_p8) target bundleno = 2654 (0xa5e), region = 164 }
 0xc62   : >> { %v3663_v56 = vadd.f32 %v3651_v17, %v3608_v28 }
 0xc63   : >> { %3670 = vst [vmem:[%s5851_s8 + $0x18] sm:$0xff] %v3661_v21  ;;  %v3662_v57 = vadd.f32 %v3650_v13, %v3607_v22 }
 0xc64   : >> { %3672 = vst [vmem:[%s5851_s8 + $0x28] sm:$0xff] %v3663_v56 }
 0xc65   : >> { %3671 = vst [vmem:[%s5851_s8 + $0x20] sm:$0xff] %v3662_v57 }
 0xc66 PF: > { %s16_s21 = sadd.s32 1, %s4477_s21  }
 0xc67   : > { %p13_p9 = scmp.ge.s32.totalorder %s16_s21, 4  }
 0xc69   :  { %15 = sbr.rel (!%p13_p9) target bundleno = 1 (0x1), region = 175 }

</bundles_post_ra>
